<compile_context>
chip_gen: v7x
topology: tpu7x:2x2x1
jax: 0.10.0
libtpu: 0.0.40
codegen_flags: <defaults>
</compile_context>

<pallas_src>
import functools

import numpy as np
import jax
import jax.numpy as jnp
from jax.experimental import pallas as pl
from jax.experimental.pallas import tpu as pltpu

CPAD = 128  # lane-dense channel padding (full vreg lane width)


# ----------------------------------------------------------------------------
# Pallas kernels
# ----------------------------------------------------------------------------
def _conv_bn_relu_pool_kernel(x_ref, b_ref, scale_ref, shift_ref, o_ref, *, kh, ho):
    """Fused valid-conv (banded matmul) + folded-BN affine + ReLU + 2x2 max-pool.

    x_ref     : (1, H, W*Cs)            f32   one image; W and channels merged on lanes
    b_ref     : (kh, W*Cs, WO*CPAD)     bf16  banded conv weights, one slab per kernel row
    scale_ref : (1, WO*CPAD)            f32   folded BN scale (tiled per output column)
    shift_ref : (1, WO*CPAD)            f32   folded BN shift
    o_ref     : (1, HO//2, (WO//2)*CPAD) f32  pooled output
    """
    # Conv = sum over the kh kernel rows of (contiguous input row-slab) @ (banded weights).
    # bf16 MXU operands, f32 accumulation kept in vregs.
    acc = jnp.dot(x_ref[0, pl.ds(0, ho), :].astype(jnp.bfloat16), b_ref[0],
                  preferred_element_type=jnp.float32)
    for dy in range(1, kh):
        acc = acc + jnp.dot(x_ref[0, pl.ds(dy, ho), :].astype(jnp.bfloat16),
                            b_ref[dy], preferred_element_type=jnp.float32)

    # Folded BatchNorm (eval running stats) + ReLU, in f32 (v5e-safe epilogue).
    y = jnp.maximum(acc * scale_ref[...] + shift_ref[...], 0.0)      # (ho, WO*CPAD)

    # --- fused 2x2 max-pool ---
    # W direction: even output columns live in the first lane half, odd in the
    # second (by construction of the banded weights) -> 128-aligned lane-half max.
    half = y.shape[-1] // 2
    yw = jnp.maximum(y[:, :half], y[:, half:])                       # (ho, (WO//2)*CPAD)

    # H direction: exact 0/1 row-selection matmuls (avoids strided sublane ops).
    ho2 = ho // 2
    rows = jax.lax.broadcasted_iota(jnp.int32, (ho2, ho), 0)
    cols = jax.lax.broadcasted_iota(jnp.int32, (ho2, ho), 1)
    s_even = (cols == 2 * rows).astype(jnp.float32)
    s_odd = (cols == 2 * rows + 1).astype(jnp.float32)
    pooled = jnp.maximum(
        jnp.dot(s_even, yw, preferred_element_type=jnp.float32),
        jnp.dot(s_odd, yw, preferred_element_type=jnp.float32))
    o_ref[0] = pooled.astype(o_ref.dtype)


def _dense_kernel(x_ref, w1_ref, b1_ref, w2_ref, b2_ref, o_ref):
    """Fused DenseNet tail: Linear -> ReLU -> Linear -> ReLU (dropout = id in eval)."""
    h = jnp.dot(x_ref[...].astype(jnp.bfloat16), w1_ref[...],
                preferred_element_type=jnp.float32)
    h = jnp.maximum(h + b1_ref[...], 0.0)
    y = jnp.dot(h.astype(jnp.bfloat16), w2_ref[...],
                preferred_element_type=jnp.float32)
    o_ref[...] = jnp.maximum(y + b2_ref[...], 0.0)


# ----------------------------------------------------------------------------
# pallas_call wrappers
# ----------------------------------------------------------------------------
def conv_bn_relu_pool(x, stage):
    """x: (N, H, W*Cs) f32.  Returns (N, HO//2, (WO//2)*CPAD) f32."""
    n, h, wcs = x.shape
    banded = stage["banded_w"]
    kh = banded.shape[0]
    assert banded.shape[1] == wcs
    wo_cpad = banded.shape[2]
    ho = h - kh + 1
    assert ho % 2 == 0 and (wo_cpad // CPAD) % 2 == 0
    ho2 = ho // 2
    half = wo_cpad // 2

    kernel = functools.partial(_conv_bn_relu_pool_kernel, kh=kh, ho=ho)
    return pl.pallas_call(
        kernel,
        out_shape=jax.ShapeDtypeStruct((n, ho2, half), jnp.float32),
        grid_spec=pltpu.PrefetchScalarGridSpec(
            num_scalar_prefetch=0,
            grid=(n,),                                   # batch-parallel grid
            in_specs=[
                pl.BlockSpec((1, h, wcs), lambda i: (i, 0, 0)),
                pl.BlockSpec((kh, wcs, wo_cpad), lambda i: (0, 0, 0)),
                pl.BlockSpec((1, wo_cpad), lambda i: (0, 0)),
                pl.BlockSpec((1, wo_cpad), lambda i: (0, 0)),
            ],
            out_specs=pl.BlockSpec((1, ho2, half), lambda i: (i, 0, 0)),
        ),
        compiler_params=pltpu.CompilerParams(
            dimension_semantics=("parallel",),            # 2 TCs on v7x
            vmem_limit_bytes=32 * 1024 * 1024,            # safe on v5e/v6e/v7x
        ),
    )(x, stage["banded_w"], stage["scale"], stage["shift"])


def dense_forward(flat, prep):
    """Fused fc1 -> ReLU -> fc2 -> ReLU.  M = batch is tiny -> single latency-bound call."""
    n = flat.shape[0]
    dim_out = prep["fc2_w"].shape[1]
    vmem = pl.BlockSpec(memory_space=pltpu.MemorySpace.VMEM)
    return pl.pallas_call(
        _dense_kernel,
        out_shape=jax.ShapeDtypeStruct((n, dim_out), jnp.float32),
        in_specs=[vmem] * 5,
        out_specs=vmem,
        compiler_params=pltpu.CompilerParams(vmem_limit_bytes=32 * 1024 * 1024),
    )(flat, prep["fc1_w"], prep["fc1_b"], prep["fc2_w"], prep["fc2_b"])


# ----------------------------------------------------------------------------
# Parameter init (PyTorch-equivalent layout) and one-time pre-packing
# ----------------------------------------------------------------------------
def xavier_uniform(key, shape, fan_in, fan_out):
    bound = (6.0 / (fan_in + fan_out)) ** 0.5
    return jax.random.uniform(key, shape, jnp.float32, -bound, bound)


def init_params(key, i_c, i_h, i_w, dim_out_h, last_feat_dim):
    ks = jax.random.split(key, 6)
    h1, w1 = i_h - 4, i_w - 4
    p1h, p1w = h1 // 2, w1 // 2
    h2, w2 = p1h - 4, p1w - 4
    p2h, p2w = h2 // 2, w2 // 2
    hdim = 64 * p2h * p2w
    params = {
        "conv1_w": xavier_uniform(ks[0], (32, i_c, 5, 5), i_c * 25, 32 * 25),
        "conv2_w": xavier_uniform(ks[1], (64, 32, 5, 5), 32 * 25, 64 * 25),
        # BatchNorm2d defaults: gamma=1, beta=0, running_mean=0, running_var=1
        "bn1": (jnp.ones(32), jnp.zeros(32), jnp.zeros(32), jnp.ones(32)),
        "bn2": (jnp.ones(64), jnp.zeros(64), jnp.zeros(64), jnp.ones(64)),
        "fc1_w": xavier_uniform(ks[2], (hdim, last_feat_dim), hdim, last_feat_dim),
        "fc1_b": jax.random.uniform(ks[3], (last_feat_dim,), jnp.float32,
                                    -1.0 / hdim ** 0.5, 1.0 / hdim ** 0.5),
        "fc2_w": xavier_uniform(ks[4], (last_feat_dim, dim_out_h),
                                last_feat_dim, dim_out_h),
        "fc2_b": jax.random.uniform(ks[5], (dim_out_h,), jnp.float32,
                                    -1.0 / last_feat_dim ** 0.5,
                                    1.0 / last_feat_dim ** 0.5),
    }
    return params, hdim


def _fold_bn(gamma, beta, mean, var, eps=1e-5):
    scale = gamma / np.sqrt(var + eps)
    return scale, beta - mean * scale


def _build_conv_stage(w_oihw, bn, cin_stored, w_in):
    """Pre-pack one Conv->BN->ReLU->MaxPool stage.

    Builds block-banded weights B[dy] of shape (W*Cs, WO*CPAD) such that
    conv(X)[h, :] = sum_dy X[h+dy, :] @ B[dy], with output columns ordered
    (w-parity, w//2, channel) so the W-direction 2x2 pool is a lane-half max.
    """
    w = np.asarray(w_oihw, np.float32)
    cout, ct, kh, kw = w.shape
    wo = w_in - kw + 1
    assert wo % 2 == 0, "this packing assumes even conv output width (maxpool 2x2)"
    wo2 = wo // 2
    banded = np.zeros((kh, w_in * cin_stored, wo * CPAD), np.float32)
    for dy in range(kh):
        for dx in range(kw):
            blk = w[:, :, dy, dx].T                                 # (ct, cout)
            for wcol in range(wo):
                col0 = (wcol % 2) * (wo2 * CPAD) + (wcol // 2) * CPAD
                row0 = (wcol + dx) * cin_stored
                banded[dy, row0:row0 + ct, col0:col0 + cout] = blk
    gamma, beta, mean, var = (np.asarray(a, np.float32) for a in bn)
    scale, shift = _fold_bn(gamma, beta, mean, var)
    scale_p = np.zeros((CPAD,), np.float32)
    shift_p = np.zeros((CPAD,), np.float32)
    scale_p[:cout] = scale
    shift_p[:cout] = shift
    return {
        "banded_w": jnp.asarray(banded, jnp.bfloat16),
        "scale": jnp.asarray(np.tile(scale_p, wo)[None, :]),
        "shift": jnp.asarray(np.tile(shift_p, wo)[None, :]),
    }


def _build_dense(params, h2p, w2p, cout):
    """Permute fc1 rows from PyTorch NCHW-flatten order to the padded NHWC order
    produced by the conv stack (removes the flatten transpose at runtime)."""
    fc1_w = np.asarray(params["fc1_w"], np.float32)     # (hdim, feat)
    hdim, feat = fc1_w.shape
    assert hdim == cout * h2p * w2p
    w1p = np.zeros((h2p * w2p * CPAD, feat), np.float32)
    for c in range(cout):
        for hh in range(h2p):
            for ww in range(w2p):
                w1p[hh * w2p * CPAD + ww * CPAD + c, :] = \
                    fc1_w[c * h2p * w2p + hh * w2p + ww, :]
    return {
        "fc1_w": jnp.asarray(w1p, jnp.bfloat16),
        "fc1_b": jnp.asarray(np.asarray(params["fc1_b"], np.float32)[None, :]),
        "fc2_w": jnp.asarray(np.asarray(params["fc2_w"], np.float32), jnp.bfloat16),
        "fc2_b": jnp.asarray(np.asarray(params["fc2_b"], np.float32)[None, :]),
    }


def prepare_params(params, i_c, i_h, i_w):
    h1, w1 = i_h - 4, i_w - 4
    p1h, p1w = h1 // 2, w1 // 2
    h2, w2 = p1h - 4, p1w - 4
    p2h, p2w = h2 // 2, w2 // 2
    prep = {
        "conv1": _build_conv_stage(params["conv1_w"], params["bn1"],
                                   cin_stored=i_c, w_in=i_w),
        # stage-2 input carries the 128-padded channel layout; padded-channel
        # rows of the banded weights are zero.
        "conv2": _build_conv_stage(params["conv2_w"], params["bn2"],
                                   cin_stored=CPAD, w_in=p1w),
    }
    prep.update(_build_dense(params, p2h, p2w, cout=int(params["conv2_w"].shape[0])))
    return prep


# ----------------------------------------------------------------------------
# NetConvDense.forward
# ----------------------------------------------------------------------------
@jax.jit
def net_conv_dense_forward(prep, x_nchw):
    n, c, h, w = x_nchw.shape
    # NCHW (PyTorch) -> NHWC -> (N, H, W*C): W and channels merged on the lane axis.
    x = jnp.transpose(x_nchw, (0, 2, 3, 1)).astype(jnp.float32).reshape(n, h, w * c)
    a = conv_bn_relu_pool(x, prep["conv1"])          # (N, 6, 6*128)
    a = conv_bn_relu_pool(a, prep["conv2"])          # (N, 1, 1*128)
    flat = a.reshape(n, -1)                          # natural padded-NHWC flatten (free)
    return dense_forward(flat, prep)                 # (N, dim_out_h)


if __name__ == "__main__":
    key = jax.random.PRNGKey(0)
    k_param, k_x = jax.random.split(key)

    # Module-consistent small shapes: isize=(3,16,16), batch=2, dim_out_h=32
    B, I_C, I_H, I_W = 2, 3, 16, 16
    DIM_OUT_H = 32
    LAST_FEAT_DIM = 256   # DenseNet hidden width (kept small for this synthetic test)

    params, hdim = init_params(k_param, I_C, I_H, I_W, DIM_OUT_H, LAST_FEAT_DIM)
    prep = prepare_params(params, I_C, I_H, I_W)
    x = jax.random.normal(k_x, (B, I_C, I_H, I_W), jnp.float32)

    out = net_conv_dense_forward(prep, x)
    jax.block_until_ready(out)

    assert out.shape == (B, DIM_OUT_H), out.shape
    assert out.dtype == jnp.float32
    assert bool(jnp.all(jnp.isfinite(out)))
    print("KERNEL_OK")
</pallas_src>

<mosaic_0001>
module attributes {stable_mosaic.version = 11 : i64} {
  func.func @_conv_bn_relu_pool_kernel(%arg0: i32, %arg1: memref<1x16x48xf32, #tpu.memory_space<vmem>>, %arg2: memref<5x48x1536xbf16, #tpu.memory_space<vmem>>, %arg3: memref<1x1536xf32, #tpu.memory_space<vmem>>, %arg4: memref<1x1536xf32, #tpu.memory_space<vmem>>, %arg5: memref<1x6x768xf32, #tpu.memory_space<vmem>>) attributes {dimension_semantics = [#tpu.dimension_semantics<parallel>], iteration_bounds = array<i64: 2>, scalar_prefetch = 0 : i64, scratch_operands = 0 : i64, tpu.core_type = #tpu.core_type<tc>, window_params = [{transform_indices = @transform_0, window_bounds = array<i64: 1, 16, 48>}, {pipeline_mode = #tpu.pipeline_mode<synchronous>, transform_indices = @transform_1, window_bounds = array<i64: 5, 48, 1536>}, {pipeline_mode = #tpu.pipeline_mode<synchronous>, transform_indices = @transform_2, window_bounds = array<i64: 1, 1536>}, {pipeline_mode = #tpu.pipeline_mode<synchronous>, transform_indices = @transform_3, window_bounds = array<i64: 1, 1536>}, {transform_indices = @transform_4, window_bounds = array<i64: 1, 6, 768>}]} {
    %c0 = arith.constant 0 : index
    %c0_0 = arith.constant 0 : index
    %c0_1 = arith.constant 0 : index
    %0 = vector.load %arg1[%c0, %c0_0, %c0_1] : memref<1x16x48xf32, #tpu.memory_space<vmem>>, vector<1x12x48xf32>
    %1 = vector.shape_cast %0 : vector<1x12x48xf32> to vector<12x48xf32>
    %2 = arith.truncf %1 : vector<12x48xf32> to vector<12x48xbf16>
    %c0_2 = arith.constant 0 : index
    %c0_3 = arith.constant 0 : index
    %c0_4 = arith.constant 0 : index
    %3 = vector.load %arg2[%c0_2, %c0_3, %c0_4] : memref<5x48x1536xbf16, #tpu.memory_space<vmem>>, vector<1x48x1536xbf16>
    %4 = vector.shape_cast %3 : vector<1x48x1536xbf16> to vector<48x1536xbf16>
    %cst = arith.constant dense<0.000000e+00> : vector<12x1536xf32>
    %5 = tpu.matmul %2, %4, %cst {dimension_numbers = #tpu.dot_dimension_numbers<[1], [0], [0], [1], [0, 0, 1, 1], [], []>} : vector<12x48xbf16>, vector<48x1536xbf16>, vector<12x1536xf32> -> vector<12x1536xf32>
    %c0_5 = arith.constant 0 : index
    %c1 = arith.constant 1 : index
    %c0_6 = arith.constant 0 : index
    %6 = vector.load %arg1[%c0_5, %c1, %c0_6] : memref<1x16x48xf32, #tpu.memory_space<vmem>>, vector<1x12x48xf32>
    %7 = vector.shape_cast %6 : vector<1x12x48xf32> to vector<12x48xf32>
    %8 = arith.truncf %7 : vector<12x48xf32> to vector<12x48xbf16>
    %c1_7 = arith.constant 1 : index
    %c0_8 = arith.constant 0 : index
    %c0_9 = arith.constant 0 : index
    %9 = vector.load %arg2[%c1_7, %c0_8, %c0_9] : memref<5x48x1536xbf16, #tpu.memory_space<vmem>>, vector<1x48x1536xbf16>
    %10 = vector.shape_cast %9 : vector<1x48x1536xbf16> to vector<48x1536xbf16>
    %cst_10 = arith.constant dense<0.000000e+00> : vector<12x1536xf32>
    %11 = tpu.matmul %8, %10, %cst_10 {dimension_numbers = #tpu.dot_dimension_numbers<[1], [0], [0], [1], [0, 0, 1, 1], [], []>} : vector<12x48xbf16>, vector<48x1536xbf16>, vector<12x1536xf32> -> vector<12x1536xf32>
    %12 = arith.addf %5, %11 : vector<12x1536xf32>
    %c0_11 = arith.constant 0 : index
    %c2 = arith.constant 2 : index
    %c0_12 = arith.constant 0 : index
    %13 = vector.load %arg1[%c0_11, %c2, %c0_12] : memref<1x16x48xf32, #tpu.memory_space<vmem>>, vector<1x12x48xf32>
    %14 = vector.shape_cast %13 : vector<1x12x48xf32> to vector<12x48xf32>
    %15 = arith.truncf %14 : vector<12x48xf32> to vector<12x48xbf16>
    %c2_13 = arith.constant 2 : index
    %c0_14 = arith.constant 0 : index
    %c0_15 = arith.constant 0 : index
    %16 = vector.load %arg2[%c2_13, %c0_14, %c0_15] : memref<5x48x1536xbf16, #tpu.memory_space<vmem>>, vector<1x48x1536xbf16>
    %17 = vector.shape_cast %16 : vector<1x48x1536xbf16> to vector<48x1536xbf16>
    %cst_16 = arith.constant dense<0.000000e+00> : vector<12x1536xf32>
    %18 = tpu.matmul %15, %17, %cst_16 {dimension_numbers = #tpu.dot_dimension_numbers<[1], [0], [0], [1], [0, 0, 1, 1], [], []>} : vector<12x48xbf16>, vector<48x1536xbf16>, vector<12x1536xf32> -> vector<12x1536xf32>
    %19 = arith.addf %12, %18 : vector<12x1536xf32>
    %c0_17 = arith.constant 0 : index
    %c3 = arith.constant 3 : index
    %c0_18 = arith.constant 0 : index
    %20 = vector.load %arg1[%c0_17, %c3, %c0_18] : memref<1x16x48xf32, #tpu.memory_space<vmem>>, vector<1x12x48xf32>
    %21 = vector.shape_cast %20 : vector<1x12x48xf32> to vector<12x48xf32>
    %22 = arith.truncf %21 : vector<12x48xf32> to vector<12x48xbf16>
    %c3_19 = arith.constant 3 : index
    %c0_20 = arith.constant 0 : index
    %c0_21 = arith.constant 0 : index
    %23 = vector.load %arg2[%c3_19, %c0_20, %c0_21] : memref<5x48x1536xbf16, #tpu.memory_space<vmem>>, vector<1x48x1536xbf16>
    %24 = vector.shape_cast %23 : vector<1x48x1536xbf16> to vector<48x1536xbf16>
    %cst_22 = arith.constant dense<0.000000e+00> : vector<12x1536xf32>
    %25 = tpu.matmul %22, %24, %cst_22 {dimension_numbers = #tpu.dot_dimension_numbers<[1], [0], [0], [1], [0, 0, 1, 1], [], []>} : vector<12x48xbf16>, vector<48x1536xbf16>, vector<12x1536xf32> -> vector<12x1536xf32>
    %26 = arith.addf %19, %25 : vector<12x1536xf32>
    %c0_23 = arith.constant 0 : index
    %c4 = arith.constant 4 : index
    %c0_24 = arith.constant 0 : index
    %27 = vector.load %arg1[%c0_23, %c4, %c0_24] : memref<1x16x48xf32, #tpu.memory_space<vmem>>, vector<1x12x48xf32>
    %28 = vector.shape_cast %27 : vector<1x12x48xf32> to vector<12x48xf32>
    %29 = arith.truncf %28 : vector<12x48xf32> to vector<12x48xbf16>
    %c4_25 = arith.constant 4 : index
    %c0_26 = arith.constant 0 : index
    %c0_27 = arith.constant 0 : index
    %30 = vector.load %arg2[%c4_25, %c0_26, %c0_27] : memref<5x48x1536xbf16, #tpu.memory_space<vmem>>, vector<1x48x1536xbf16>
    %31 = vector.shape_cast %30 : vector<1x48x1536xbf16> to vector<48x1536xbf16>
    %cst_28 = arith.constant dense<0.000000e+00> : vector<12x1536xf32>
    %32 = tpu.matmul %29, %31, %cst_28 {dimension_numbers = #tpu.dot_dimension_numbers<[1], [0], [0], [1], [0, 0, 1, 1], [], []>} : vector<12x48xbf16>, vector<48x1536xbf16>, vector<12x1536xf32> -> vector<12x1536xf32>
    %33 = arith.addf %26, %32 : vector<12x1536xf32>
    %c0_29 = arith.constant 0 : index
    %c0_30 = arith.constant 0 : index
    %34 = vector.load %arg3[%c0_29, %c0_30] : memref<1x1536xf32, #tpu.memory_space<vmem>>, vector<1x1536xf32>
    %35 = vector.broadcast %34 : vector<1x1536xf32> to vector<12x1536xf32>
    %36 = arith.mulf %33, %35 : vector<12x1536xf32>
    %c0_31 = arith.constant 0 : index
    %c0_32 = arith.constant 0 : index
    %37 = vector.load %arg4[%c0_31, %c0_32] : memref<1x1536xf32, #tpu.memory_space<vmem>>, vector<1x1536xf32>
    %38 = vector.broadcast %37 : vector<1x1536xf32> to vector<12x1536xf32>
    %39 = arith.addf %36, %38 : vector<12x1536xf32>
    %cst_33 = arith.constant 0.000000e+00 : f32
    %40 = vector.broadcast %cst_33 : f32 to vector<12x1536xf32>
    %41 = arith.maximumf %39, %40 : vector<12x1536xf32>
    %42 = vector.extract_strided_slice %41 {offsets = [0, 0], sizes = [12, 768], strides = [1, 1]} : vector<12x1536xf32> to vector<12x768xf32>
    %43 = vector.extract_strided_slice %41 {offsets = [0, 768], sizes = [12, 768], strides = [1, 1]} : vector<12x1536xf32> to vector<12x768xf32>
    %44 = arith.maximumf %42, %43 : vector<12x768xf32>
    %45 = tpu.iota {dimensions = array<i32: 0>} : vector<6x12xi32>
    %46 = tpu.iota {dimensions = array<i32: 1>} : vector<6x12xi32>
    %c2_i32 = arith.constant 2 : i32
    %47 = vector.broadcast %c2_i32 : i32 to vector<6x12xi32>
    %48 = arith.muli %47, %45 : vector<6x12xi32>
    %49 = arith.cmpi eq, %46, %48 : vector<6x12xi32>
    %50 = arith.extui %49 : vector<6x12xi1> to vector<6x12xi32>
    %51 = arith.sitofp %50 : vector<6x12xi32> to vector<6x12xf32>
    %c2_i32_34 = arith.constant 2 : i32
    %52 = vector.broadcast %c2_i32_34 : i32 to vector<6x12xi32>
    %53 = arith.muli %52, %45 : vector<6x12xi32>
    %c1_i32 = arith.constant 1 : i32
    %54 = vector.broadcast %c1_i32 : i32 to vector<6x12xi32>
    %55 = arith.addi %53, %54 : vector<6x12xi32>
    %56 = arith.cmpi eq, %46, %55 : vector<6x12xi32>
    %57 = arith.extui %56 : vector<6x12xi1> to vector<6x12xi32>
    %58 = arith.sitofp %57 : vector<6x12xi32> to vector<6x12xf32>
    %cst_35 = arith.constant dense<0.000000e+00> : vector<6x768xf32>
    %59 = tpu.matmul %51, %44, %cst_35 {dimension_numbers = #tpu.dot_dimension_numbers<[1], [0], [0], [1], [0, 0, 1, 1], [], []>} : vector<6x12xf32>, vector<12x768xf32>, vector<6x768xf32> -> vector<6x768xf32>
    %cst_36 = arith.constant dense<0.000000e+00> : vector<6x768xf32>
    %60 = tpu.matmul %58, %44, %cst_36 {dimension_numbers = #tpu.dot_dimension_numbers<[1], [0], [0], [1], [0, 0, 1, 1], [], []>} : vector<6x12xf32>, vector<12x768xf32>, vector<6x768xf32> -> vector<6x768xf32>
    %61 = arith.maximumf %59, %60 : vector<6x768xf32>
    %c0_37 = arith.constant 0 : index
    %c0_38 = arith.constant 0 : index
    %c0_39 = arith.constant 0 : index
    %62 = vector.load %arg5[%c0_37, %c0_38, %c0_39] : memref<1x6x768xf32, #tpu.memory_space<vmem>>, vector<1x6x768xf32>
    %63 = vector.shape_cast %62 : vector<1x6x768xf32> to vector<6x768xf32>
    %64 = vector.shape_cast %61 : vector<6x768xf32> to vector<1x6x768xf32>
    tpu.vector_store %arg5[%c0_37, %c0_38, %c0_39], %64 {strides = array<i32>} : memref<1x6x768xf32, #tpu.memory_space<vmem>>, vector<1x6x768xf32>,
    return
  }
  func.func @transform_0(%arg0: i32) -> (i32, i32, i32) {
    %c0_i32 = arith.constant 0 : i32
    %c0_i32_0 = arith.constant 0 : i32
    %c0_i32_1 = arith.constant 0 : i32
    return %arg0, %c0_i32, %c0_i32_0 : i32, i32, i32
  }
  func.func @transform_1(%arg0: i32) -> (i32, i32, i32) {
    %c0_i32 = arith.constant 0 : i32
    %c0_i32_0 = arith.constant 0 : i32
    %c0_i32_1 = arith.constant 0 : i32
    %c0_i32_2 = arith.constant 0 : i32
    return %c0_i32, %c0_i32_0, %c0_i32_1 : i32, i32, i32
  }
  func.func @transform_2(%arg0: i32) -> (i32, i32) {
    %c0_i32 = arith.constant 0 : i32
    %c0_i32_0 = arith.constant 0 : i32
    %c0_i32_1 = arith.constant 0 : i32
    return %c0_i32, %c0_i32_0 : i32, i32
  }
  func.func @transform_3(%arg0: i32) -> (i32, i32) {
    %c0_i32 = arith.constant 0 : i32
    %c0_i32_0 = arith.constant 0 : i32
    %c0_i32_1 = arith.constant 0 : i32
    return %c0_i32, %c0_i32_0 : i32, i32
  }
  func.func @transform_4(%arg0: i32) -> (i32, i32, i32) {
    %c0_i32 = arith.constant 0 : i32
    %c0_i32_0 = arith.constant 0 : i32
    %c0_i32_1 = arith.constant 0 : i32
    return %arg0, %c0_i32, %c0_i32_0 : i32, i32, i32
  }
}

module attributes {stable_mosaic.version = 11 : i64} {
  func.func @_conv_bn_relu_pool_kernel(%arg0: i32, %arg1: memref<1x6x768xf32, #tpu.memory_space<vmem>>, %arg2: memref<5x768x256xbf16, #tpu.memory_space<vmem>>, %arg3: memref<1x256xf32, #tpu.memory_space<vmem>>, %arg4: memref<1x256xf32, #tpu.memory_space<vmem>>, %arg5: memref<1x1x128xf32, #tpu.memory_space<vmem>>) attributes {dimension_semantics = [#tpu.dimension_semantics<parallel>], iteration_bounds = array<i64: 2>, scalar_prefetch = 0 : i64, scratch_operands = 0 : i64, tpu.core_type = #tpu.core_type<tc>, window_params = [{transform_indices = @transform_0, window_bounds = array<i64: 1, 6, 768>}, {pipeline_mode = #tpu.pipeline_mode<synchronous>, transform_indices = @transform_1, window_bounds = array<i64: 5, 768, 256>}, {pipeline_mode = #tpu.pipeline_mode<synchronous>, transform_indices = @transform_2, window_bounds = array<i64: 1, 256>}, {pipeline_mode = #tpu.pipeline_mode<synchronous>, transform_indices = @transform_3, window_bounds = array<i64: 1, 256>}, {transform_indices = @transform_4, window_bounds = array<i64: 1, 1, 128>}]} {
    %c0 = arith.constant 0 : index
    %c0_0 = arith.constant 0 : index
    %c0_1 = arith.constant 0 : index
    %0 = vector.load %arg1[%c0, %c0_0, %c0_1] : memref<1x6x768xf32, #tpu.memory_space<vmem>>, vector<1x2x768xf32>
    %1 = vector.shape_cast %0 : vector<1x2x768xf32> to vector<2x768xf32>
    %2 = arith.truncf %1 : vector<2x768xf32> to vector<2x768xbf16>
    %c0_2 = arith.constant 0 : index
    %c0_3 = arith.constant 0 : index
    %c0_4 = arith.constant 0 : index
    %3 = vector.load %arg2[%c0_2, %c0_3, %c0_4] : memref<5x768x256xbf16, #tpu.memory_space<vmem>>, vector<1x768x256xbf16>
    %4 = vector.shape_cast %3 : vector<1x768x256xbf16> to vector<768x256xbf16>
    %cst = arith.constant dense<0.000000e+00> : vector<2x256xf32>
    %5 = tpu.matmul %2, %4, %cst {dimension_numbers = #tpu.dot_dimension_numbers<[1], [0], [0], [1], [0, 0, 1, 1], [], []>} : vector<2x768xbf16>, vector<768x256xbf16>, vector<2x256xf32> -> vector<2x256xf32>
    %c0_5 = arith.constant 0 : index
    %c1 = arith.constant 1 : index
    %c0_6 = arith.constant 0 : index
    %6 = vector.load %arg1[%c0_5, %c1, %c0_6] : memref<1x6x768xf32, #tpu.memory_space<vmem>>, vector<1x2x768xf32>
    %7 = vector.shape_cast %6 : vector<1x2x768xf32> to vector<2x768xf32>
    %8 = arith.truncf %7 : vector<2x768xf32> to vector<2x768xbf16>
    %c1_7 = arith.constant 1 : index
    %c0_8 = arith.constant 0 : index
    %c0_9 = arith.constant 0 : index
    %9 = vector.load %arg2[%c1_7, %c0_8, %c0_9] : memref<5x768x256xbf16, #tpu.memory_space<vmem>>, vector<1x768x256xbf16>
    %10 = vector.shape_cast %9 : vector<1x768x256xbf16> to vector<768x256xbf16>
    %cst_10 = arith.constant dense<0.000000e+00> : vector<2x256xf32>
    %11 = tpu.matmul %8, %10, %cst_10 {dimension_numbers = #tpu.dot_dimension_numbers<[1], [0], [0], [1], [0, 0, 1, 1], [], []>} : vector<2x768xbf16>, vector<768x256xbf16>, vector<2x256xf32> -> vector<2x256xf32>
    %12 = arith.addf %5, %11 : vector<2x256xf32>
    %c0_11 = arith.constant 0 : index
    %c2 = arith.constant 2 : index
    %c0_12 = arith.constant 0 : index
    %13 = vector.load %arg1[%c0_11, %c2, %c0_12] : memref<1x6x768xf32, #tpu.memory_space<vmem>>, vector<1x2x768xf32>
    %14 = vector.shape_cast %13 : vector<1x2x768xf32> to vector<2x768xf32>
    %15 = arith.truncf %14 : vector<2x768xf32> to vector<2x768xbf16>
    %c2_13 = arith.constant 2 : index
    %c0_14 = arith.constant 0 : index
    %c0_15 = arith.constant 0 : index
    %16 = vector.load %arg2[%c2_13, %c0_14, %c0_15] : memref<5x768x256xbf16, #tpu.memory_space<vmem>>, vector<1x768x256xbf16>
    %17 = vector.shape_cast %16 : vector<1x768x256xbf16> to vector<768x256xbf16>
    %cst_16 = arith.constant dense<0.000000e+00> : vector<2x256xf32>
    %18 = tpu.matmul %15, %17, %cst_16 {dimension_numbers = #tpu.dot_dimension_numbers<[1], [0], [0], [1], [0, 0, 1, 1], [], []>} : vector<2x768xbf16>, vector<768x256xbf16>, vector<2x256xf32> -> vector<2x256xf32>
    %19 = arith.addf %12, %18 : vector<2x256xf32>
    %c0_17 = arith.constant 0 : index
    %c3 = arith.constant 3 : index
    %c0_18 = arith.constant 0 : index
    %20 = vector.load %arg1[%c0_17, %c3, %c0_18] : memref<1x6x768xf32, #tpu.memory_space<vmem>>, vector<1x2x768xf32>
    %21 = vector.shape_cast %20 : vector<1x2x768xf32> to vector<2x768xf32>
    %22 = arith.truncf %21 : vector<2x768xf32> to vector<2x768xbf16>
    %c3_19 = arith.constant 3 : index
    %c0_20 = arith.constant 0 : index
    %c0_21 = arith.constant 0 : index
    %23 = vector.load %arg2[%c3_19, %c0_20, %c0_21] : memref<5x768x256xbf16, #tpu.memory_space<vmem>>, vector<1x768x256xbf16>
    %24 = vector.shape_cast %23 : vector<1x768x256xbf16> to vector<768x256xbf16>
    %cst_22 = arith.constant dense<0.000000e+00> : vector<2x256xf32>
    %25 = tpu.matmul %22, %24, %cst_22 {dimension_numbers = #tpu.dot_dimension_numbers<[1], [0], [0], [1], [0, 0, 1, 1], [], []>} : vector<2x768xbf16>, vector<768x256xbf16>, vector<2x256xf32> -> vector<2x256xf32>
    %26 = arith.addf %19, %25 : vector<2x256xf32>
    %c0_23 = arith.constant 0 : index
    %c4 = arith.constant 4 : index
    %c0_24 = arith.constant 0 : index
    %27 = vector.load %arg1[%c0_23, %c4, %c0_24] : memref<1x6x768xf32, #tpu.memory_space<vmem>>, vector<1x2x768xf32>
    %28 = vector.shape_cast %27 : vector<1x2x768xf32> to vector<2x768xf32>
    %29 = arith.truncf %28 : vector<2x768xf32> to vector<2x768xbf16>
    %c4_25 = arith.constant 4 : index
    %c0_26 = arith.constant 0 : index
    %c0_27 = arith.constant 0 : index
    %30 = vector.load %arg2[%c4_25, %c0_26, %c0_27] : memref<5x768x256xbf16, #tpu.memory_space<vmem>>, vector<1x768x256xbf16>
    %31 = vector.shape_cast %30 : vector<1x768x256xbf16> to vector<768x256xbf16>
    %cst_28 = arith.constant dense<0.000000e+00> : vector<2x256xf32>
    %32 = tpu.matmul %29, %31, %cst_28 {dimension_numbers = #tpu.dot_dimension_numbers<[1], [0], [0], [1], [0, 0, 1, 1], [], []>} : vector<2x768xbf16>, vector<768x256xbf16>, vector<2x256xf32> -> vector<2x256xf32>
    %33 = arith.addf %26, %32 : vector<2x256xf32>
    %c0_29 = arith.constant 0 : index
    %c0_30 = arith.constant 0 : index
    %34 = vector.load %arg3[%c0_29, %c0_30] : memref<1x256xf32, #tpu.memory_space<vmem>>, vector<1x256xf32>
    %35 = vector.broadcast %34 : vector<1x256xf32> to vector<2x256xf32>
    %36 = arith.mulf %33, %35 : vector<2x256xf32>
    %c0_31 = arith.constant 0 : index
    %c0_32 = arith.constant 0 : index
    %37 = vector.load %arg4[%c0_31, %c0_32] : memref<1x256xf32, #tpu.memory_space<vmem>>, vector<1x256xf32>
    %38 = vector.broadcast %37 : vector<1x256xf32> to vector<2x256xf32>
    %39 = arith.addf %36, %38 : vector<2x256xf32>
    %cst_33 = arith.constant 0.000000e+00 : f32
    %40 = vector.broadcast %cst_33 : f32 to vector<2x256xf32>
    %41 = arith.maximumf %39, %40 : vector<2x256xf32>
    %42 = vector.extract_strided_slice %41 {offsets = [0, 0], sizes = [2, 128], strides = [1, 1]} : vector<2x256xf32> to vector<2x128xf32>
    %43 = vector.extract_strided_slice %41 {offsets = [0, 128], sizes = [2, 128], strides = [1, 1]} : vector<2x256xf32> to vector<2x128xf32>
    %44 = arith.maximumf %42, %43 : vector<2x128xf32>
    %45 = tpu.iota {dimensions = array<i32: 0>} : vector<1x2xi32>
    %46 = tpu.iota {dimensions = array<i32: 1>} : vector<1x2xi32>
    %c2_i32 = arith.constant 2 : i32
    %47 = vector.broadcast %c2_i32 : i32 to vector<1x2xi32>
    %48 = arith.muli %47, %45 : vector<1x2xi32>
    %49 = arith.cmpi eq, %46, %48 : vector<1x2xi32>
    %50 = arith.extui %49 : vector<1x2xi1> to vector<1x2xi32>
    %51 = arith.sitofp %50 : vector<1x2xi32> to vector<1x2xf32>
    %c2_i32_34 = arith.constant 2 : i32
    %52 = vector.broadcast %c2_i32_34 : i32 to vector<1x2xi32>
    %53 = arith.muli %52, %45 : vector<1x2xi32>
    %c1_i32 = arith.constant 1 : i32
    %54 = vector.broadcast %c1_i32 : i32 to vector<1x2xi32>
    %55 = arith.addi %53, %54 : vector<1x2xi32>
    %56 = arith.cmpi eq, %46, %55 : vector<1x2xi32>
    %57 = arith.extui %56 : vector<1x2xi1> to vector<1x2xi32>
    %58 = arith.sitofp %57 : vector<1x2xi32> to vector<1x2xf32>
    %cst_35 = arith.constant dense<0.000000e+00> : vector<1x128xf32>
    %59 = tpu.matmul %51, %44, %cst_35 {dimension_numbers = #tpu.dot_dimension_numbers<[1], [0], [0], [1], [0, 0, 1, 1], [], []>} : vector<1x2xf32>, vector<2x128xf32>, vector<1x128xf32> -> vector<1x128xf32>
    %cst_36 = arith.constant dense<0.000000e+00> : vector<1x128xf32>
    %60 = tpu.matmul %58, %44, %cst_36 {dimension_numbers = #tpu.dot_dimension_numbers<[1], [0], [0], [1], [0, 0, 1, 1], [], []>} : vector<1x2xf32>, vector<2x128xf32>, vector<1x128xf32> -> vector<1x128xf32>
    %61 = arith.maximumf %59, %60 : vector<1x128xf32>
    %c0_37 = arith.constant 0 : index
    %c0_38 = arith.constant 0 : index
    %c0_39 = arith.constant 0 : index
    %62 = vector.load %arg5[%c0_37, %c0_38, %c0_39] : memref<1x1x128xf32, #tpu.memory_space<vmem>>, vector<1x1x128xf32>
    %63 = vector.shape_cast %62 : vector<1x1x128xf32> to vector<1x128xf32>
    %64 = vector.shape_cast %61 : vector<1x128xf32> to vector<1x1x128xf32>
    tpu.vector_store %arg5[%c0_37, %c0_38, %c0_39], %64 {strides = array<i32>} : memref<1x1x128xf32, #tpu.memory_space<vmem>>, vector<1x1x128xf32>,
    return
  }
  func.func @transform_0(%arg0: i32) -> (i32, i32, i32) {
    %c0_i32 = arith.constant 0 : i32
    %c0_i32_0 = arith.constant 0 : i32
    %c0_i32_1 = arith.constant 0 : i32
    return %arg0, %c0_i32, %c0_i32_0 : i32, i32, i32
  }
  func.func @transform_1(%arg0: i32) -> (i32, i32, i32) {
    %c0_i32 = arith.constant 0 : i32
    %c0_i32_0 = arith.constant 0 : i32
    %c0_i32_1 = arith.constant 0 : i32
    %c0_i32_2 = arith.constant 0 : i32
    return %c0_i32, %c0_i32_0, %c0_i32_1 : i32, i32, i32
  }
  func.func @transform_2(%arg0: i32) -> (i32, i32) {
    %c0_i32 = arith.constant 0 : i32
    %c0_i32_0 = arith.constant 0 : i32
    %c0_i32_1 = arith.constant 0 : i32
    return %c0_i32, %c0_i32_0 : i32, i32
  }
  func.func @transform_3(%arg0: i32) -> (i32, i32) {
    %c0_i32 = arith.constant 0 : i32
    %c0_i32_0 = arith.constant 0 : i32
    %c0_i32_1 = arith.constant 0 : i32
    return %c0_i32, %c0_i32_0 : i32, i32
  }
  func.func @transform_4(%arg0: i32) -> (i32, i32, i32) {
    %c0_i32 = arith.constant 0 : i32
    %c0_i32_0 = arith.constant 0 : i32
    %c0_i32_1 = arith.constant 0 : i32
    return %arg0, %c0_i32, %c0_i32_0 : i32, i32, i32
  }
}

module attributes {stable_mosaic.version = 11 : i64} {
  func.func @_dense_kernel(%arg0: memref<2x128xf32, #tpu.memory_space<vmem>>, %arg1: memref<128x256xbf16, #tpu.memory_space<vmem>>, %arg2: memref<1x256xf32, #tpu.memory_space<vmem>>, %arg3: memref<256x32xbf16, #tpu.memory_space<vmem>>, %arg4: memref<1x32xf32, #tpu.memory_space<vmem>>, %arg5: memref<2x32xf32, #tpu.memory_space<vmem>>) attributes {dimension_semantics = [], scalar_prefetch = 0 : i64, scratch_operands = 0 : i64, tpu.core_type = #tpu.core_type<tc>} {
    %c0 = arith.constant 0 : index
    %c0_0 = arith.constant 0 : index
    %0 = vector.load %arg0[%c0, %c0_0] : memref<2x128xf32, #tpu.memory_space<vmem>>, vector<2x128xf32>
    %1 = arith.truncf %0 : vector<2x128xf32> to vector<2x128xbf16>
    %c0_1 = arith.constant 0 : index
    %c0_2 = arith.constant 0 : index
    %2 = vector.load %arg1[%c0_1, %c0_2] : memref<128x256xbf16, #tpu.memory_space<vmem>>, vector<128x256xbf16>
    %cst = arith.constant dense<0.000000e+00> : vector<2x256xf32>
    %3 = tpu.matmul %1, %2, %cst {dimension_numbers = #tpu.dot_dimension_numbers<[1], [0], [0], [1], [0, 0, 1, 1], [], []>} : vector<2x128xbf16>, vector<128x256xbf16>, vector<2x256xf32> -> vector<2x256xf32>
    %c0_3 = arith.constant 0 : index
    %c0_4 = arith.constant 0 : index
    %4 = vector.load %arg2[%c0_3, %c0_4] : memref<1x256xf32, #tpu.memory_space<vmem>>, vector<1x256xf32>
    %5 = vector.broadcast %4 : vector<1x256xf32> to vector<2x256xf32>
    %6 = arith.addf %3, %5 : vector<2x256xf32>
    %cst_5 = arith.constant 0.000000e+00 : f32
    %7 = vector.broadcast %cst_5 : f32 to vector<2x256xf32>
    %8 = arith.maximumf %6, %7 : vector<2x256xf32>
    %9 = arith.truncf %8 : vector<2x256xf32> to vector<2x256xbf16>
    %c0_6 = arith.constant 0 : index
    %c0_7 = arith.constant 0 : index
    %10 = vector.load %arg3[%c0_6, %c0_7] : memref<256x32xbf16, #tpu.memory_space<vmem>>, vector<256x32xbf16>
    %cst_8 = arith.constant dense<0.000000e+00> : vector<2x32xf32>
    %11 = tpu.matmul %9, %10, %cst_8 {dimension_numbers = #tpu.dot_dimension_numbers<[1], [0], [0], [1], [0, 0, 1, 1], [], []>} : vector<2x256xbf16>, vector<256x32xbf16>, vector<2x32xf32> -> vector<2x32xf32>
    %c0_9 = arith.constant 0 : index
    %c0_10 = arith.constant 0 : index
    %12 = vector.load %arg4[%c0_9, %c0_10] : memref<1x32xf32, #tpu.memory_space<vmem>>, vector<1x32xf32>
    %13 = vector.broadcast %12 : vector<1x32xf32> to vector<2x32xf32>
    %14 = arith.addf %11, %13 : vector<2x32xf32>
    %cst_11 = arith.constant 0.000000e+00 : f32
    %15 = vector.broadcast %cst_11 : f32 to vector<2x32xf32>
    %16 = arith.maximumf %14, %15 : vector<2x32xf32>
    %c0_12 = arith.constant 0 : index
    %c0_13 = arith.constant 0 : index
    %17 = vector.load %arg5[%c0_12, %c0_13] : memref<2x32xf32, #tpu.memory_space<vmem>>, vector<2x32xf32>
    tpu.vector_store %arg5[%c0_12, %c0_13], %16 {strides = array<i32>} : memref<2x32xf32, #tpu.memory_space<vmem>>, vector<2x32xf32>,
    return
  }
}

</mosaic_0001>

<bundles_post_ra>
// kernel: net_conv_dense_forward.5
= control target key start
LH: loop header
LB: loop body
LE: loop exit
PB: predicated region body
PF: predicated region fallthrough
CT: control target
= control target key end

     0   :  { %v490_v2 = vmov 0   ;;  %s639_s0 = inlined_call_operand.vmem [shape: f32[2,128], index: 0, kind: input, shape index: {}]   ;;  %s640_s1 = inlined_call_operand.vmem [shape: bf16[128,256], index: 1, kind: input, shape index: {}]   ;;  %s641_s2 = inlined_call_operand.vmem [shape: f32[1,256], index: 2, kind: input, shape index: {}]   ;;  %s642_s3 = inlined_call_operand.vmem [shape: bf16[256,32], index: 3, kind: input, shape index: {}]   ;;  %s643_s4 = inlined_call_operand.vmem [shape: f32[1,32], index: 4, kind: input, shape index: {}]   ;;  %s644_s5 = inlined_call_operand.hbm [shape: f32[2,32], index: 5, kind: output, shape index: {}]  }
   0x1   :  { %v426_v0 = vld [vmem:[%s640_s1 + $0x4] ss:$8 sps:$4 sm:$0xff]   ;;  %v428_v1 = vld [vmem:[%s640_s1] ss:$8 sps:$4 sm:$0xff]   ;;  %164 = vmatprep.mubr.bf16.mxu0 %v490_v2  ;;  %v429_v3 = vld [vmem:[%s640_s1 + $0x14] ss:$8 sps:$4 sm:$0xff]  }
   0x2   :  { %132 = vmatprep.subr.bf16.mxu0 %v426_v0  ;;  %v431_v4 = vld [vmem:[%s640_s1 + $0x10] ss:$8 sps:$4 sm:$0xff]   ;;  %v432_v5 = vld [vmem:[%s640_s1 + $0x24] ss:$8 sps:$4 sm:$0xff]   ;;  %v434_v6 = vld [vmem:[%s640_s1 + $0x20] ss:$8 sps:$4 sm:$0xff]  }
   0x3   :  { %133 = vmatpush1.bf16.msra.mxu0 %v428_v1  ;;  %v435_v7 = vld [vmem:[%s640_s1 + $0x34] ss:$8 sps:$4 sm:$0xff]   ;;  %v437_v8 = vld [vmem:[%s640_s1 + $0x30] ss:$8 sps:$4 sm:$0xff]   ;;  %v438_v9 = vld [vmem:[%s640_s1 + $0x44] ss:$8 sps:$4 sm:$0xff]  }
   0x4   :  { %134 = vmatprep.subr.bf16.mxu0 %v429_v3  ;;  %v450_v10 = vld [vmem:[%s642_s3 + $0x40] sm:$0xff]   ;;  %v452_v13 = vld [vmem:[%s642_s3 + $0x48] sm:$0xff]   ;;  %v454_v15 = vld [vmem:[%s642_s3 + $0x50] sm:$0xff]  }
   0x5   :  { %v451_v11 = vld [vmem:[%s642_s3] sm:$0xff]   ;;  %402 = vmatprep.subr.bf16.mxu1 %v450_v10  ;;  %v453_v14 = vld [vmem:[%s642_s3 + $0x8] sm:$0xff]   ;;  %v441_v16 = vld [vmem:[%s640_s1 + $0x54] ss:$8 sps:$4 sm:$0xff]  }
   0x6   :  { %v440_v12 = vld [vmem:[%s640_s1 + $0x40] ss:$8 sps:$4 sm:$0xff]   ;;  %403 = vmatpush3.bf16.msra.mxu1 %v451_v11  ;;  %v443_v17 = vld [vmem:[%s640_s1 + $0x50] ss:$8 sps:$4 sm:$0xff]   ;;  %v444_v20 = vld [vmem:[%s640_s1 + $0x64] ss:$8 sps:$4 sm:$0xff]  }
   0x7   :  { %135 = vmatpush1.bf16.msra.mxu0 %v431_v4  ;;  %404 = vmatprep.subr.bf16.mxu1 %v452_v13  ;;  %v455_v18 = vld [vmem:[%s642_s3 + $0x10] sm:$0xff]   ;;  %v456_v19 = vld [vmem:[%s642_s3 + $0x58] sm:$0xff]   ;;  %v446_v21 = vld [vmem:[%s640_s1 + $0x60] ss:$8 sps:$4 sm:$0xff]  }
   0x8   :  { %136 = vmatprep.subr.bf16.mxu0 %v432_v5  ;;  %v447_v22 = vld [vmem:[%s640_s1 + $0x74] ss:$8 sps:$4 sm:$0xff]   ;;  %v458_v24 = vld [vmem:[%s642_s3 + $0x60] sm:$0xff]  }
   0x9   :  { %v457_v23 = vld [vmem:[%s642_s3 + $0x18] sm:$0xff]   ;;  %v459_v25 = vld [vmem:[%s642_s3 + $0x20] sm:$0xff]  }
   0xa   :  { %405 = vmatpush3.bf16.msra.mxu1 %v453_v14 }
   0xb   :  { %137 = vmatpush1.bf16.msra.mxu0 %v434_v6  ;;  %406 = vmatprep.subr.bf16.mxu1 %v454_v15 }
   0xc   :  { %138 = vmatprep.subr.bf16.mxu0 %v435_v7 }
   0xe   :  { %407 = vmatpush3.bf16.msra.mxu1 %v455_v18 }
   0xf   :  { %139 = vmatpush1.bf16.msra.mxu0 %v437_v8  ;;  %408 = vmatprep.subr.bf16.mxu1 %v456_v19 }
  0x10   :  { %140 = vmatprep.subr.bf16.mxu0 %v438_v9 }
  0x12   :  { %409 = vmatpush3.bf16.msra.mxu1 %v457_v23 }
  0x13   :  { %141 = vmatpush1.bf16.msra.mxu0 %v440_v12 }
  0x14   :  { %142 = vmatprep.subr.bf16.mxu0 %v441_v16 }
  0x17   :  { %143 = vmatpush1.bf16.msra.mxu0 %v443_v17 }
  0x18   :  { %144 = vmatprep.subr.bf16.mxu0 %v444_v20 }
  0x19   :  { %10 = vsyncpa [#allocation3], 0  ;;  %v449_v26 = vld [vmem:[%s640_s1 + $0x70] ss:$8 sps:$4 sm:$0xff]   ;;  %v22_v27 = vld [vmem:[%s639_s0] sm:$0x3]  ;;  %410 = vmatprep.subr.bf16.mxu1 %v458_v24  ;;  %v42_v35 = vlaneseq }
  0x1a   :  { %v460_v28 = vld [vmem:[%s642_s3 + $0x68] sm:$0xff]   ;;  %v23_v29 = vpack.c.bf16 %v22_v27, %v22_v27  ;;  %411 = vmatpush3.bf16.msra.mxu1 %v459_v25  ;;  %v462_v31 = vld [vmem:[%s642_s3 + $0x70] sm:$0xff]   ;;  %v464_v33 = vld [vmem:[%s642_s3 + $0x78] sm:$0xff]   ;;  %vm353_vm0 = vcmask 254976  }
  0x1b   :  { %145 = vmatpush1.bf16.msra.mxu0 %v446_v21  ;;  %v461_v30 = vld [vmem:[%s642_s3 + $0x28] sm:$0xff]   ;;  %412 = vmatprep.subr.bf16.mxu1 %v460_v28  ;;  %v463_v32 = vld [vmem:[%s642_s3 + $0x30] sm:$0xff]   ;;  %v465_v34 = vld [vmem:[%s642_s3 + $0x38] sm:$0xff]   ;;  %v43_v36 = vshrl.u32 %v42_v35, 7 }
  0x1c   :  { %146 = vmatprep.subr.bf16.mxu0 %v447_v22  ;;  %v40_v38 = vld [vmem:[%s641_s2] sm:$0x3]  ;;  %s491_s2 = smov [#allocation2]  }
  0x1d   :  { %v44_v37 = vsub.s32 0, %v43_v36  ;;  %v48_v39 = vsub.s32 1, %v43_v36  ;;  %v385_v53 = vld [vmem:[%s643_s4] ss:$0 sm:$0xff]  ;;  %s361_s10 = sshll.u32 %s491_s2, 4  ;;  %s362_s10 = int_to_ptr.vmem [resolvable:$true] %s361_s10 }
  0x1e   :  { %413 = vmatpush3.bf16.msra.mxu1 %v461_v30  ;;  %s466_s11 = scalar_lea.vmem %s362_s10, 32  ;;  %p471_p1 = scmp.lt.s32.totalorder %s362_s10, %s362_s10 }
  0x1f   :  { %147 = vmatpush1.bf16.msra.mxu0 %v449_v26  ;;  %414 = vmatprep.subr.bf16.mxu1 %v462_v31  ;;  %v45_v40 = vrot.slane %v40_v38, %v44_v37  ;;  %v49_v41 = vrot.slane %v40_v38, %v48_v39  ;;  %p467_p0 = scmp.ne.s32.totalorder %s362_s10, %s466_s11  ;;  %p472_p2 = scmp.lt.s32.totalorder %s466_s11, %s466_s11 }
  0x21   :  { %p473_p3 = por %p472_p2, %p471_p1 }
  0x22   :  { %165 = vmatmul.mubr.bf16.vlgmr.msra.gmra.mrb[0].mxu0 %v23_v29  ;;  %415 = vmatpush3.bf16.msra.mxu1 %v463_v32 }
  0x23   :  { %416 = vmatprep.subr.bf16.mxu1 %v464_v33  ;;  %p474_p4 = pnand %p473_p3, %p467_p0 }
  0x26   :  { %417 = vmatpush3.bf16.msra.mxu1 %v465_v34 }
  0xf5   :  { %v166_v42 = vpop.f32.mrb[0].mxu0 }
  0xf6   :  { %v167_v43 = vadd.f32 %v166_v42, %v45_v40  ;;  %v168_v44 = vpop.f32.mrb[1].mxu0 }
  0xf7   :  { %v169_v45 = vadd.f32 %v168_v44, %v49_v41  ;;  %v170_v46 = vpop.f32.mrb[2].mxu0 }
  0xf8   :  { %v173_v47 = vmax.f32 %v167_v43, 0.0  ;;  %v171_v48 = vpop.f32.mrb[3].mxu0 }
  0xf9   :  { %v174_v49 = vmax.f32 %v169_v45, 0.0 }
  0xfa   :  { %v175_v51 = vpack.c.bf16 %v173_v47, %v173_v47 }
  0xfb   :  { %v176_v50 = vpack.c.bf16 %v174_v49, %v174_v49 }
  0xfd   :  { %344 = vmatprep.mubr.bf16.mxu1 %v176_v50 }
  0xfe   :  { %345 = vmatmul.mubr.bf16.vlgmr.msra.gmra.mrb[0].mxu1 %v175_v51 }
 0x1d1   :  { %v418_v52 = vpop.f32.mrb[0].mxu1 }
 0x1d2   :  { %v419_v54 = vpop.f32.mrb[1].mxu1 }
 0x1d3   :  { %v420_v55 = vadd.f32 %v419_v54, %v418_v52  ;;  %v421_v56 = vpop.f32.mrb[2].mxu1 }
 0x1d4   :  { %v422_v57 = vpop.f32.mrb[3].mxu1 }
 0x1d5   :  { %v347_v58 = vadd.f32 %v420_v55, %v385_v53 }
 0x1d7   :  { %v352_v59 = vmax.f32 %v347_v58, 0.0 }
 0x1d9   :  { %354 = vst.msk [vmem:[#allocation2] sm:$0x3] %vm353_vm0, %v352_v59 }
 0x1da   :  { %477 = shalt.err (!%p474_p4)
}
 0x1db   :  { %s478_s13 = scalar_lea.hbm %s644_s5, 32 }
 0x1dc   :  { %p479_p5 = scmp.ne.s32.totalorder %s644_s5, %s478_s13  ;;  %p482_p6 = scmp.lt.u32.totalorder %s478_s13, %s644_s5 }
 0x1de   :  { %p484_p7 = pnand %p482_p6, %p479_p5 }
 0x1e0   :  { %487 = shalt.err (!%p484_p7)
}
 0x1e1   :  { %364 = dma.vmem_to_hbm [thread:$0]  %s362_s10, 32, %s644_s5, [#allocation3]  }
 0x1e2   :  { %488 = dma.done.wait [#allocation3], 32  }
 0x1e3   :  { %489 = vsyncadd [#allocation3], 4294967264 }
 0x1e4   :  { %368 = vsyncpa [#allocation3], 1 }

// kernel: net_conv_dense_forward.3
= control target key start
LH: loop header
LB: loop body
LE: loop exit
PB: predicated region body
PF: predicated region fallthrough
CT: control target
= control target key end

     0   :  { %9 = vsyncpa [#allocation3], 0  ;;  %s4676_s0 = inlined_call_operand.vmem [shape: f32[2,16,48], index: 0, kind: input, shape index: {}]   ;;  %s4677_s1 = inlined_call_operand.hbm [shape: bf16[5,48,1536], index: 1, kind: input, shape index: {}]   ;;  %s4678_s2 = inlined_call_operand.hbm [shape: f32[1,1536], index: 2, kind: input, shape index: {}]   ;;  %s4679_s3 = inlined_call_operand.hbm [shape: f32[1,1536], index: 3, kind: input, shape index: {}]   ;;  %s4680_s4 = inlined_call_operand.vmem [shape: f32[2,6,768], index: 4, kind: output, shape index: {}]  }
   0x1   :  { %10 = vsyncpa [#allocation5], 0  ;;  %s4317_s15 = smov 0  }
   0x2 LB: > { %s4284_s16 = smov [#allocation4]   ;;  %s4323_s18 = sadd.s32 4294967295, %s4282_s15   ;;  %s4282_s15 = sphi %s4317_s15, %s16_s15  }
   0x3   : > { %s162_s17 = sshll.u32 %s4284_s16, 4  ;;  %p3492_p0 = scmp.ge.s32.totalorder %s4282_s15, 1  ;;  %s163_s17 = int_to_ptr.vmem [resolvable:$true] %s162_s17 }
   0x4   : > { %p136_p1 = scmp.lt.s32.totalorder %s4282_s15, 3  ;;  %p4681_p2 = scmp.eq.s32.totalorder %s4323_s18, 0 }
   0x5   : > { %s4285_s20 = smov [#allocation2]   ;;  %s4286_s23 = smov [#allocation6]  }
   0x6   : > { %p4328_p3 = pnand %p3492_p0, %p136_p1  ;;  %s148_s21 = sshll.u32 %s4285_s20, 4  ;;  %s4340_s21 = int_to_ptr.vmem [resolvable:$true] %s148_s21 }
   0x7   : > { %s173_s24 = sshll.u32 %s4286_s23, 4  ;;  %s4184_s27 = scalar_lea.hbm %s4678_s2, 192  ;;  %s4342_s24 = int_to_ptr.vmem [resolvable:$true] %s173_s24 }
   0x8   : > { %s4683_s19 = scalar_select %p4328_p3, 1, 0 }
   0x9   : > { %p3882_p4 = pneg %p4328_p3  ;;  %p4185_p6 = scmp.ne.s32.totalorder %s4678_s2, %s4184_s27 }
   0xa   : > { %p4191_p10 = scmp.lt.u32.totalorder %s4184_s27, %s4678_s2 }
   0xb   : > { %p4336_p5 = pnand %p4681_p2, %p3882_p4 }
   0xd   : > { %p4352_p7 = pneg %p4336_p5 }
   0xf   : > { %p4187_p8 = pnand %p4352_p7, %p4185_p6 }
  0x11   : > { %p4188_p9 = pneg %p4187_p8 }
  0x13   : > { %p4193_p11 = pnand %p4191_p10, %p4188_p9 }
  0x15   : > { %4196 = shalt.err (!%p4193_p11)
}
  0x16   : > { %s4197_s7 = scalar_lea.vmem %s163_s17, 192  ;;  %p4205_p1 = scmp.lt.s32.totalorder %s163_s17, %s163_s17 }
  0x17   : > { %p4198_p12 = scmp.ne.s32.totalorder %s163_s17, %s4197_s7  ;;  %p4206_p4 = scmp.lt.s32.totalorder %s4197_s7, %s4197_s7 }
  0x19   : > { %p4200_p13 = pnand %p4198_p12, %p4352_p7  ;;  %p4207_p2 = por %p4206_p4, %p4205_p1 }
  0x1b   : > { %p4201_p0 = pneg %p4200_p13 }
  0x1d   : > { %p4208_p3 = pnand %p4207_p2, %p4201_p0 }
  0x1f   : > { %4211 = shalt.err (!%p4208_p3)
}
  0x20   : > { %3888 = dma.hbm_to_vmem [thread:$0]  (!%p4336_p5), %s4678_s2, 192, %s163_s17, [#allocation5]  }
  0x21   : > { %s4212_s12 = scalar_lea.hbm %s4677_s1, 23040 }
  0x22   : > { %p4213_p6 = scmp.ne.s32.totalorder %s4677_s1, %s4212_s12  ;;  %p4219_p2 = scmp.lt.u32.totalorder %s4212_s12, %s4677_s1 }
  0x24   : > { %p4215_p8 = pnand %p4213_p6, %p4352_p7 }
  0x26   : > { %p4216_p9 = pneg %p4215_p8 }
  0x28   : > { %p4221_p3 = pnand %p4219_p2, %p4216_p9 }
  0x2a   : > { %4224 = shalt.err (!%p4221_p3)
}
  0x2b   : > { %s4225_s17 = scalar_lea.vmem %s4340_s21, 23040  ;;  %p4233_p13 = scmp.lt.s32.totalorder %s4340_s21, %s4340_s21 }
  0x2c   : > { %p4226_p10 = scmp.ne.s32.totalorder %s4340_s21, %s4225_s17  ;;  %p4234_p0 = scmp.lt.s32.totalorder %s4225_s17, %s4225_s17 }
  0x2e   : > { %p4228_p11 = pnand %p4226_p10, %p4352_p7  ;;  %p4235_p1 = por %p4234_p0, %p4233_p13 }
  0x30   : > { %p4229_p12 = pneg %p4228_p11 }
  0x32   : > { %p4236_p4 = pnand %p4235_p1, %p4229_p12 }
  0x34   : > { %4239 = shalt.err (!%p4236_p4)
}
  0x35   : > { %s4287_s23 = smov 768   ;;  %s4288_s25 = smov 48  }
  0x36   : > { %3885 = dma.hbm_to_vmem [thread:$0]  (!%p4336_p5), %s4677_s1, 23040, %s4340_s21, [#allocation3], %s4287_s23, %s4287_s23, %s4288_s25  }
  0x37   : > { %s4240_s5 = scalar_lea.hbm %s4679_s3, 192 }
  0x38   : > { %p4241_p6 = scmp.ne.s32.totalorder %s4679_s3, %s4240_s5  ;;  %p4247_p2 = scmp.lt.u32.totalorder %s4240_s5, %s4679_s3 }
  0x3a   : > { %p4243_p8 = pnand %p4241_p6, %p4352_p7 }
  0x3c   : > { %p4244_p9 = pneg %p4243_p8 }
  0x3e   : > { %p4249_p3 = pnand %p4247_p2, %p4244_p9 }
  0x40   : > { %4252 = shalt.err (!%p4249_p3)
}
  0x41   : > { %s4253_s21 = scalar_lea.vmem %s4342_s24, 192  ;;  %p4261_p13 = scmp.lt.s32.totalorder %s4342_s24, %s4342_s24 }
  0x42   : > { %p4254_p10 = scmp.ne.s32.totalorder %s4342_s24, %s4253_s21  ;;  %p4262_p0 = scmp.lt.s32.totalorder %s4253_s21, %s4253_s21 }
  0x44   : > { %p4256_p11 = pnand %p4254_p10, %p4352_p7  ;;  %p4263_p1 = por %p4262_p0, %p4261_p13 }
  0x46   : > { %p4257_p12 = pneg %p4256_p11 }
  0x48   : > { %p4264_p4 = pnand %p4263_p1, %p4257_p12 }
  0x4a   : > { %4267 = shalt.err (!%p4264_p4)
}
  0x4b   : > { %3891 = dma.hbm_to_vmem [thread:$0]  (!%p4336_p5), %s4679_s3, 192, %s4342_s24, [#allocation5]  }
  0x4c   : > { %p4686_p6 = scmp.ne.s32.totalorder %s4683_s19, 0 }
  0x4d   : > { %p4687_p8 = scmp.eq.s32.totalorder (!%p4686_p6), %s4323_s18, 0 }
  0x4e   : > { %194 = sbr.rel (%p4686_p6) target bundleno = 725 (0x2d5), region = 36 }
  0x55   : > { %4273 = dma.done.wait (%p4687_p8), [#allocation3], 23040   ;;  %p4688_p7 = pmov %p4687_p8 }
  0x57   : > { %4275 = vsyncadd (%p4688_p7), [#allocation3], 4294944256  ;;  %p4689_p9 = pmov %p4688_p7 }
  0x58   : > { %p4690_p2 = pmov %p4688_p7 }
  0x59   : > { %4277 = dma.done.wait (%p4689_p9), [#allocation5], 384  }
  0x5a   : > { %4279 = vsyncadd (%p4690_p2), [#allocation5], 4294966912  ;;  %v4289_v0 = vmov 0   ;;  %p228_p5 = scmp.lt.s32.totalorder %s4323_s18, 1  ;;  %v3914_v1 = vld [vmem:[#allocation2 + $0x124] ss:$48 sps:$4 sm:$0xff]  }
  0x5b   : > { %534 = vmatprep.mubr.bf16.mxu0 %v4289_v0  ;;  %577 = vmatprep.mubr.bf16.mxu1 %v4289_v0  ;;  %v3916_v2 = vld [vmem:[#allocation2 + $0x12c] ss:$48 sps:$4 sm:$0xff]   ;;  %v3918_v3 = vld [vmem:[#allocation2 + $0x120] ss:$48 sps:$4 sm:$0xff]   ;;  %v3919_v4 = vld [vmem:[#allocation2 + $0x128] ss:$48 sps:$4 sm:$0xff]  }
  0x5c   : > { %s4696_s18 = smov (!%p228_p5, %s4323_s18), 1  ;;  %502 = vmatprep.subr.bf16.mxu0 %v3914_v1  ;;  %545 = vmatprep.subr.bf16.mxu1 %v3916_v2  ;;  %v3920_v5 = vld [vmem:[#allocation2 + $0x184] ss:$48 sps:$4 sm:$0xff]   ;;  %v3922_v6 = vld [vmem:[#allocation2 + $0x18c] ss:$48 sps:$4 sm:$0xff]   ;;  %vm498_vm0 = vcmask 392192  }
  0x5d   : > { %503 = vmatpush1.bf16.msra.mxu0 %v3918_v3  ;;  %546 = vmatpush1.bf16.msra.mxu1 %v3919_v4  ;;  %v3924_v7 = vld [vmem:[#allocation2 + $0x180] ss:$48 sps:$4 sm:$0xff]   ;;  %s3736_s19 = sshll.u32 %s4696_s18, 4  ;;  %v3925_v8 = vld [vmem:[#allocation2 + $0x188] ss:$48 sps:$4 sm:$0xff]   ;;  %vm2944_vm1 = vcmask 1043456  }
  0x5e   : > { %504 = vmatprep.subr.bf16.mxu0 %v3920_v5  ;;  %547 = vmatprep.subr.bf16.mxu1 %v3922_v6  ;;  %v3926_v9 = vld [vmem:[#allocation2 + $0x1e4] ss:$48 sps:$4 sm:$0xff]   ;;  %v3928_v10 = vld [vmem:[#allocation2 + $0x1ec] ss:$48 sps:$4 sm:$0xff]   ;;  %v3930_v11 = vld [vmem:[#allocation2 + $0x1e0] ss:$48 sps:$4 sm:$0xff]   ;;  %s4434_s30 = scalar_lea.vmem %s4676_s0, %s3736_s19 }
  0x5f   : > { %v3931_v12 = vld [vmem:[#allocation2 + $0x1e8] ss:$48 sps:$4 sm:$0xff]   ;;  %v3934_v13 = vld [vmem:[#allocation2 + $0x134] ss:$48 sps:$4 sm:$0xff]   ;;  %v3937_v14 = vld [vmem:[#allocation2 + $0x13c] ss:$48 sps:$4 sm:$0xff]  }
  0x60   : > { %v278_v15 = vld [vmem:[%s4434_s30 + $0x1] sm:$0xff]  ;;  %v279_v16 = vld [vmem:[%s4434_s30 + $0x9] sm:$0xf]  ;;  %vm4291_vm3 = vmmov 1   ;;  %vm2940_vm5 = vcmask 97280   ;;  %s3869_s12 = smul.u32 48, %s4696_s18 }
  0x61   : > { %505 = vmatpush1.bf16.msra.mxu0 %v3924_v7  ;;  %548 = vmatpush1.bf16.msra.mxu1 %v3925_v8  ;;  %v3932_v17 = vld [vmem:[#allocation2 + $0x130] ss:$48 sps:$4 sm:$0xff]   ;;  %v3935_v18 = vld [vmem:[#allocation2 + $0x138] ss:$48 sps:$4 sm:$0xff]   ;;  %v4438_v19 = vpack.c.bf16 %v279_v16, %v278_v15  ;;  %v3940_v20 = vld [vmem:[#allocation2 + $0x194] ss:$48 sps:$4 sm:$0xff]  }
  0x62   : > { %506 = vmatprep.subr.bf16.mxu0 %v3926_v9  ;;  %549 = vmatprep.subr.bf16.mxu1 %v3928_v10  ;;  %v3943_v21 = vld [vmem:[#allocation2 + $0x19c] ss:$48 sps:$4 sm:$0xff]   ;;  %v3938_v22 = vld [vmem:[#allocation2 + $0x190] ss:$48 sps:$4 sm:$0xff]   ;;  %v3941_v23 = vld [vmem:[#allocation2 + $0x198] ss:$48 sps:$4 sm:$0xff]   ;;  %s237_s16 = scalar_lea.vmem %s4680_s4, %s3869_s12 }
  0x63   : > { %v3946_v24 = vld [vmem:[#allocation2 + $0x1f4] ss:$48 sps:$4 sm:$0xff]   ;;  %v3949_v25 = vld [vmem:[#allocation2 + $0x1fc] ss:$48 sps:$4 sm:$0xff]   ;;  %v3944_v26 = vld [vmem:[#allocation2 + $0x1f0] ss:$48 sps:$4 sm:$0xff]  }
  0x64   : > { %v3947_v27 = vld [vmem:[#allocation2 + $0x1f8] ss:$48 sps:$4 sm:$0xff]   ;;  %v3952_v28 = vld [vmem:[#allocation2 + $0x144] ss:$48 sps:$4 sm:$0xff]   ;;  %v3955_v29 = vld [vmem:[#allocation2 + $0x14c] ss:$48 sps:$4 sm:$0xff]  }
  0x65   : > { %507 = vmatpush1.bf16.msra.mxu0 %v3930_v11  ;;  %550 = vmatpush1.bf16.msra.mxu1 %v3931_v12  ;;  %v3950_v30 = vld [vmem:[#allocation2 + $0x140] ss:$48 sps:$4 sm:$0xff]   ;;  %v3953_v31 = vld [vmem:[#allocation2 + $0x148] ss:$48 sps:$4 sm:$0xff]   ;;  %v3958_v32 = vld [vmem:[#allocation2 + $0x1a4] ss:$48 sps:$4 sm:$0xff]  }
  0x66   : > { %588 = vmatprep.subr.bf16.mxu0 %v3934_v13  ;;  %631 = vmatprep.subr.bf16.mxu1 %v3937_v14  ;;  %v3961_v33 = vld [vmem:[#allocation2 + $0x1ac] ss:$48 sps:$4 sm:$0xff]   ;;  %v3956_v34 = vld [vmem:[#allocation2 + $0x1a0] ss:$48 sps:$4 sm:$0xff]   ;;  %v3959_v35 = vld [vmem:[#allocation2 + $0x1a8] ss:$48 sps:$4 sm:$0xff]  }
  0x67   : > { %v3964_v36 = vld [vmem:[#allocation2 + $0x204] ss:$48 sps:$4 sm:$0xff]   ;;  %v3967_v37 = vld [vmem:[#allocation2 + $0x20c] ss:$48 sps:$4 sm:$0xff]   ;;  %v3962_v38 = vld [vmem:[#allocation2 + $0x200] ss:$48 sps:$4 sm:$0xff]  }
  0x68   : > { %3540 = vmatmul.mubr.msk.bf16.vlgmr.msra.gmra.mrb[0].mxu0 %vm498_vm0, %v4438_v19  ;;  %3541 = vmatmul.mubr.msk.bf16.vlgmr.msra.gmra.mrb[0].mxu1 %vm498_vm0, %v4438_v19  ;;  %v3965_v39 = vld [vmem:[#allocation2 + $0x208] ss:$48 sps:$4 sm:$0xff]   ;;  %v3970_v40 = vld [vmem:[#allocation2 + $0x4] ss:$48 sps:$4 sm:$0xff]   ;;  %v3973_v41 = vld [vmem:[#allocation2 + $0xc] ss:$48 sps:$4 sm:$0xff]  }
  0x69   : > { %589 = vmatpush1.bf16.msra.mxu0 %v3932_v17  ;;  %632 = vmatpush1.bf16.msra.mxu1 %v3935_v18  ;;  %v3968_v42 = vld [vmem:[#allocation2] ss:$48 sps:$4 sm:$0xff]   ;;  %v3971_v43 = vld [vmem:[#allocation2 + $0x8] ss:$48 sps:$4 sm:$0xff]   ;;  %v3976_v44 = vld [vmem:[#allocation2 + $0x64] ss:$48 sps:$4 sm:$0xff]  }
  0x6a   : > { %590 = vmatprep.subr.bf16.mxu0 %v3940_v20  ;;  %633 = vmatprep.subr.bf16.mxu1 %v3943_v21  ;;  %v3979_v45 = vld [vmem:[#allocation2 + $0x6c] ss:$48 sps:$4 sm:$0xff]   ;;  %v3974_v46 = vld [vmem:[#allocation2 + $0x60] ss:$48 sps:$4 sm:$0xff]   ;;  %v3977_v47 = vld [vmem:[#allocation2 + $0x68] ss:$48 sps:$4 sm:$0xff]  }
  0x6b   : > { %620 = vmatprep.mubr.bf16.mxu0 %v4289_v0  ;;  %663 = vmatprep.mubr.bf16.mxu1 %v4289_v0  ;;  %v3982_v48 = vld [vmem:[#allocation2 + $0xc4] ss:$48 sps:$4 sm:$0xff]   ;;  %v3985_v49 = vld [vmem:[#allocation2 + $0xcc] ss:$48 sps:$4 sm:$0xff]   ;;  %v3980_v50 = vld [vmem:[#allocation2 + $0xc0] ss:$48 sps:$4 sm:$0xff]  }
  0x6c   : > { %v3983_v51 = vld [vmem:[#allocation2 + $0xc8] ss:$48 sps:$4 sm:$0xff]   ;;  %v3988_v52 = vld [vmem:[#allocation2 + $0x14] ss:$48 sps:$4 sm:$0xff]   ;;  %v3991_v55 = vld [vmem:[#allocation2 + $0x1c] ss:$48 sps:$4 sm:$0xff]  }
  0x6d   : > { %591 = vmatpush1.bf16.msra.mxu0 %v3938_v22  ;;  %634 = vmatpush1.bf16.msra.mxu1 %v3941_v23  ;;  %v239_v53 = vld [vmem:[%s4434_s30] sm:$0xff]  ;;  %v240_v54 = vld [vmem:[%s4434_s30 + $0x8] sm:$0xf]  ;;  %v3997_v60 = vld [vmem:[#allocation2 + $0x7c] ss:$48 sps:$4 sm:$0xff]  }
  0x6e   : > { %592 = vmatprep.subr.bf16.mxu0 %v3946_v24  ;;  %635 = vmatprep.subr.bf16.mxu1 %v3949_v25  ;;  %v3986_v56 = vld [vmem:[#allocation2 + $0x10] ss:$48 sps:$4 sm:$0xff]   ;;  %v3989_v57 = vld [vmem:[#allocation2 + $0x18] ss:$48 sps:$4 sm:$0xff]   ;;  %v4460_v58 = vpack.c.bf16 %v240_v54, %v239_v53  ;;  %v3994_v59 = vld [vmem:[#allocation2 + $0x74] ss:$48 sps:$4 sm:$0xff]  }
  0x6f   : > { %v3992_v61 = vld [vmem:[#allocation2 + $0x70] ss:$48 sps:$4 sm:$0xff]   ;;  %v3995_v62 = vld [vmem:[#allocation2 + $0x78] ss:$48 sps:$4 sm:$0xff]   ;;  %v4000_v63 = vld [vmem:[#allocation2 + $0xd4] ss:$48 sps:$4 sm:$0xff]  }
  0x70   : > { %v4003_v1 = vld [vmem:[#allocation2 + $0xdc] ss:$48 sps:$4 sm:$0xff]   ;;  %v3998_v2 = vld [vmem:[#allocation2 + $0xd0] ss:$48 sps:$4 sm:$0xff]   ;;  %v4001_v3 = vld [vmem:[#allocation2 + $0xd8] ss:$48 sps:$4 sm:$0xff]  }
  0x71   : > { %593 = vmatpush1.bf16.msra.mxu0 %v3944_v26  ;;  %636 = vmatpush1.bf16.msra.mxu1 %v3947_v27  ;;  %v4006_v4 = vld [vmem:[#allocation2 + $0x24] ss:$48 sps:$4 sm:$0xff]   ;;  %v4009_v5 = vld [vmem:[#allocation2 + $0x2c] ss:$48 sps:$4 sm:$0xff]   ;;  %v4004_v6 = vld [vmem:[#allocation2 + $0x20] ss:$48 sps:$4 sm:$0xff]  }
  0x72   : > { %674 = vmatprep.subr.bf16.mxu0 %v3952_v28  ;;  %717 = vmatprep.subr.bf16.mxu1 %v3955_v29  ;;  %v4007_v7 = vld [vmem:[#allocation2 + $0x28] ss:$48 sps:$4 sm:$0xff]   ;;  %v4012_v8 = vld [vmem:[#allocation2 + $0x84] ss:$48 sps:$4 sm:$0xff]   ;;  %v4015_v9 = vld [vmem:[#allocation2 + $0x8c] ss:$48 sps:$4 sm:$0xff]  }
  0x73   : > { %v4010_v10 = vld [vmem:[#allocation2 + $0x80] ss:$48 sps:$4 sm:$0xff]   ;;  %v4013_v11 = vld [vmem:[#allocation2 + $0x88] ss:$48 sps:$4 sm:$0xff]   ;;  %v4018_v12 = vld [vmem:[#allocation2 + $0xe4] ss:$48 sps:$4 sm:$0xff]  }
  0x74   : > { %3542 = vmatmul.mubr.msk.bf16.vlgmr.msra.gmra.mrb[4].mxu0 %vm498_vm0, %v4438_v19  ;;  %3543 = vmatmul.mubr.msk.bf16.vlgmr.msra.gmra.mrb[4].mxu1 %vm498_vm0, %v4438_v19  ;;  %v4021_v13 = vld [vmem:[#allocation2 + $0xec] ss:$48 sps:$4 sm:$0xff]   ;;  %v4016_v14 = vld [vmem:[#allocation2 + $0xe0] ss:$48 sps:$4 sm:$0xff]   ;;  %v4019_v15 = vld [vmem:[#allocation2 + $0xe8] ss:$48 sps:$4 sm:$0xff]  }
  0x75   : > { %675 = vmatpush1.bf16.msra.mxu0 %v3950_v30  ;;  %718 = vmatpush1.bf16.msra.mxu1 %v3953_v31  ;;  %v4024_v16 = vld [vmem:[#allocation2 + $0x244] ss:$48 sps:$4 sm:$0xff]   ;;  %v4027_v17 = vld [vmem:[#allocation2 + $0x24c] ss:$48 sps:$4 sm:$0xff]   ;;  %v4022_v18 = vld [vmem:[#allocation2 + $0x240] ss:$48 sps:$4 sm:$0xff]  }
  0x76   : > { %676 = vmatprep.subr.bf16.mxu0 %v3958_v32  ;;  %719 = vmatprep.subr.bf16.mxu1 %v3961_v33  ;;  %v4030_v20 = vld [vmem:[#allocation2 + $0x2a4] ss:$48 sps:$4 sm:$0xff]   ;;  %v4033_v21 = vld [vmem:[#allocation2 + $0x2ac] ss:$48 sps:$4 sm:$0xff]   ;;  %v4028_v22 = vld [vmem:[#allocation2 + $0x2a0] ss:$48 sps:$4 sm:$0xff]  }
  0x77   : > { %706 = vmatprep.mubr.bf16.mxu0 %v4289_v0  ;;  %749 = vmatprep.mubr.bf16.mxu1 %v4289_v0  ;;  %v4031_v23 = vld [vmem:[#allocation2 + $0x2a8] ss:$48 sps:$4 sm:$0xff]   ;;  %v4036_v24 = vld [vmem:[#allocation2 + $0x304] ss:$48 sps:$4 sm:$0xff]   ;;  %v4039_v25 = vld [vmem:[#allocation2 + $0x30c] ss:$48 sps:$4 sm:$0xff]  }
  0x78   : > { %v4034_v26 = vld [vmem:[#allocation2 + $0x300] ss:$48 sps:$4 sm:$0xff]   ;;  %v4037_v27 = vld [vmem:[#allocation2 + $0x308] ss:$48 sps:$4 sm:$0xff]   ;;  %v4042_v30 = vld [vmem:[#allocation2 + $0x254] ss:$48 sps:$4 sm:$0xff]  }
  0x79   : > { %677 = vmatpush1.bf16.msra.mxu0 %v3956_v34  ;;  %720 = vmatpush1.bf16.msra.mxu1 %v3959_v35  ;;  %v1201_v28 = vld [vmem:[%s4434_s30 + $0x2] sm:$0xff]  ;;  %v1202_v29 = vld [vmem:[%s4434_s30 + $0xa] sm:$0xf]  ;;  %vm4602_vm4 = vmpackc.low %vm2944_vm1, %vm4291_vm3 }
  0x7a   : > { %678 = vmatprep.subr.bf16.mxu0 %v3964_v36  ;;  %721 = vmatprep.subr.bf16.mxu1 %v3967_v37  ;;  %v4045_v31 = vld [vmem:[#allocation2 + $0x25c] ss:$48 sps:$4 sm:$0xff]   ;;  %v4482_v32 = vpack.c.bf16 %v1202_v29, %v1201_v28  ;;  %v4040_v33 = vld [vmem:[#allocation2 + $0x250] ss:$48 sps:$4 sm:$0xff]   ;;  %v4043_v34 = vld [vmem:[#allocation2 + $0x258] ss:$48 sps:$4 sm:$0xff]  }
  0x7b   : > { %v4048_v35 = vld [vmem:[#allocation2 + $0x2b4] ss:$48 sps:$4 sm:$0xff]   ;;  %v4051_v36 = vld [vmem:[#allocation2 + $0x2bc] ss:$48 sps:$4 sm:$0xff]   ;;  %v4046_v37 = vld [vmem:[#allocation2 + $0x2b0] ss:$48 sps:$4 sm:$0xff]  }
  0x7c   : > { %v4070_v53 = vld [vmem:[#allocation2 + $0x320] ss:$48 sps:$4 sm:$0xff]   ;;  %v4073_v54 = vld [vmem:[#allocation2 + $0x328] ss:$48 sps:$4 sm:$0xff]   ;;  %v4129_v28 = vld [vmem:[#allocation2 + $0x44c] ss:$48 sps:$4 sm:$0xff]  }
  0x7d   : > { %679 = vmatpush1.bf16.msra.mxu0 %v3962_v38  ;;  %722 = vmatpush1.bf16.msra.mxu1 %v3965_v39  ;;  %v4049_v38 = vld [vmem:[#allocation2 + $0x2b8] ss:$48 sps:$4 sm:$0xff]   ;;  %v4054_v39 = vld [vmem:[#allocation2 + $0x314] ss:$48 sps:$4 sm:$0xff]   ;;  %v4124_v29 = vld [vmem:[#allocation2 + $0x440] ss:$48 sps:$4 sm:$0xff]  }
  0x7e   : > { %943 = vmatprep.subr.bf16.mxu0 %v3970_v40  ;;  %986 = vmatprep.subr.bf16.mxu1 %v3973_v41  ;;  %v4057_v40 = vld [vmem:[#allocation2 + $0x31c] ss:$48 sps:$4 sm:$0xff]   ;;  %v4052_v41 = vld [vmem:[#allocation2 + $0x310] ss:$48 sps:$4 sm:$0xff]  }
  0x80   : > { %3544 = vmatmul.mubr.msk.bf16.vlgmr.msra.gmra.mrb[8].mxu0 %vm498_vm0, %v4438_v19  ;;  %3545 = vmatmul.mubr.msk.bf16.vlgmr.msra.gmra.mrb[8].mxu1 %vm498_vm0, %v4438_v19  ;;  %v4025_v19 = vld [vmem:[#allocation2 + $0x248] ss:$48 sps:$4 sm:$0xff]  }
  0x81   : > { %944 = vmatpush1.bf16.msra.mxu0 %v3968_v42  ;;  %987 = vmatpush1.bf16.msra.mxu1 %v3971_v43  ;;  %v4055_v42 = vld [vmem:[#allocation2 + $0x318] ss:$48 sps:$4 sm:$0xff]   ;;  %v4060_v43 = vld [vmem:[#allocation2 + $0x264] ss:$48 sps:$4 sm:$0xff]  }
  0x82   : > { %945 = vmatprep.subr.bf16.mxu0 %v3976_v44  ;;  %988 = vmatprep.subr.bf16.mxu1 %v3979_v45  ;;  %v4063_v44 = vld [vmem:[#allocation2 + $0x26c] ss:$48 sps:$4 sm:$0xff]   ;;  %v4058_v45 = vld [vmem:[#allocation2 + $0x260] ss:$48 sps:$4 sm:$0xff]  }
  0x83   : > { %975 = vmatprep.mubr.bf16.mxu0 %v4289_v0  ;;  %1018 = vmatprep.mubr.bf16.mxu1 %v4289_v0 }
  0x85   : > { %946 = vmatpush1.bf16.msra.mxu0 %v3974_v46  ;;  %989 = vmatpush1.bf16.msra.mxu1 %v3977_v47  ;;  %v4061_v46 = vld [vmem:[#allocation2 + $0x268] ss:$48 sps:$4 sm:$0xff]   ;;  %v4066_v47 = vld [vmem:[#allocation2 + $0x2c4] ss:$48 sps:$4 sm:$0xff]  }
  0x86   : > { %947 = vmatprep.subr.bf16.mxu0 %v3982_v48  ;;  %990 = vmatprep.subr.bf16.mxu1 %v3985_v49  ;;  %v4069_v48 = vld [vmem:[#allocation2 + $0x2cc] ss:$48 sps:$4 sm:$0xff]   ;;  %v4064_v49 = vld [vmem:[#allocation2 + $0x2c0] ss:$48 sps:$4 sm:$0xff]  }
  0x89   : > { %948 = vmatpush1.bf16.msra.mxu0 %v3980_v50  ;;  %991 = vmatpush1.bf16.msra.mxu1 %v3983_v51  ;;  %v4067_v50 = vld [vmem:[#allocation2 + $0x2c8] ss:$48 sps:$4 sm:$0xff]   ;;  %v4072_v51 = vld [vmem:[#allocation2 + $0x324] ss:$48 sps:$4 sm:$0xff]  }
  0x8a   : > { %1029 = vmatprep.subr.bf16.mxu0 %v3988_v52  ;;  %1072 = vmatprep.subr.bf16.mxu1 %v3991_v55  ;;  %v4075_v52 = vld [vmem:[#allocation2 + $0x32c] ss:$48 sps:$4 sm:$0xff]   ;;  %v4078_v55 = vld [vmem:[#allocation2 + $0x364] ss:$48 sps:$4 sm:$0xff]  }
  0x8c   : > { %3582 = vmatmul.mubr.msk.bf16.vlgmr.msra.gmra.mrb[0].mxu0 %vm498_vm0, %v4460_v58  ;;  %3583 = vmatmul.mubr.msk.bf16.vlgmr.msra.gmra.mrb[0].mxu1 %vm498_vm0, %v4460_v58 }
  0x8d   : > { %1030 = vmatpush1.bf16.msra.mxu0 %v3986_v56  ;;  %1073 = vmatpush1.bf16.msra.mxu1 %v3989_v57  ;;  %v4081_v56 = vld [vmem:[#allocation2 + $0x36c] ss:$48 sps:$4 sm:$0xff]   ;;  %v4076_v57 = vld [vmem:[#allocation2 + $0x360] ss:$48 sps:$4 sm:$0xff]  }
  0x8e   : > { %1031 = vmatprep.subr.bf16.mxu0 %v3994_v59  ;;  %1074 = vmatprep.subr.bf16.mxu1 %v3997_v60  ;;  %v4084_v59 = vld [vmem:[#allocation2 + $0x3c4] ss:$48 sps:$4 sm:$0xff]   ;;  %v4087_v60 = vld [vmem:[#allocation2 + $0x3cc] ss:$48 sps:$4 sm:$0xff]  }
  0x8f   : > { %1061 = vmatprep.mubr.bf16.mxu0 %v4289_v0  ;;  %1104 = vmatprep.mubr.bf16.mxu1 %v4289_v0 }
  0x91   : > { %1032 = vmatpush1.bf16.msra.mxu0 %v3992_v61  ;;  %1075 = vmatpush1.bf16.msra.mxu1 %v3995_v62  ;;  %v4082_v61 = vld [vmem:[#allocation2 + $0x3c0] ss:$48 sps:$4 sm:$0xff]   ;;  %v4085_v62 = vld [vmem:[#allocation2 + $0x3c8] ss:$48 sps:$4 sm:$0xff]  }
  0x92   : > { %1033 = vmatprep.subr.bf16.mxu0 %v4000_v63  ;;  %1076 = vmatprep.subr.bf16.mxu1 %v4003_v1  ;;  %v4090_v63 = vld [vmem:[#allocation2 + $0x424] ss:$48 sps:$4 sm:$0xff]   ;;  %v4093_v1 = vld [vmem:[#allocation2 + $0x42c] ss:$48 sps:$4 sm:$0xff]  }
  0x95   : > { %1034 = vmatpush1.bf16.msra.mxu0 %v3998_v2  ;;  %1077 = vmatpush1.bf16.msra.mxu1 %v4001_v3  ;;  %v4088_v2 = vld [vmem:[#allocation2 + $0x420] ss:$48 sps:$4 sm:$0xff]   ;;  %v4091_v3 = vld [vmem:[#allocation2 + $0x428] ss:$48 sps:$4 sm:$0xff]  }
  0x96   : > { %1115 = vmatprep.subr.bf16.mxu0 %v4006_v4  ;;  %1158 = vmatprep.subr.bf16.mxu1 %v4009_v5  ;;  %v1706_v4 = vld [vmem:[%s4434_s30 + $0x3] sm:$0xff]  ;;  %v1707_v5 = vld [vmem:[%s4434_s30 + $0xb] sm:$0xf] }
  0x98   : > { %3584 = vmatmul.mubr.msk.bf16.vlgmr.msra.gmra.mrb[4].mxu0 %vm498_vm0, %v4460_v58  ;;  %3585 = vmatmul.mubr.msk.bf16.vlgmr.msra.gmra.mrb[4].mxu1 %vm498_vm0, %v4460_v58 }
  0x99   : > { %1116 = vmatpush1.bf16.msra.mxu0 %v4004_v6  ;;  %1159 = vmatpush1.bf16.msra.mxu1 %v4007_v7  ;;  %v4096_v6 = vld [vmem:[#allocation2 + $0x374] ss:$48 sps:$4 sm:$0xff]   ;;  %v4099_v7 = vld [vmem:[#allocation2 + $0x37c] ss:$48 sps:$4 sm:$0xff]  }
  0x9a   : > { %1117 = vmatprep.subr.bf16.mxu0 %v4012_v8  ;;  %1160 = vmatprep.subr.bf16.mxu1 %v4015_v9  ;;  %v4504_v8 = vpack.c.bf16 %v1707_v5, %v1706_v4  ;;  %v4094_v9 = vld [vmem:[#allocation2 + $0x370] ss:$48 sps:$4 sm:$0xff]   ;;  %v4183_v4 = vld [vmem:[#allocation2 + $0x56c] ss:$48 sps:$4 sm:$0xff]  }
  0x9b   : > { %1147 = vmatprep.mubr.bf16.mxu0 %v4289_v0  ;;  %1190 = vmatprep.mubr.bf16.mxu1 %v4289_v0  ;;  %v4178_v5 = vld [vmem:[#allocation2 + $0x560] ss:$48 sps:$4 sm:$0xff]  }
  0x9d   : > { %1118 = vmatpush1.bf16.msra.mxu0 %v4010_v10  ;;  %1161 = vmatpush1.bf16.msra.mxu1 %v4013_v11  ;;  %v4097_v10 = vld [vmem:[#allocation2 + $0x378] ss:$48 sps:$4 sm:$0xff]   ;;  %v4102_v11 = vld [vmem:[#allocation2 + $0x3d4] ss:$48 sps:$4 sm:$0xff]  }
  0x9e   : > { %1119 = vmatprep.subr.bf16.mxu0 %v4018_v12  ;;  %1162 = vmatprep.subr.bf16.mxu1 %v4021_v13  ;;  %v4105_v12 = vld [vmem:[#allocation2 + $0x3dc] ss:$48 sps:$4 sm:$0xff]   ;;  %v4100_v13 = vld [vmem:[#allocation2 + $0x3d0] ss:$48 sps:$4 sm:$0xff]  }
  0xa1   : > { %1120 = vmatpush1.bf16.msra.mxu0 %v4016_v14  ;;  %1163 = vmatpush1.bf16.msra.mxu1 %v4019_v15  ;;  %v4103_v14 = vld [vmem:[#allocation2 + $0x3d8] ss:$48 sps:$4 sm:$0xff]   ;;  %v4108_v15 = vld [vmem:[#allocation2 + $0x434] ss:$48 sps:$4 sm:$0xff]  }
  0xa2   : > { %1424 = vmatprep.subr.bf16.mxu0 %v4024_v16  ;;  %1467 = vmatprep.subr.bf16.mxu1 %v4027_v17  ;;  %v4111_v16 = vld [vmem:[#allocation2 + $0x43c] ss:$48 sps:$4 sm:$0xff]   ;;  %v4106_v17 = vld [vmem:[#allocation2 + $0x430] ss:$48 sps:$4 sm:$0xff]  }
  0xa4   : > { %3586 = vmatmul.mubr.msk.bf16.vlgmr.msra.gmra.mrb[8].mxu0 %vm498_vm0, %v4460_v58  ;;  %3587 = vmatmul.mubr.msk.bf16.vlgmr.msra.gmra.mrb[8].mxu1 %vm498_vm0, %v4460_v58  ;;  %v4079_v58 = vld [vmem:[#allocation2 + $0x368] ss:$48 sps:$4 sm:$0xff]  }
  0xa5   : > { %1425 = vmatpush1.bf16.msra.mxu0 %v4022_v18  ;;  %1468 = vmatpush1.bf16.msra.mxu1 %v4025_v19  ;;  %v4109_v18 = vld [vmem:[#allocation2 + $0x438] ss:$48 sps:$4 sm:$0xff]   ;;  %v4114_v19 = vld [vmem:[#allocation2 + $0x384] ss:$48 sps:$4 sm:$0xff]  }
  0xa6   : > { %1426 = vmatprep.subr.bf16.mxu0 %v4030_v20  ;;  %1469 = vmatprep.subr.bf16.mxu1 %v4033_v21  ;;  %v4117_v20 = vld [vmem:[#allocation2 + $0x38c] ss:$48 sps:$4 sm:$0xff]   ;;  %v4112_v21 = vld [vmem:[#allocation2 + $0x380] ss:$48 sps:$4 sm:$0xff]  }
  0xa7   : > { %1456 = vmatprep.mubr.bf16.mxu0 %v4289_v0  ;;  %1499 = vmatprep.mubr.bf16.mxu1 %v4289_v0 }
  0xa9   : > { %1427 = vmatpush1.bf16.msra.mxu0 %v4028_v22  ;;  %1470 = vmatpush1.bf16.msra.mxu1 %v4031_v23  ;;  %v4115_v22 = vld [vmem:[#allocation2 + $0x388] ss:$48 sps:$4 sm:$0xff]   ;;  %v4120_v23 = vld [vmem:[#allocation2 + $0x3e4] ss:$48 sps:$4 sm:$0xff]  }
  0xaa   : > { %1428 = vmatprep.subr.bf16.mxu0 %v4036_v24  ;;  %1471 = vmatprep.subr.bf16.mxu1 %v4039_v25  ;;  %v4123_v24 = vld [vmem:[#allocation2 + $0x3ec] ss:$48 sps:$4 sm:$0xff]   ;;  %v4118_v25 = vld [vmem:[#allocation2 + $0x3e0] ss:$48 sps:$4 sm:$0xff]  }
  0xad   : > { %1429 = vmatpush1.bf16.msra.mxu0 %v4034_v26  ;;  %1472 = vmatpush1.bf16.msra.mxu1 %v4037_v27  ;;  %v4121_v26 = vld [vmem:[#allocation2 + $0x3e8] ss:$48 sps:$4 sm:$0xff]   ;;  %v4126_v27 = vld [vmem:[#allocation2 + $0x444] ss:$48 sps:$4 sm:$0xff]  }
  0xae   : > { %1510 = vmatprep.subr.bf16.mxu0 %v4042_v30  ;;  %1553 = vmatprep.subr.bf16.mxu1 %v4045_v31  ;;  %v4127_v30 = vld [vmem:[#allocation2 + $0x448] ss:$48 sps:$4 sm:$0xff]   ;;  %v4132_v31 = vld [vmem:[#allocation2 + $0x484] ss:$48 sps:$4 sm:$0xff]  }
  0xb0   : > { %3624 = vmatmul.mubr.msk.bf16.vlgmr.msra.gmra.mrb[0].mxu0 %vm498_vm0, %v4482_v32  ;;  %3625 = vmatmul.mubr.msk.bf16.vlgmr.msra.gmra.mrb[0].mxu1 %vm498_vm0, %v4482_v32 }
  0xb1   : > { %1511 = vmatpush1.bf16.msra.mxu0 %v4040_v33  ;;  %1554 = vmatpush1.bf16.msra.mxu1 %v4043_v34  ;;  %v4130_v33 = vld [vmem:[#allocation2 + $0x480] ss:$48 sps:$4 sm:$0xff]   ;;  %v4133_v34 = vld [vmem:[#allocation2 + $0x488] ss:$48 sps:$4 sm:$0xff]  }
  0xb2   : > { %1512 = vmatprep.subr.bf16.mxu0 %v4048_v35  ;;  %1555 = vmatprep.subr.bf16.mxu1 %v4051_v36  ;;  %v4138_v35 = vld [vmem:[#allocation2 + $0x4e4] ss:$48 sps:$4 sm:$0xff]   ;;  %v4141_v36 = vld [vmem:[#allocation2 + $0x4ec] ss:$48 sps:$4 sm:$0xff]  }
  0xb3   : > { %1542 = vmatprep.mubr.bf16.mxu0 %v4289_v0  ;;  %1585 = vmatprep.mubr.bf16.mxu1 %v4289_v0 }
  0xb5   : > { %1513 = vmatpush1.bf16.msra.mxu0 %v4046_v37  ;;  %1556 = vmatpush1.bf16.msra.mxu1 %v4049_v38  ;;  %v4136_v37 = vld [vmem:[#allocation2 + $0x4e0] ss:$48 sps:$4 sm:$0xff]   ;;  %v4139_v38 = vld [vmem:[#allocation2 + $0x4e8] ss:$48 sps:$4 sm:$0xff]  }
  0xb6   : > { %1514 = vmatprep.subr.bf16.mxu0 %v4054_v39  ;;  %1557 = vmatprep.subr.bf16.mxu1 %v4057_v40  ;;  %v4144_v39 = vld [vmem:[#allocation2 + $0x544] ss:$48 sps:$4 sm:$0xff]   ;;  %v4147_v40 = vld [vmem:[#allocation2 + $0x54c] ss:$48 sps:$4 sm:$0xff]  }
  0xb9   : > { %1515 = vmatpush1.bf16.msra.mxu0 %v4052_v41  ;;  %1558 = vmatpush1.bf16.msra.mxu1 %v4055_v42  ;;  %v4142_v41 = vld [vmem:[#allocation2 + $0x540] ss:$48 sps:$4 sm:$0xff]   ;;  %v4145_v42 = vld [vmem:[#allocation2 + $0x548] ss:$48 sps:$4 sm:$0xff]  }
  0xba   : > { %1596 = vmatprep.subr.bf16.mxu0 %v4060_v43  ;;  %1639 = vmatprep.subr.bf16.mxu1 %v4063_v44  ;;  %v2211_v43 = vld [vmem:[%s4434_s30 + $0x4] sm:$0xff]  ;;  %v2212_v44 = vld [vmem:[%s4434_s30 + $0xc] sm:$0xf] }
  0xbc   : > { %3626 = vmatmul.mubr.msk.bf16.vlgmr.msra.gmra.mrb[4].mxu0 %vm498_vm0, %v4482_v32  ;;  %3627 = vmatmul.mubr.msk.bf16.vlgmr.msra.gmra.mrb[4].mxu1 %vm498_vm0, %v4482_v32 }
  0xbd   : > { %1597 = vmatpush1.bf16.msra.mxu0 %v4058_v45  ;;  %1640 = vmatpush1.bf16.msra.mxu1 %v4061_v46  ;;  %v4150_v45 = vld [vmem:[#allocation2 + $0x494] ss:$48 sps:$4 sm:$0xff]   ;;  %v4153_v46 = vld [vmem:[#allocation2 + $0x49c] ss:$48 sps:$4 sm:$0xff]  }
  0xbe   : > { %1598 = vmatprep.subr.bf16.mxu0 %v4066_v47  ;;  %1641 = vmatprep.subr.bf16.mxu1 %v4069_v48  ;;  %v2213_v47 = vpack.c.bf16 %v2212_v44, %v2211_v43  ;;  %v4148_v48 = vld [vmem:[#allocation2 + $0x490] ss:$48 sps:$4 sm:$0xff]  }
  0xbf   : > { %1628 = vmatprep.mubr.bf16.mxu0 %v4289_v0  ;;  %1671 = vmatprep.mubr.bf16.mxu1 %v4289_v0 }
  0xc1   : > { %1599 = vmatpush1.bf16.msra.mxu0 %v4064_v49  ;;  %1642 = vmatpush1.bf16.msra.mxu1 %v4067_v50  ;;  %v4151_v49 = vld [vmem:[#allocation2 + $0x498] ss:$48 sps:$4 sm:$0xff]   ;;  %v4156_v50 = vld [vmem:[#allocation2 + $0x4f4] ss:$48 sps:$4 sm:$0xff]  }
  0xc2   : > { %1600 = vmatprep.subr.bf16.mxu0 %v4072_v51  ;;  %1643 = vmatprep.subr.bf16.mxu1 %v4075_v52  ;;  %v4159_v51 = vld [vmem:[#allocation2 + $0x4fc] ss:$48 sps:$4 sm:$0xff]   ;;  %v4154_v52 = vld [vmem:[#allocation2 + $0x4f0] ss:$48 sps:$4 sm:$0xff]  }
  0xc5   : > { %1601 = vmatpush1.bf16.msra.mxu0 %v4070_v53  ;;  %1644 = vmatpush1.bf16.msra.mxu1 %v4073_v54  ;;  %v4157_v53 = vld [vmem:[#allocation2 + $0x4f8] ss:$48 sps:$4 sm:$0xff]   ;;  %v4162_v54 = vld [vmem:[#allocation2 + $0x554] ss:$48 sps:$4 sm:$0xff]  }
  0xc6   : > { %1929 = vmatprep.subr.bf16.mxu0 %v4078_v55  ;;  %1972 = vmatprep.subr.bf16.mxu1 %v4081_v56  ;;  %v4165_v55 = vld [vmem:[#allocation2 + $0x55c] ss:$48 sps:$4 sm:$0xff]   ;;  %v4160_v56 = vld [vmem:[#allocation2 + $0x550] ss:$48 sps:$4 sm:$0xff]  }
  0xc8   : > { %3628 = vmatmul.mubr.msk.bf16.vlgmr.msra.gmra.mrb[8].mxu0 %vm498_vm0, %v4482_v32  ;;  %3629 = vmatmul.mubr.msk.bf16.vlgmr.msra.gmra.mrb[8].mxu1 %vm498_vm0, %v4482_v32  ;;  %v4135_v32 = vld [vmem:[#allocation2 + $0x48c] ss:$48 sps:$4 sm:$0xff]  }
  0xc9   : > { %1930 = vmatpush1.bf16.msra.mxu0 %v4076_v57  ;;  %1973 = vmatpush1.bf16.msra.mxu1 %v4079_v58  ;;  %v4163_v57 = vld [vmem:[#allocation2 + $0x558] ss:$48 sps:$4 sm:$0xff]   ;;  %v4168_v58 = vld [vmem:[#allocation2 + $0x4a4] ss:$48 sps:$4 sm:$0xff]  }
  0xca   : > { %1931 = vmatprep.subr.bf16.mxu0 %v4084_v59  ;;  %1974 = vmatprep.subr.bf16.mxu1 %v4087_v60  ;;  %v4171_v59 = vld [vmem:[#allocation2 + $0x4ac] ss:$48 sps:$4 sm:$0xff]   ;;  %v4166_v60 = vld [vmem:[#allocation2 + $0x4a0] ss:$48 sps:$4 sm:$0xff]  }
  0xcb   : > { %1961 = vmatprep.mubr.bf16.mxu0 %v4289_v0  ;;  %2004 = vmatprep.mubr.bf16.mxu1 %v4289_v0 }
  0xcd   : > { %1932 = vmatpush1.bf16.msra.mxu0 %v4082_v61  ;;  %1975 = vmatpush1.bf16.msra.mxu1 %v4085_v62  ;;  %v4169_v61 = vld [vmem:[#allocation2 + $0x4a8] ss:$48 sps:$4 sm:$0xff]   ;;  %v4174_v62 = vld [vmem:[#allocation2 + $0x504] ss:$48 sps:$4 sm:$0xff]  }
  0xce   : > { %1933 = vmatprep.subr.bf16.mxu0 %v4090_v63  ;;  %1976 = vmatprep.subr.bf16.mxu1 %v4093_v1  ;;  %v4177_v63 = vld [vmem:[#allocation2 + $0x50c] ss:$48 sps:$4 sm:$0xff]   ;;  %v4172_v1 = vld [vmem:[#allocation2 + $0x500] ss:$48 sps:$4 sm:$0xff]  }
  0xd1   : > { %1934 = vmatpush1.bf16.msra.mxu0 %v4088_v2  ;;  %1977 = vmatpush1.bf16.msra.mxu1 %v4091_v3  ;;  %v4175_v2 = vld [vmem:[#allocation2 + $0x508] ss:$48 sps:$4 sm:$0xff]   ;;  %v4180_v3 = vld [vmem:[#allocation2 + $0x564] ss:$48 sps:$4 sm:$0xff]  }
  0xd2   : > { %2015 = vmatprep.subr.bf16.mxu0 %v4096_v6  ;;  %2058 = vmatprep.subr.bf16.mxu1 %v4099_v7  ;;  %v4181_v6 = vld [vmem:[#allocation2 + $0x568] ss:$48 sps:$4 sm:$0xff]   ;;  %v4290_v7 = vmov 0.0  }
  0xd4   : > { %3666 = vmatmul.mubr.msk.bf16.vlgmr.msra.gmra.mrb[0].mxu0 %vm498_vm0, %v4504_v8  ;;  %3667 = vmatmul.mubr.msk.bf16.vlgmr.msra.gmra.mrb[0].mxu1 %vm498_vm0, %v4504_v8 }
  0xd5   : > { %2016 = vmatpush1.bf16.msra.mxu0 %v4094_v9  ;;  %2059 = vmatpush1.bf16.msra.mxu1 %v4097_v10 }
  0xd6   : > { %2017 = vmatprep.subr.bf16.mxu0 %v4102_v11  ;;  %2060 = vmatprep.subr.bf16.mxu1 %v4105_v12  ;;  %v2716_v11 = vld [vmem:[#allocation4] sm:$0xff] }
  0xd7   : > { %2047 = vmatprep.mubr.bf16.mxu0 %v4289_v0  ;;  %2090 = vmatprep.mubr.bf16.mxu1 %v4289_v0 }
  0xd9   : > { %2018 = vmatpush1.bf16.msra.mxu0 %v4100_v13  ;;  %2061 = vmatpush1.bf16.msra.mxu1 %v4103_v14 }
  0xda   : > { %2019 = vmatprep.subr.bf16.mxu0 %v4108_v15  ;;  %2062 = vmatprep.subr.bf16.mxu1 %v4111_v16 }
  0xdd   : > { %2020 = vmatpush1.bf16.msra.mxu0 %v4106_v17  ;;  %2063 = vmatpush1.bf16.msra.mxu1 %v4109_v18 }
  0xde   : > { %2101 = vmatprep.subr.bf16.mxu0 %v4114_v19  ;;  %2144 = vmatprep.subr.bf16.mxu1 %v4117_v20 }
  0xe0   : > { %3668 = vmatmul.mubr.msk.bf16.vlgmr.msra.gmra.mrb[4].mxu0 %vm498_vm0, %v4504_v8  ;;  %3669 = vmatmul.mubr.msk.bf16.vlgmr.msra.gmra.mrb[4].mxu1 %vm498_vm0, %v4504_v8 }
  0xe1   : > { %2102 = vmatpush1.bf16.msra.mxu0 %v4112_v21  ;;  %2145 = vmatpush1.bf16.msra.mxu1 %v4115_v22  ;;  %v2804_v21 = vld [vmem:[#allocation6] sm:$0xff] }
  0xe2   : > { %2103 = vmatprep.subr.bf16.mxu0 %v4120_v23  ;;  %2146 = vmatprep.subr.bf16.mxu1 %v4123_v24 }
  0xe3   : > { %2133 = vmatprep.mubr.bf16.mxu0 %v4289_v0  ;;  %2176 = vmatprep.mubr.bf16.mxu1 %v4289_v0 }
  0xe5   : > { %2104 = vmatpush1.bf16.msra.mxu0 %v4118_v25  ;;  %2147 = vmatpush1.bf16.msra.mxu1 %v4121_v26 }
  0xe6   : > { %2105 = vmatprep.subr.bf16.mxu0 %v4126_v27  ;;  %2148 = vmatprep.subr.bf16.mxu1 %v4129_v28 }
  0xe9   : > { %2106 = vmatpush1.bf16.msra.mxu0 %v4124_v29  ;;  %2149 = vmatpush1.bf16.msra.mxu1 %v4127_v30 }
  0xea   : > { %2434 = vmatprep.subr.bf16.mxu0 %v4132_v31  ;;  %2477 = vmatprep.subr.bf16.mxu1 %v4135_v32 }
  0xec   : > { %3670 = vmatmul.mubr.msk.bf16.vlgmr.msra.gmra.mrb[8].mxu0 %vm498_vm0, %v4504_v8  ;;  %3671 = vmatmul.mubr.msk.bf16.vlgmr.msra.gmra.mrb[8].mxu1 %vm498_vm0, %v4504_v8  ;;  %v2720_v8 = vlaneseq }
  0xed   : > { %2435 = vmatpush1.bf16.msra.mxu0 %v4130_v33  ;;  %2478 = vmatpush1.bf16.msra.mxu1 %v4133_v34 }
  0xee   : > { %2436 = vmatprep.subr.bf16.mxu0 %v4138_v35  ;;  %2479 = vmatprep.subr.bf16.mxu1 %v4141_v36  ;;  %v4538_v9 = vshrl.u32 %v2720_v8, 7 }
  0xef   : > { %2466 = vmatprep.mubr.bf16.mxu0 %v4289_v0  ;;  %2509 = vmatprep.mubr.bf16.mxu1 %v4289_v0 }
  0xf0   : > { %v4542_v13 = vsub.s32 1, %v4538_v9  ;;  %v2730_v14 = vsub.s32 2, %v4538_v9  ;;  %v4546_v17 = vsub.s32 3, %v4538_v9  ;;  %v2738_v24 = vsub.s32 4, %v4538_v9 }
  0xf1   : > { %2437 = vmatpush1.bf16.msra.mxu0 %v4136_v37  ;;  %2480 = vmatpush1.bf16.msra.mxu1 %v4139_v38  ;;  %v2746_v25 = vsub.s32 6, %v4538_v9  ;;  %v2742_v26 = vsub.s32 5, %v4538_v9  ;;  %v2750_v28 = vsub.s32 7, %v4538_v9 }
  0xf2   : > { %2438 = vmatprep.subr.bf16.mxu0 %v4144_v39  ;;  %2481 = vmatprep.subr.bf16.mxu1 %v4147_v40  ;;  %v2727_v27 = vrot.slane %v2716_v11, %v4542_v13  ;;  %v2731_v29 = vrot.slane %v2716_v11, %v2730_v14  ;;  %v2735_v30 = vrot.slane %v2716_v11, %v4546_v17  ;;  %v2717_v39 = vld [vmem:[#allocation4 + $0x8] sm:$0xf] }
  0xf3   : > { %v2819_v32 = vrot.slane %v2804_v21, %v2730_v14  ;;  %v2815_v33 = vrot.slane %v2804_v21, %v4542_v13  ;;  %v4556_v34 = vrot.slane %v2804_v21, %v4546_v17  ;;  %v2739_v36 = vrot.slane %v2716_v11, %v2738_v24 }
  0xf4   : > { %v2747_v37 = vrot.slane %v2716_v11, %v2746_v25  ;;  %v2743_v38 = vrot.slane %v2716_v11, %v2742_v26  ;;  %v2751_v43 = vrot.slane %v2716_v11, %v2750_v28 }
  0xf5   : > { %2439 = vmatpush1.bf16.msra.mxu0 %v4142_v41  ;;  %2482 = vmatpush1.bf16.msra.mxu1 %v4145_v42  ;;  %v4558_v41 = vrot.slane %v2804_v21, %v2738_v24  ;;  %v2835_v42 = vrot.slane %v2804_v21, %v2746_v25 }
  0xf6   : > { %2520 = vmatprep.subr.bf16.mxu0 %v4150_v45  ;;  %2563 = vmatprep.subr.bf16.mxu1 %v4153_v46  ;;  %v2831_v45 = vrot.slane %v2804_v21, %v2742_v26  ;;  %v2805_v46 = vld [vmem:[#allocation6 + $0x8] sm:$0xf] }
  0xf8   : > { %3708 = vmatmul.mubr.msk.bf16.vlgmr.msra.gmra.mrb[0].mxu0 %vm498_vm0, %v2213_v47  ;;  %3709 = vmatmul.mubr.msk.bf16.vlgmr.msra.gmra.mrb[0].mxu1 %vm498_vm0, %v2213_v47 }
  0xf9   : > { %2521 = vmatpush1.bf16.msra.mxu0 %v4148_v48  ;;  %2564 = vmatpush1.bf16.msra.mxu1 %v4151_v49  ;;  %v2932_v48 = vmul.u32 2, %v4538_v9 }
  0xfa   : > { %2522 = vmatprep.subr.bf16.mxu0 %v4156_v50  ;;  %2565 = vmatprep.subr.bf16.mxu1 %v4159_v51  ;;  %v2839_v50 = vrot.slane %v2804_v21, %v2750_v28 }
  0xfb   : > { %2552 = vmatprep.mubr.bf16.mxu0 %v4289_v0  ;;  %2595 = vmatprep.mubr.bf16.mxu1 %v4289_v0 }
  0xfd   : > { %2523 = vmatpush1.bf16.msra.mxu0 %v4154_v52  ;;  %2566 = vmatpush1.bf16.msra.mxu1 %v4157_v53  ;;  %v4565_v52 = vrot.slane %v2717_v39, %v2730_v14 }
  0xfe   : > { %2524 = vmatprep.subr.bf16.mxu0 %v4162_v54  ;;  %2567 = vmatprep.subr.bf16.mxu1 %v4165_v55  ;;  %v4568_v55 = vrot.slane %v2717_v39, %v4542_v13 }
 0x101   : > { %2525 = vmatpush1.bf16.msra.mxu0 %v4160_v56  ;;  %2568 = vmatpush1.bf16.msra.mxu1 %v4163_v57  ;;  %v4571_v56 = vrot.slane %v2717_v39, %v4546_v17 }
 0x102   : > { %2606 = vmatprep.subr.bf16.mxu0 %v4168_v58  ;;  %2649 = vmatprep.subr.bf16.mxu1 %v4171_v59 }
 0x104   : > { %3710 = vmatmul.mubr.msk.bf16.vlgmr.msra.gmra.mrb[4].mxu0 %vm498_vm0, %v2213_v47  ;;  %3711 = vmatmul.mubr.msk.bf16.vlgmr.msra.gmra.mrb[4].mxu1 %vm498_vm0, %v2213_v47 }
 0x105   : > { %2607 = vmatpush1.bf16.msra.mxu0 %v4166_v60  ;;  %2650 = vmatpush1.bf16.msra.mxu1 %v4169_v61 }
 0x106   : > { %2608 = vmatprep.subr.bf16.mxu0 %v4174_v62  ;;  %2651 = vmatprep.subr.bf16.mxu1 %v4177_v63 }
 0x107   : > { %2638 = vmatprep.mubr.bf16.mxu0 %v4289_v0  ;;  %2681 = vmatprep.mubr.bf16.mxu1 %v4289_v0  ;;  %v2722_v0 = vsub.s32 0, %v4538_v9 }
 0x109   : > { %2609 = vmatpush1.bf16.msra.mxu0 %v4172_v1  ;;  %2652 = vmatpush1.bf16.msra.mxu1 %v4175_v2  ;;  %v2723_v20 = vrot.slane %v2716_v11, %v2722_v0  ;;  %v2811_v31 = vrot.slane %v2804_v21, %v2722_v0  ;;  %v4563_v51 = vrot.slane %v2717_v39, %v2722_v0 }
 0x10a   : > { %2610 = vmatprep.subr.bf16.mxu0 %v4180_v3  ;;  %2653 = vmatprep.subr.bf16.mxu1 %v4183_v4  ;;  %v4573_v61 = vrot.slane %v2805_v46, %v2722_v0  ;;  %v4577_v3 = vrot.slane %v2805_v46, %v2730_v14 }
 0x10d   : > { %2611 = vmatpush1.bf16.msra.mxu0 %v4178_v5  ;;  %2654 = vmatpush1.bf16.msra.mxu1 %v4181_v6 }
 0x110   : > { %3712 = vmatmul.mubr.msk.bf16.vlgmr.msra.gmra.mrb[8].mxu0 %vm498_vm0, %v2213_v47  ;;  %3713 = vmatmul.mubr.msk.bf16.vlgmr.msra.gmra.mrb[8].mxu1 %vm498_vm0, %v2213_v47  ;;  %v4560_v47 = vand.u32 127, %v2720_v8 }
 0x111   : > { %3027 = vmatprep.mubr.f32.mxu0 %v4290_v7  ;;  %3098 = vmatprep.mubr.f32.mxu1 %v4290_v7 }
 0x112   : > { %vm4582_vm2 = vcmp.eq.s32.totalorder %v4560_v47, %v2932_v48 }
 0x1cb   : > { %v2468_v10 = vpop.f32.mrb[0].mxu0  ;;  %v2511_v12 = vpop.f32.mrb[0].mxu1 }
 0x1cc   : > { %v2470_v15 = vpop.f32.mrb[1].mxu0  ;;  %v2513_v16 = vpop.f32.mrb[1].mxu1  ;;  %v2780_v35 = vmul.f32 %v2723_v20, %v2468_v10  ;;  %v2782_v44 = vmul.f32 %v2731_v29, %v2511_v12 }
 0x1cd   : > { %v2472_v18 = vpop.f32.mrb[2].mxu0  ;;  %v2515_v19 = vpop.f32.mrb[2].mxu1  ;;  %v2781_v40 = vmul.f32 %v2727_v27, %v2470_v15  ;;  %v2783_v49 = vmul.f32 %v2735_v30, %v2513_v16 }
 0x1ce   : > { %v2474_v22 = vpop.f32.mrb[3].mxu0  ;;  %v2517_v23 = vpop.f32.mrb[3].mxu1  ;;  %v2868_v53 = vadd.f32 %v2811_v31, %v2780_v35  ;;  %v2792_v54 = vmul.f32 %v2723_v20, %v2472_v18  ;;  %v4575_v62 = vadd.f32 %v2819_v32, %v2782_v44  ;;  %v2794_v6 = vmul.f32 %v2731_v29, %v2515_v19 }
 0x1cf   : > { %v2869_v57 = vadd.f32 %v2815_v33, %v2781_v40  ;;  %v2793_v58 = vmul.f32 %v2727_v27, %v2474_v22  ;;  %v4587_v5 = vadd.f32 %v4556_v34, %v2783_v49  ;;  %v2795_v8 = vmul.f32 %v2735_v30, %v2517_v23 }
 0x1d0   : > { %v2892_v12 = vmax.f32 %v2868_v53, 0.0  ;;  %v2880_v15 = vadd.f32 %v2811_v31, %v2792_v54  ;;  %v4589_v40 = vadd.f32 %v2819_v32, %v2794_v6  ;;  %v2855_v32 = vrot.slane %v2805_v46, %v4546_v17 }
 0x1d1   : > { %v2893_v21 = vmax.f32 %v2869_v57, 0.0  ;;  %v2881_v22 = vadd.f32 %v2815_v33, %v2793_v58  ;;  %v4592_v49 = vadd.f32 %v4556_v34, %v2795_v8  ;;  %v2894_v58 = vmax.f32 %v4575_v62, 0.0 }
 0x1d2   : > { %v2904_v30 = vmax.f32 %v2880_v15, 0.0  ;;  %v2906_v17 = vmax.f32 %v4589_v40, 0.0 }
 0x1d7   : > { %v2554_v59 = vpop.f32.mrb[4].mxu0  ;;  %v2597_v60 = vpop.f32.mrb[4].mxu1 }
 0x1d8   : > { %v2786_v63 = vmul.f32 %v2747_v37, %v2597_v60  ;;  %v2556_v1 = vpop.f32.mrb[5].mxu0  ;;  %v2599_v2 = vpop.f32.mrb[5].mxu1  ;;  %v2784_v26 = vmul.f32 %v2739_v36, %v2554_v59 }
 0x1d9   : > { %v2787_v0 = vmul.f32 %v2751_v43, %v2599_v2  ;;  %v2558_v10 = vpop.f32.mrb[6].mxu0  ;;  %v2601_v11 = vpop.f32.mrb[6].mxu1  ;;  %v2785_v28 = vmul.f32 %v2743_v38, %v2556_v1 }
 0x1da   : > { %v2874_v16 = vadd.f32 %v2835_v42, %v2786_v63  ;;  %v2798_v14 = vmul.f32 %v2747_v37, %v2601_v11  ;;  %v2560_v18 = vpop.f32.mrb[7].mxu0  ;;  %v2603_v20 = vpop.f32.mrb[7].mxu1  ;;  %v2796_v19 = vmul.f32 %v2739_v36, %v2558_v10  ;;  %v2905_v37 = vmax.f32 %v2881_v22, 0.0 }
 0x1db   : > { %v2875_v24 = vadd.f32 %v2839_v50, %v2787_v0  ;;  %v2799_v25 = vmul.f32 %v2751_v43, %v2603_v20  ;;  %v2797_v23 = vmul.f32 %v2743_v38, %v2560_v18  ;;  %v2872_v43 = vadd.f32 %v4558_v41, %v2784_v26 }
 0x1dc   : > { %v2898_v27 = vmax.f32 %v2874_v16, 0.0  ;;  %v2886_v35 = vadd.f32 %v2835_v42, %v2798_v14  ;;  %v2873_v54 = vadd.f32 %v2831_v45, %v2785_v28  ;;  %v2847_v42 = vrot.slane %v2805_v46, %v4542_v13 }
 0x1dd   : > { %v2899_v39 = vmax.f32 %v2875_v24, 0.0  ;;  %v2887_v29 = vadd.f32 %v2839_v50, %v2799_v25  ;;  %v2884_v36 = vadd.f32 %v4558_v41, %v2796_v19  ;;  %v2885_v38 = vadd.f32 %v2831_v45, %v2797_v23 }
 0x1de   : > { %v2916_v31 = vmax.f32 %v2892_v12, %v2898_v27  ;;  %v2910_v44 = vmax.f32 %v2886_v35, 0.0  ;;  %v4609_v13 = vsel %vm4582_vm2, 1.0, %v4290_v7  ;;  %v2895_v41 = vmax.f32 %v4587_v5, 0.0 }
 0x1df   : > { %v2917_v33 = vmax.f32 %v2893_v21, %v2899_v39  ;;  %v2911_v53 = vmax.f32 %v2887_v29, 0.0  ;;  %v2907_v45 = vmax.f32 %v4592_v49, 0.0  ;;  %v2896_v63 = vmax.f32 %v2872_v43, 0.0 }
 0x1e0   : > { %v2922_v57 = vmax.f32 %v2904_v30, %v2910_v44  ;;  %v2897_v1 = vmax.f32 %v2873_v54, 0.0  ;;  %v2908_v0 = vmax.f32 %v2884_v36, 0.0  ;;  %v2909_v10 = vmax.f32 %v2885_v38, 0.0 }
 0x1e1   : > { %v2923_v50 = vmax.f32 %v2905_v37, %v2911_v53  ;;  %v2936_v36 = vadd.s32 1, %v2932_v48 }
 0x1e2   : > { %v4599_v59 = vpack.c.bf16 %v2922_v57, %v2916_v31 }
 0x1e3   : > { %v3737_v46 = vpack.c.bf16 %v2923_v50, %v2917_v33  ;;  %v2640_v60 = vpop.f32.mrb[8].mxu0  ;;  %v2683_v62 = vpop.f32.mrb[8].mxu1  ;;  %vm2937_vm6 = vcmp.eq.s32.totalorder %v4560_v47, %v2936_v36 }
 0x1e4   : > { %v2788_v2 = vmul.f32 %v4563_v51, %v2640_v60  ;;  %v2790_v6 = vmul.f32 %v4565_v52, %v2683_v62  ;;  %v2642_v8 = vpop.f32.mrb[9].mxu0  ;;  %v2685_v4 = vpop.f32.mrb[9].mxu1  ;;  %v3715_v9 = vsel %vm2937_vm6, 1.0, %v4290_v7 }
 0x1e5   : > { %v2789_v11 = vmul.f32 %v4568_v55, %v2642_v8  ;;  %v2791_v5 = vmul.f32 %v4571_v56, %v2685_v4  ;;  %v2644_v12 = vpop.f32.mrb[10].mxu0  ;;  %v2687_v15 = vpop.f32.mrb[10].mxu1  ;;  %3739 = vmatprep.subr.msk.bf16.mxu0 %vm4602_vm4, %v3737_v46 }
 0x1e6   : > { %v2876_v16 = vadd.f32 %v4573_v61, %v2788_v2  ;;  %v2878_v14 = vadd.f32 %v4577_v3, %v2790_v6  ;;  %v2800_v18 = vmul.f32 %v4563_v51, %v2644_v12  ;;  %v2802_v20 = vmul.f32 %v4565_v52, %v2687_v15  ;;  %v2646_v21 = vpop.f32.mrb[11].mxu0  ;;  %v2689_v22 = vpop.f32.mrb[11].mxu1  ;;  %3742 = vmatpush1.bf16.msk.msra.mxu0 %vm4602_vm4, %v4599_v59 }
 0x1e7   : > { %v2877_v24 = vadd.f32 %v2847_v42, %v2789_v11  ;;  %v2879_v25 = vadd.f32 %v2855_v32, %v2791_v5  ;;  %v2801_v26 = vmul.f32 %v4568_v55, %v2646_v21  ;;  %v2803_v27 = vmul.f32 %v4571_v56, %v2689_v22 }
 0x1e8   : > { %v2900_v28 = vmax.f32 %v2876_v16, 0.0  ;;  %v2902_v35 = vmax.f32 %v2878_v14, 0.0  ;;  %v2888_v39 = vadd.f32 %v4573_v61, %v2800_v18  ;;  %v2890_v51 = vadd.f32 %v4577_v3, %v2802_v20 }
 0x1e9   : > { %v2901_v19 = vmax.f32 %v2877_v24, 0.0  ;;  %v2903_v52 = vmax.f32 %v2879_v25, 0.0  ;;  %v2889_v23 = vadd.f32 %v2847_v42, %v2801_v26  ;;  %v2891_v29 = vadd.f32 %v2855_v32, %v2803_v27  ;;  %3718 = vmatmul.mubr.msk.f32.vlgmr.msra.gmra.mrb[12].mxu0 %vm2940_vm5, %v4609_v13 }
 0x1ea   : > { %v2918_v30 = vmax.f32 %v2894_v58, %v2900_v28  ;;  %v2920_v40 = vmax.f32 %v2896_v63, %v2902_v35  ;;  %v2912_v31 = vmax.f32 %v2888_v39, 0.0  ;;  %v2914_v44 = vmax.f32 %v2890_v51, 0.0  ;;  %3169 = vmatprep.mubr.f32.mxu0 %v4290_v7 }
 0x1eb   : > { %v2919_v55 = vmax.f32 %v2895_v41, %v2901_v19  ;;  %v2921_v56 = vmax.f32 %v2897_v1, %v2903_v52  ;;  %v2913_v37 = vmax.f32 %v2889_v23, 0.0  ;;  %v2915_v49 = vmax.f32 %v2891_v29, 0.0 }
 0x1ec   : > { %v2924_v61 = vmax.f32 %v2906_v17, %v2912_v31  ;;  %v2926_v33 = vmax.f32 %v2908_v0, %v2914_v44 }
 0x1ed   : > { %v2925_v3 = vmax.f32 %v2907_v45, %v2913_v37  ;;  %v2927_v53 = vmax.f32 %v2909_v10, %v2915_v49 }
 0x1ee   : > { %v3746_v43 = vpack.c.bf16 %v2924_v61, %v2918_v30  ;;  %v3752_v54 = vpack.c.bf16 %v2926_v33, %v2920_v40 }
 0x1ef   : > { %v3743_v57 = vpack.c.bf16 %v2925_v3, %v2919_v55  ;;  %v3749_v42 = vpack.c.bf16 %v2927_v53, %v2921_v56 }
 0x1f1   : > { %3745 = vmatprep.subr.msk.bf16.mxu1 %vm4602_vm4, %v3743_v57  ;;  %3751 = vmatprep.subr.msk.bf16.mxu0 %vm4602_vm4, %v3749_v42 }
 0x1f2   : > { %3748 = vmatpush1.bf16.msk.msra.mxu1 %vm4602_vm4, %v3746_v43  ;;  %3754 = vmatpush1.bf16.msk.msra.mxu0 %vm4602_vm4, %v3752_v54 }
 0x1f3   : > { %3757 = vmatprep.subr.msk.bf16.mxu1 %vm4602_vm4, %v3737_v46  ;;  %3763 = vmatprep.subr.msk.bf16.mxu0 %vm4602_vm4, %v3743_v57 }
 0x1f5   : > { %3721 = vmatmul.mubr.msk.f32.vlgmr.msra.gmra.mrb[12].mxu1 %vm2940_vm5, %v4609_v13  ;;  %3724 = vmatmul.mubr.msk.f32.vlgmr.msra.gmra.mrb[14].mxu0 %vm2940_vm5, %v4609_v13 }
 0x1f6   : > { %3760 = vmatpush1.bf16.msk.msra.mxu1 %vm4602_vm4, %v4599_v59  ;;  %3766 = vmatpush1.bf16.msk.msra.mxu0 %vm4602_vm4, %v3746_v43 }
 0x1f7   : > { %3769 = vmatprep.subr.msk.bf16.mxu1 %vm4602_vm4, %v3749_v42  ;;  %3243 = vmatprep.mubr.f32.mxu1 %v4290_v7 }
 0x1f8   : > { %3314 = vmatprep.mubr.f32.mxu0 %v4290_v7 }
 0x1f9   : > { %3727 = vmatmul.mubr.msk.f32.vlgmr.msra.gmra.mrb[14].mxu1 %vm2940_vm5, %v3715_v9  ;;  %3730 = vmatmul.mubr.msk.f32.vlgmr.msra.gmra.mrb[16].mxu0 %vm2940_vm5, %v3715_v9 }
 0x1fa   : > { %3772 = vmatpush1.bf16.msk.msra.mxu1 %vm4602_vm4, %v3752_v54  ;;  %3385 = vmatprep.mubr.f32.mxu1 %v4290_v7 }
 0x1fd   : > { %3733 = vmatmul.mubr.msk.f32.vlgmr.msra.gmra.mrb[16].mxu1 %vm2940_vm5, %v3715_v9 }
 0x2bc   : > { %v3029_v47 = vpop.f32.mrb[12].mxu0 }
 0x2bd   : > { %v3031_v48 = vpop.f32.mrb[13].mxu0 }
 0x2c8   : > { %v3100_v38 = vpop.f32.mrb[12].mxu1  ;;  %v3171_v50 = vpop.f32.mrb[14].mxu0 }
 0x2c9   : > { %v3102_v32 = vpop.f32.mrb[13].mxu1  ;;  %v3173_v58 = vpop.f32.mrb[15].mxu0 }
 0x2cc   : > { %v3245_v59 = vpop.f32.mrb[14].mxu1  ;;  %v3316_v13 = vpop.f32.mrb[16].mxu0 }
 0x2cd   : > { %v3392_v41 = vmax.f32 %v3029_v47, %v3245_v59  ;;  %v3394_v34 = vmax.f32 %v3100_v38, %v3316_v13  ;;  %v3247_v17 = vpop.f32.mrb[15].mxu1  ;;  %v3318_v45 = vpop.f32.mrb[17].mxu0 }
 0x2ce   : > { %v3393_v7 = vmax.f32 %v3031_v48, %v3247_v17  ;;  %v3395_v46 = vmax.f32 %v3102_v32, %v3318_v45 }
 0x2cf   : > { %3398 = vst [vmem:[%s237_s16] sm:$0x3f] %v3392_v41  ;;  %3400 = vst [vmem:[%s237_s16 + $0x10] sm:$0x3f] %v3394_v34 }
 0x2d0   : > { %3399 = vst [vmem:[%s237_s16 + $0x8] sm:$0x3f] %v3393_v7  ;;  %3401 = vst [vmem:[%s237_s16 + $0x18] sm:$0x3f] %v3395_v46  ;;  %v3387_v60 = vpop.f32.mrb[16].mxu1 }
 0x2d1   : > { %v3396_v62 = vmax.f32 %v3171_v50, %v3387_v60  ;;  %v3389_v63 = vpop.f32.mrb[17].mxu1 }
 0x2d2   : > { %v3397_v1 = vmax.f32 %v3173_v58, %v3389_v63 }
 0x2d3   : > { %3402 = vst [vmem:[%s237_s16 + $0x20] sm:$0x3f] %v3396_v62 }
 0x2d4   : > { %3403 = vst [vmem:[%s237_s16 + $0x28] sm:$0x3f] %v3397_v1 }
 0x2d5 PF: > { %s16_s15 = sadd.s32 1, %s4282_s15  }
 0x2d6   : > { %p13_p3 = scmp.ge.s32.totalorder %s16_s15, 4  }
 0x2d8   :  { %15 = sbr.rel (!%p13_p3) target bundleno = 2 (0x2), region = 83 }
 0x2df   :  { %3425 = vsyncpa [#allocation3], 1 }
 0x2e0   :  { %3427 = vsyncpa [#allocation3 + $0x1], 1 }
 0x2e1   :  { %3428 = vsyncpa [#allocation5], 1 }

// kernel: net_conv_dense_forward.4
= control target key start
LH: loop header
LB: loop body
LE: loop exit
PB: predicated region body
PF: predicated region fallthrough
CT: control target
= control target key end

     0   :  { %9 = vsyncpa [#allocation3], 0  ;;  %s5831_s0 = inlined_call_operand.vmem [shape: f32[2,6,768], index: 0, kind: input, shape index: {}]   ;;  %s5832_s1 = inlined_call_operand.hbm [shape: bf16[5,768,256], index: 1, kind: input, shape index: {}]   ;;  %s5833_s2 = inlined_call_operand.hbm [shape: f32[1,256], index: 2, kind: input, shape index: {}]   ;;  %s5834_s3 = inlined_call_operand.hbm [shape: f32[1,256], index: 3, kind: input, shape index: {}]   ;;  %s5835_s4 = inlined_call_operand.vmem [shape: f32[2,1,128], index: 4, kind: output, shape index: {}]  }
   0x1   :  { %10 = vsyncpa [#allocation5], 0  ;;  %s5675_s15 = smov 0  }
   0x2 LB: > { %s5643_s16 = smov [#allocation4]   ;;  %s5681_s18 = sadd.s32 4294967295, %s5641_s15   ;;  %s5641_s15 = sphi %s5675_s15, %s16_s15  }
   0x3   : > { %s162_s17 = sshll.u32 %s5643_s16, 4  ;;  %p4213_p0 = scmp.ge.s32.totalorder %s5641_s15, 1  ;;  %s163_s17 = int_to_ptr.vmem [resolvable:$true] %s162_s17 }
   0x4   : > { %p136_p1 = scmp.lt.s32.totalorder %s5641_s15, 3  ;;  %p5836_p2 = scmp.eq.s32.totalorder %s5681_s18, 0 }
   0x5   : > { %s5644_s20 = smov [#allocation2]   ;;  %s5645_s23 = smov [#allocation6]  }
   0x6   : > { %p5686_p3 = pnand %p4213_p0, %p136_p1  ;;  %s148_s21 = sshll.u32 %s5644_s20, 4  ;;  %s5698_s21 = int_to_ptr.vmem [resolvable:$true] %s148_s21 }
   0x7   : > { %s173_s24 = sshll.u32 %s5645_s23, 4  ;;  %s5543_s27 = scalar_lea.hbm %s5833_s2, 32  ;;  %s5700_s24 = int_to_ptr.vmem [resolvable:$true] %s173_s24 }
   0x8   : > { %s5838_s19 = scalar_select %p5686_p3, 1, 0 }
   0x9   : > { %p4792_p4 = pneg %p5686_p3  ;;  %p5544_p6 = scmp.ne.s32.totalorder %s5833_s2, %s5543_s27 }
   0xa   : > { %p5550_p10 = scmp.lt.u32.totalorder %s5543_s27, %s5833_s2 }
   0xb   : > { %p5694_p5 = pnand %p5836_p2, %p4792_p4 }
   0xd   : > { %p5710_p7 = pneg %p5694_p5 }
   0xf   : > { %p5546_p8 = pnand %p5710_p7, %p5544_p6 }
  0x11   : > { %p5547_p9 = pneg %p5546_p8 }
  0x13   : > { %p5552_p11 = pnand %p5550_p10, %p5547_p9 }
  0x15   : > { %5555 = shalt.err (!%p5552_p11)
}
  0x16   : > { %s5556_s7 = scalar_lea.vmem %s163_s17, 32  ;;  %p5564_p1 = scmp.lt.s32.totalorder %s163_s17, %s163_s17 }
  0x17   : > { %p5557_p12 = scmp.ne.s32.totalorder %s163_s17, %s5556_s7  ;;  %p5565_p4 = scmp.lt.s32.totalorder %s5556_s7, %s5556_s7 }
  0x19   : > { %p5559_p13 = pnand %p5557_p12, %p5710_p7  ;;  %p5566_p2 = por %p5565_p4, %p5564_p1 }
  0x1b   : > { %p5560_p0 = pneg %p5559_p13 }
  0x1d   : > { %p5567_p3 = pnand %p5566_p2, %p5560_p0 }
  0x1f   : > { %5570 = shalt.err (!%p5567_p3)
}
  0x20   : > { %4798 = dma.hbm_to_vmem [thread:$0]  (!%p5694_p5), %s5833_s2, 32, %s163_s17, [#allocation5]  }
  0x21   : > { %s5571_s12 = scalar_lea.hbm %s5832_s1, 61440 }
  0x22   : > { %p5572_p6 = scmp.ne.s32.totalorder %s5832_s1, %s5571_s12  ;;  %p5578_p2 = scmp.lt.u32.totalorder %s5571_s12, %s5832_s1 }
  0x24   : > { %p5574_p8 = pnand %p5572_p6, %p5710_p7 }
  0x26   : > { %p5575_p9 = pneg %p5574_p8 }
  0x28   : > { %p5580_p3 = pnand %p5578_p2, %p5575_p9 }
  0x2a   : > { %5583 = shalt.err (!%p5580_p3)
}
  0x2b   : > { %s5584_s17 = scalar_lea.vmem %s5698_s21, 61440  ;;  %p5592_p13 = scmp.lt.s32.totalorder %s5698_s21, %s5698_s21 }
  0x2c   : > { %p5585_p10 = scmp.ne.s32.totalorder %s5698_s21, %s5584_s17  ;;  %p5593_p0 = scmp.lt.s32.totalorder %s5584_s17, %s5584_s17 }
  0x2e   : > { %p5587_p11 = pnand %p5585_p10, %p5710_p7  ;;  %p5594_p1 = por %p5593_p0, %p5592_p13 }
  0x30   : > { %p5588_p12 = pneg %p5587_p11 }
  0x32   : > { %p5595_p4 = pnand %p5594_p1, %p5588_p12 }
  0x34   : > { %5598 = shalt.err (!%p5595_p4)
}
  0x35   : > { %s5646_s23 = smov 128   ;;  %s5647_s25 = smov 8  }
  0x36   : > { %4795 = dma.hbm_to_vmem [thread:$0]  (!%p5694_p5), %s5832_s1, 61440, %s5698_s21, [#allocation3], %s5646_s23, %s5646_s23, %s5647_s25  }
  0x37   : > { %s5599_s5 = scalar_lea.hbm %s5834_s3, 32 }
  0x38   : > { %p5600_p6 = scmp.ne.s32.totalorder %s5834_s3, %s5599_s5  ;;  %p5606_p2 = scmp.lt.u32.totalorder %s5599_s5, %s5834_s3 }
  0x3a   : > { %p5602_p8 = pnand %p5600_p6, %p5710_p7 }
  0x3c   : > { %p5603_p9 = pneg %p5602_p8 }
  0x3e   : > { %p5608_p3 = pnand %p5606_p2, %p5603_p9 }
  0x40   : > { %5611 = shalt.err (!%p5608_p3)
}
  0x41   : > { %s5612_s21 = scalar_lea.vmem %s5700_s24, 32  ;;  %p5620_p13 = scmp.lt.s32.totalorder %s5700_s24, %s5700_s24 }
  0x42   : > { %p5613_p10 = scmp.ne.s32.totalorder %s5700_s24, %s5612_s21  ;;  %p5621_p0 = scmp.lt.s32.totalorder %s5612_s21, %s5612_s21 }
  0x44   : > { %p5615_p11 = pnand %p5613_p10, %p5710_p7  ;;  %p5622_p1 = por %p5621_p0, %p5620_p13 }
  0x46   : > { %p5616_p12 = pneg %p5615_p11 }
  0x48   : > { %p5623_p4 = pnand %p5622_p1, %p5616_p12 }
  0x4a   : > { %5626 = shalt.err (!%p5623_p4)
}
  0x4b   : > { %4801 = dma.hbm_to_vmem [thread:$0]  (!%p5694_p5), %s5834_s3, 32, %s5700_s24, [#allocation5]  }
  0x4c   : > { %p5841_p6 = scmp.ne.s32.totalorder %s5838_s19, 0 }
  0x4d   : > { %p5842_p8 = scmp.eq.s32.totalorder (!%p5841_p6), %s5681_s18, 0 }
  0x4e   : > { %194 = sbr.rel (%p5841_p6) target bundleno = 1047 (0x417), region = 36 }
  0x55   : > { %5632 = dma.done.wait (%p5842_p8), [#allocation3], 61440   ;;  %p5843_p7 = pmov %p5842_p8 }
  0x57   : > { %5634 = vsyncadd (%p5843_p7), [#allocation3], 4294905856  ;;  %p5844_p9 = pmov %p5843_p7 }
  0x58   : > { %p5845_p2 = pmov %p5843_p7 }
  0x59   : > { %5636 = dma.done.wait (%p5844_p9), [#allocation5], 64  }
  0x5a   : > { %5638 = vsyncadd (%p5845_p2), [#allocation5], 4294967232  ;;  %v4823_v0 = vld [vmem:[#allocation2 + $0x304] ss:$8 sps:$4 sm:$0xff]   ;;  %v4827_v2 = vld [vmem:[#allocation2 + $0x300] ss:$8 sps:$4 sm:$0xff]  }
  0x5b   : > { %v4825_v1 = vld [vmem:[#allocation2 + $0x704] ss:$8 sps:$4 sm:$0xff]   ;;  %979 = vmatprep.subr.bf16.mxu1 %v4823_v0  ;;  %v4828_v3 = vld [vmem:[#allocation2 + $0x700] ss:$8 sps:$4 sm:$0xff]   ;;  %v4829_v4 = vld [vmem:[#allocation2 + $0x314] ss:$8 sps:$4 sm:$0xff]  }
  0x5c   : > { %2353 = vmatprep.subr.bf16.mxu0 %v4825_v1  ;;  %980 = vmatpush1.bf16.msra.mxu1 %v4827_v2  ;;  %v4831_v5 = vld [vmem:[#allocation2 + $0x714] ss:$8 sps:$4 sm:$0xff]   ;;  %v4833_v6 = vld [vmem:[#allocation2 + $0x310] ss:$8 sps:$4 sm:$0xff]   ;;  %v4835_v8 = vld [vmem:[#allocation2 + $0x324] ss:$8 sps:$4 sm:$0xff]  }
  0x5d   : > { %2354 = vmatpush1.bf16.msra.mxu0 %v4828_v3  ;;  %981 = vmatprep.subr.bf16.mxu1 %v4829_v4  ;;  %v4834_v7 = vld [vmem:[#allocation2 + $0x710] ss:$8 sps:$4 sm:$0xff]   ;;  %v4837_v9 = vld [vmem:[#allocation2 + $0x724] ss:$8 sps:$4 sm:$0xff]   ;;  %v4839_v10 = vld [vmem:[#allocation2 + $0x320] ss:$8 sps:$4 sm:$0xff]  }
  0x5e   : > { %2355 = vmatprep.subr.bf16.mxu0 %v4831_v5  ;;  %v4840_v11 = vld [vmem:[#allocation2 + $0x720] ss:$8 sps:$4 sm:$0xff]   ;;  %v4841_v12 = vld [vmem:[#allocation2 + $0x334] ss:$8 sps:$4 sm:$0xff]   ;;  %v4845_v14 = vld [vmem:[#allocation2 + $0x330] ss:$8 sps:$4 sm:$0xff]  }
  0x5f   : > { %v4843_v13 = vld [vmem:[#allocation2 + $0x734] ss:$8 sps:$4 sm:$0xff]   ;;  %v4846_v15 = vld [vmem:[#allocation2 + $0x730] ss:$8 sps:$4 sm:$0xff]   ;;  %v4847_v16 = vld [vmem:[#allocation2 + $0x344] ss:$8 sps:$4 sm:$0xff]  }
  0x60   : > { %982 = vmatpush1.bf16.msra.mxu1 %v4833_v6  ;;  %v4849_v17 = vld [vmem:[#allocation2 + $0x744] ss:$8 sps:$4 sm:$0xff]   ;;  %v4851_v18 = vld [vmem:[#allocation2 + $0x340] ss:$8 sps:$4 sm:$0xff]   ;;  %v4853_v20 = vld [vmem:[#allocation2 + $0x354] ss:$8 sps:$4 sm:$0xff]  }
  0x61   : > { %2356 = vmatpush1.bf16.msra.mxu0 %v4834_v7  ;;  %983 = vmatprep.subr.bf16.mxu1 %v4835_v8  ;;  %v4852_v19 = vld [vmem:[#allocation2 + $0x740] ss:$8 sps:$4 sm:$0xff]   ;;  %v4855_v21 = vld [vmem:[#allocation2 + $0x754] ss:$8 sps:$4 sm:$0xff]   ;;  %v4857_v22 = vld [vmem:[#allocation2 + $0x350] ss:$8 sps:$4 sm:$0xff]  }
  0x62   : > { %2357 = vmatprep.subr.bf16.mxu0 %v4837_v9  ;;  %v4858_v23 = vld [vmem:[#allocation2 + $0x750] ss:$8 sps:$4 sm:$0xff]   ;;  %v4859_v24 = vld [vmem:[#allocation2 + $0x364] ss:$8 sps:$4 sm:$0xff]   ;;  %v4863_v26 = vld [vmem:[#allocation2 + $0x360] ss:$8 sps:$4 sm:$0xff]  }
  0x63   : > { %v4861_v25 = vld [vmem:[#allocation2 + $0x764] ss:$8 sps:$4 sm:$0xff]   ;;  %v4864_v27 = vld [vmem:[#allocation2 + $0x760] ss:$8 sps:$4 sm:$0xff]   ;;  %v4865_v28 = vld [vmem:[#allocation2 + $0x374] ss:$8 sps:$4 sm:$0xff]  }
  0x64   : > { %984 = vmatpush1.bf16.msra.mxu1 %v4839_v10  ;;  %v4867_v29 = vld [vmem:[#allocation2 + $0x774] ss:$8 sps:$4 sm:$0xff]   ;;  %v4869_v30 = vld [vmem:[#allocation2 + $0x370] ss:$8 sps:$4 sm:$0xff]   ;;  %p226_p5 = scmp.lt.s32.totalorder %s5681_s18, 1  ;;  %vm5649_vm0 = vmmov 0  }
  0x65   : > { %2358 = vmatpush1.bf16.msra.mxu0 %v4840_v11  ;;  %985 = vmatprep.subr.bf16.mxu1 %v4841_v12  ;;  %v4870_v31 = vld [vmem:[#allocation2 + $0x770] ss:$8 sps:$4 sm:$0xff]   ;;  %v4871_v32 = vld [vmem:[#allocation2 + $0x384] ss:$8 sps:$4 sm:$0xff]   ;;  %v4875_v34 = vld [vmem:[#allocation2 + $0x380] ss:$8 sps:$4 sm:$0xff]  }
  0x66   : > { %2359 = vmatprep.subr.bf16.mxu0 %v4843_v13  ;;  %v4873_v33 = vld [vmem:[#allocation2 + $0x784] ss:$8 sps:$4 sm:$0xff]   ;;  %v4876_v35 = vld [vmem:[#allocation2 + $0x780] ss:$8 sps:$4 sm:$0xff]   ;;  %s5847_s18 = smov (!%p226_p5, %s5681_s18), 1  ;;  %vm3984_vm2 = vcmask 1041408  }
  0x67   : > { %v4877_v36 = vld [vmem:[#allocation2 + $0x394] ss:$8 sps:$4 sm:$0xff]   ;;  %v4881_v38 = vld [vmem:[#allocation2 + $0x390] ss:$8 sps:$4 sm:$0xff]   ;;  %s4779_s19 = smul.u32 48, %s5847_s18  ;;  %vm3980_vm3 = vcmask 15360   ;;  %s233_s14 = scalar_lea.vmem %s5835_s4, %s5847_s18 }
  0x68   : > { %986 = vmatpush1.bf16.msra.mxu1 %v4845_v14  ;;  %v4879_v37 = vld [vmem:[#allocation2 + $0x794] ss:$8 sps:$4 sm:$0xff]   ;;  %v4882_v39 = vld [vmem:[#allocation2 + $0x790] ss:$8 sps:$4 sm:$0xff]   ;;  %v4883_v40 = vld [vmem:[#allocation2 + $0x3a4] ss:$8 sps:$4 sm:$0xff]  }
  0x69   : > { %2360 = vmatpush1.bf16.msra.mxu0 %v4846_v15  ;;  %987 = vmatprep.subr.bf16.mxu1 %v4847_v16  ;;  %v4885_v41 = vld [vmem:[#allocation2 + $0x7a4] ss:$8 sps:$4 sm:$0xff]   ;;  %v4887_v42 = vld [vmem:[#allocation2 + $0x3a0] ss:$8 sps:$4 sm:$0xff]   ;;  %s5790_s30 = scalar_lea.vmem %s5831_s0, %s4779_s19  ;;  %v4889_v44 = vld [vmem:[#allocation2 + $0x3b4] ss:$8 sps:$4 sm:$0xff]  }
  0x6a   : > { %2361 = vmatprep.subr.bf16.mxu0 %v4849_v17  ;;  %v4888_v43 = vld [vmem:[#allocation2 + $0x7a0] ss:$8 sps:$4 sm:$0xff]   ;;  %v4891_v45 = vld [vmem:[#allocation2 + $0x7b4] ss:$8 sps:$4 sm:$0xff]   ;;  %v4893_v46 = vld [vmem:[#allocation2 + $0x3b0] ss:$8 sps:$4 sm:$0xff]  }
  0x6b   : > { %v343_v47 = vld [vmem:[%s5790_s30 + $0x8] sm:$0x6]  ;;  %v4894_v48 = vld [vmem:[#allocation2 + $0x7b0] ss:$8 sps:$4 sm:$0xff]   ;;  %v4895_v50 = vld [vmem:[#allocation2 + $0x3c4] ss:$8 sps:$4 sm:$0xff]  }
  0x6c   : > { %988 = vmatpush1.bf16.msra.mxu1 %v4851_v18  ;;  %v349_v49 = vpack.c.bf16 %v343_v47, %v343_v47  ;;  %v1708_v51 = vld [vmem:[%s5790_s30 + $0x18] sm:$0xc]  ;;  %v4897_v52 = vld [vmem:[#allocation2 + $0x7c4] ss:$8 sps:$4 sm:$0xff]   ;;  %v4899_v56 = vld [vmem:[#allocation2 + $0x3c0] ss:$8 sps:$4 sm:$0xff]  }
  0x6d   : > { %2362 = vmatpush1.bf16.msra.mxu0 %v4852_v19  ;;  %989 = vmatprep.subr.bf16.mxu1 %v4853_v20  ;;  %v1714_v55 = vpack.c.bf16 %v1708_v51, %v1708_v51  ;;  %v4900_v59 = vld [vmem:[#allocation2 + $0x7c0] ss:$8 sps:$4 sm:$0xff]   ;;  %v4901_v61 = vld [vmem:[#allocation2 + $0x3d4] ss:$8 sps:$4 sm:$0xff]   ;;  %v4905_v0 = vld [vmem:[#allocation2 + $0x3d0] ss:$8 sps:$4 sm:$0xff]  }
  0x6e   : > { %2363 = vmatprep.subr.bf16.mxu0 %v4855_v21  ;;  %v459_v53 = vshrl.u32 %v349_v49, 16  ;;  %v461_v54 = vshll.u32 %v349_v49, 16  ;;  %v342_v60 = vld [vmem:[%s5790_s30] sm:$0x6]  ;;  %v4903_v62 = vld [vmem:[#allocation2 + $0x7d4] ss:$8 sps:$4 sm:$0xff]  }
  0x6f   : > { %v1823_v58 = vrot.slane %v1714_v55, 1  ;;  %v348_v1 = vpack.c.bf16 %v342_v60, %v342_v60  ;;  %v4906_v2 = vld [vmem:[#allocation2 + $0x7d0] ss:$8 sps:$4 sm:$0xff]   ;;  %v4907_v3 = vld [vmem:[#allocation2 + $0x3e4] ss:$8 sps:$4 sm:$0xff]  }
  0x70   : > { %990 = vmatpush1.bf16.msra.mxu1 %v4857_v22  ;;  %v463_v57 = vrot.slane %v461_v54, 1  ;;  %v4909_v4 = vld [vmem:[#allocation2 + $0x7e4] ss:$8 sps:$4 sm:$0xff]   ;;  %v4911_v5 = vld [vmem:[#allocation2 + $0x3e0] ss:$8 sps:$4 sm:$0xff]  }
  0x71   : > { %2364 = vmatpush1.bf16.msra.mxu0 %v4858_v23  ;;  %991 = vmatprep.subr.bf16.mxu1 %v4859_v24  ;;  %v4912_v6 = vld [vmem:[#allocation2 + $0x7e0] ss:$8 sps:$4 sm:$0xff]   ;;  %v454_v7 = vshll.u32 %v348_v1, 16  ;;  %v1707_v8 = vld [vmem:[%s5790_s30 + $0x10] sm:$0xc]  ;;  %v452_v12 = vshrl.u32 %v348_v1, 16 }
  0x72   : > { %2365 = vmatprep.subr.bf16.mxu0 %v4861_v25  ;;  %v464_v63 = vor.u32 %v463_v57, %v459_v53  ;;  %2385 = vmatprep.mubr.bf16.mxu0 %v1823_v58  ;;  %v4913_v9 = vld [vmem:[#allocation2 + $0x3f4] ss:$8 sps:$4 sm:$0xff]   ;;  %v4917_v11 = vld [vmem:[#allocation2 + $0x3f0] ss:$8 sps:$4 sm:$0xff]   ;;  %v1713_v14 = vpack.c.bf16 %v1707_v8, %v1707_v8  ;;  %v4921_v16 = vld [vmem:[#allocation2 + $0x404] ss:$8 sps:$4 sm:$0xff]  }
  0x73   : > { %v4915_v10 = vld [vmem:[#allocation2 + $0x7f4] ss:$8 sps:$4 sm:$0xff]   ;;  %v456_v13 = vrot.slane %v454_v7, 1  ;;  %v4918_v15 = vld [vmem:[#allocation2 + $0x7f0] ss:$8 sps:$4 sm:$0xff]  }
  0x74   : > { %992 = vmatpush1.bf16.msra.mxu1 %v4863_v26  ;;  %1011 = vmatprep.mubr.bf16.mxu1 %v464_v63  ;;  %v4924_v17 = vld [vmem:[#allocation2 + $0x804] ss:$8 sps:$4 sm:$0xff]   ;;  %v4919_v18 = vld [vmem:[#allocation2 + $0x400] ss:$8 sps:$4 sm:$0xff]   ;;  %v1822_v20 = vrot.slane %v1713_v14, 1 }
  0x75   : > { %2366 = vmatpush1.bf16.msra.mxu0 %v4864_v27  ;;  %993 = vmatprep.subr.bf16.mxu1 %v4865_v28  ;;  %v457_v19 = vor.u32 %v456_v13, %v452_v12  ;;  %v4922_v21 = vld [vmem:[#allocation2 + $0x800] ss:$8 sps:$4 sm:$0xff]   ;;  %v4927_v22 = vld [vmem:[#allocation2 + $0x414] ss:$8 sps:$4 sm:$0xff]   ;;  %v4925_v24 = vld [vmem:[#allocation2 + $0x410] ss:$8 sps:$4 sm:$0xff]  }
  0x76   : > { %2367 = vmatprep.subr.bf16.mxu0 %v4867_v29  ;;  %v4930_v23 = vld [vmem:[#allocation2 + $0x814] ss:$8 sps:$4 sm:$0xff]   ;;  %v4928_v25 = vld [vmem:[#allocation2 + $0x810] ss:$8 sps:$4 sm:$0xff]   ;;  %v4933_v26 = vld [vmem:[#allocation2 + $0x424] ss:$8 sps:$4 sm:$0xff]  }
  0x77   : > { %v4936_v27 = vld [vmem:[#allocation2 + $0x824] ss:$8 sps:$4 sm:$0xff]   ;;  %v4931_v28 = vld [vmem:[#allocation2 + $0x420] ss:$8 sps:$4 sm:$0xff]   ;;  %v4963_v47 = vld [vmem:[#allocation2 + $0x474] ss:$8 sps:$4 sm:$0xff]  }
  0x78   : > { %994 = vmatpush1.bf16.msra.mxu1 %v4869_v30  ;;  %v4934_v29 = vld [vmem:[#allocation2 + $0x820] ss:$8 sps:$4 sm:$0xff]   ;;  %v4939_v30 = vld [vmem:[#allocation2 + $0x434] ss:$8 sps:$4 sm:$0xff]   ;;  %v4961_v54 = vld [vmem:[#allocation2 + $0x470] ss:$8 sps:$4 sm:$0xff]  }
  0x79   : > { %2368 = vmatpush1.bf16.msra.mxu0 %v4870_v31  ;;  %995 = vmatprep.subr.bf16.mxu1 %v4871_v32  ;;  %v4942_v31 = vld [vmem:[#allocation2 + $0x834] ss:$8 sps:$4 sm:$0xff]   ;;  %v4937_v32 = vld [vmem:[#allocation2 + $0x430] ss:$8 sps:$4 sm:$0xff]   ;;  %v1710_v49 = vld [vmem:[%s5790_s30 + $0x28] sm:$0xc] }
  0x7a   : > { %2369 = vmatprep.subr.bf16.mxu0 %v4873_v33  ;;  %v4940_v33 = vld [vmem:[#allocation2 + $0x830] ss:$8 sps:$4 sm:$0xff]   ;;  %v1716_v51 = vpack.c.bf16 %v1710_v49, %v1710_v49  ;;  %v4969_v57 = vld [vmem:[#allocation2 + $0x484] ss:$8 sps:$4 sm:$0xff]   ;;  %v4975_v63 = vld [vmem:[#allocation2 + $0x494] ss:$8 sps:$4 sm:$0xff]  }
  0x7b   : > { %v4973_v1 = vld [vmem:[#allocation2 + $0x490] ss:$8 sps:$4 sm:$0xff]   ;;  %v4987_v7 = vld [vmem:[#allocation2 + $0x4b4] ss:$8 sps:$4 sm:$0xff]   ;;  %v4996_v12 = vld [vmem:[#allocation2 + $0x8c4] ss:$8 sps:$4 sm:$0xff]  }
  0x7c   : > { %996 = vmatpush1.bf16.msra.mxu1 %v4875_v34  ;;  %v4945_v34 = vld [vmem:[#allocation2 + $0x444] ss:$8 sps:$4 sm:$0xff]   ;;  %v1825_v55 = vrot.slane %v1716_v51, 1  ;;  %v4990_v8 = vld [vmem:[#allocation2 + $0x8b4] ss:$8 sps:$4 sm:$0xff]  }
  0x7d   : > { %2370 = vmatpush1.bf16.msra.mxu0 %v4876_v35  ;;  %997 = vmatprep.subr.bf16.mxu1 %v4877_v36  ;;  %v4948_v35 = vld [vmem:[#allocation2 + $0x844] ss:$8 sps:$4 sm:$0xff]   ;;  %v4943_v36 = vld [vmem:[#allocation2 + $0x440] ss:$8 sps:$4 sm:$0xff]  }
  0x7e   : > { %2371 = vmatprep.subr.bf16.mxu0 %v4879_v37  ;;  %v4946_v37 = vld [vmem:[#allocation2 + $0x840] ss:$8 sps:$4 sm:$0xff]  }
  0x7f   : > { %v4991_v13 = vld [vmem:[#allocation2 + $0x4c0] ss:$8 sps:$4 sm:$0xff]  }
  0x80   : > { %998 = vmatpush1.bf16.msra.mxu1 %v4881_v38  ;;  %v4951_v38 = vld [vmem:[#allocation2 + $0x454] ss:$8 sps:$4 sm:$0xff]   ;;  %v4994_v14 = vld [vmem:[#allocation2 + $0x8c0] ss:$8 sps:$4 sm:$0xff]  }
  0x81   : > { %2372 = vmatpush1.bf16.msra.mxu0 %v4882_v39  ;;  %999 = vmatprep.subr.bf16.mxu1 %v4883_v40  ;;  %v4954_v39 = vld [vmem:[#allocation2 + $0x854] ss:$8 sps:$4 sm:$0xff]   ;;  %v4949_v40 = vld [vmem:[#allocation2 + $0x450] ss:$8 sps:$4 sm:$0xff]  }
  0x82   : > { %2373 = vmatprep.subr.bf16.mxu0 %v4885_v41  ;;  %v4952_v41 = vld [vmem:[#allocation2 + $0x850] ss:$8 sps:$4 sm:$0xff]  }
  0x84   : > { %1000 = vmatpush1.bf16.msra.mxu1 %v4887_v42  ;;  %v4957_v42 = vld [vmem:[#allocation2 + $0x464] ss:$8 sps:$4 sm:$0xff]  }
  0x85   : > { %2374 = vmatpush1.bf16.msra.mxu0 %v4888_v43  ;;  %1001 = vmatprep.subr.bf16.mxu1 %v4889_v44  ;;  %v4960_v43 = vld [vmem:[#allocation2 + $0x864] ss:$8 sps:$4 sm:$0xff]   ;;  %v4955_v44 = vld [vmem:[#allocation2 + $0x460] ss:$8 sps:$4 sm:$0xff]  }
  0x86   : > { %2375 = vmatprep.subr.bf16.mxu0 %v4891_v45  ;;  %v345_v45 = vld [vmem:[%s5790_s30 + $0x18] sm:$0x6] }
  0x88   : > { %1002 = vmatpush1.bf16.msra.mxu1 %v4893_v46  ;;  %v4958_v46 = vld [vmem:[#allocation2 + $0x860] ss:$8 sps:$4 sm:$0xff]  }
  0x89   : > { %2376 = vmatpush1.bf16.msra.mxu0 %v4894_v48  ;;  %1003 = vmatprep.subr.bf16.mxu1 %v4895_v50  ;;  %v351_v48 = vpack.c.bf16 %v345_v45, %v345_v45  ;;  %v4966_v50 = vld [vmem:[#allocation2 + $0x874] ss:$8 sps:$4 sm:$0xff]   ;;  %v5029_v45 = vld [vmem:[#allocation2 + $0x524] ss:$8 sps:$4 sm:$0xff]  }
  0x8a   : > { %2377 = vmatprep.subr.bf16.mxu0 %v4897_v52 }
  0x8b   : > { %v473_v52 = vshrl.u32 %v351_v48, 16  ;;  %v475_v53 = vshll.u32 %v351_v48, 16  ;;  %v2438_v48 = vld [vmem:[%s5790_s30 + $0x8] sm:$0x18] }
  0x8c   : > { %1004 = vmatpush1.bf16.msra.mxu1 %v4899_v56  ;;  %v4964_v56 = vld [vmem:[#allocation2 + $0x870] ss:$8 sps:$4 sm:$0xff]   ;;  %v2444_v51 = vpack.c.bf16 %v2438_v48, %v2438_v48 }
  0x8d   : > { %2378 = vmatpush1.bf16.msra.mxu0 %v4900_v59  ;;  %1005 = vmatprep.subr.bf16.mxu1 %v4901_v61  ;;  %v477_v58 = vrot.slane %v475_v53, 1  ;;  %v4972_v59 = vld [vmem:[#allocation2 + $0x884] ss:$8 sps:$4 sm:$0xff]   ;;  %v4967_v61 = vld [vmem:[#allocation2 + $0x480] ss:$8 sps:$4 sm:$0xff]  }
  0x8e   : > { %2379 = vmatprep.subr.bf16.mxu0 %v4903_v62  ;;  %v4970_v62 = vld [vmem:[#allocation2 + $0x880] ss:$8 sps:$4 sm:$0xff]  }
  0x8f   : > { %v478_v60 = vor.u32 %v477_v58, %v473_v52  ;;  %v5027_v52 = vld [vmem:[#allocation2 + $0x520] ss:$8 sps:$4 sm:$0xff]   ;;  %v5038_v58 = vld [vmem:[#allocation2 + $0x934] ss:$8 sps:$4 sm:$0xff]  }
  0x90   : > { %1006 = vmatpush1.bf16.msra.mxu1 %v4905_v0  ;;  %v4978_v0 = vld [vmem:[#allocation2 + $0x894] ss:$8 sps:$4 sm:$0xff]   ;;  %v5030_v53 = vld [vmem:[#allocation2 + $0x920] ss:$8 sps:$4 sm:$0xff]  }
  0x91   : > { %2380 = vmatpush1.bf16.msra.mxu0 %v4906_v2  ;;  %1007 = vmatprep.subr.bf16.mxu1 %v4907_v3  ;;  %v4976_v2 = vld [vmem:[#allocation2 + $0x890] ss:$8 sps:$4 sm:$0xff]   ;;  %v4981_v3 = vld [vmem:[#allocation2 + $0x4a4] ss:$8 sps:$4 sm:$0xff]  }
  0x92   : > { %2381 = vmatprep.subr.bf16.mxu0 %v4909_v4  ;;  %v4984_v4 = vld [vmem:[#allocation2 + $0x8a4] ss:$8 sps:$4 sm:$0xff]  }
  0x94   : > { %1008 = vmatpush1.bf16.msra.mxu1 %v4911_v5  ;;  %v4979_v5 = vld [vmem:[#allocation2 + $0x4a0] ss:$8 sps:$4 sm:$0xff]  }
  0x95   : > { %2382 = vmatpush1.bf16.msra.mxu0 %v4912_v6  ;;  %1009 = vmatprep.subr.bf16.mxu1 %v4913_v9  ;;  %v4982_v6 = vld [vmem:[#allocation2 + $0x8a0] ss:$8 sps:$4 sm:$0xff]   ;;  %v4985_v9 = vld [vmem:[#allocation2 + $0x4b0] ss:$8 sps:$4 sm:$0xff]  }
  0x96   : > { %2383 = vmatprep.subr.bf16.mxu0 %v4915_v10  ;;  %v4988_v10 = vld [vmem:[#allocation2 + $0x8b0] ss:$8 sps:$4 sm:$0xff]  }
  0x98   : > { %1010 = vmatpush1.bf16.msra.mxu1 %v4917_v11  ;;  %v4993_v11 = vld [vmem:[#allocation2 + $0x4c4] ss:$8 sps:$4 sm:$0xff]  }
  0x99   : > { %2384 = vmatpush1.bf16.msra.mxu0 %v4918_v15  ;;  %1020 = vmatprep.subr.bf16.mxu1 %v4921_v16  ;;  %v344_v15 = vld [vmem:[%s5790_s30 + $0x10] sm:$0x6]  ;;  %v4999_v16 = vld [vmem:[#allocation2 + $0x4d4] ss:$8 sps:$4 sm:$0xff]  }
  0x9a   : > { %2394 = vmatprep.subr.bf16.mxu0 %v4924_v17  ;;  %v5002_v17 = vld [vmem:[#allocation2 + $0x8d4] ss:$8 sps:$4 sm:$0xff]  }
  0x9b   : > { %1012 = vmatmul.mubr.bf16.vlgmr.msra.gmra.mrb[0].mxu1 %v457_v19  ;;  %v4997_v19 = vld [vmem:[#allocation2 + $0x4d0] ss:$8 sps:$4 sm:$0xff]  }
  0x9c   : > { %2386 = vmatmul.mubr.bf16.vlgmr.msra.gmra.mrb[0].mxu0 %v1822_v20  ;;  %1021 = vmatpush1.bf16.msra.mxu1 %v4919_v18  ;;  %v350_v18 = vpack.c.bf16 %v344_v15, %v344_v15  ;;  %v5000_v20 = vld [vmem:[#allocation2 + $0x8d0] ss:$8 sps:$4 sm:$0xff]  }
  0x9d   : > { %2395 = vmatpush1.bf16.msra.mxu0 %v4922_v21  ;;  %1022 = vmatprep.subr.bf16.mxu1 %v4927_v22  ;;  %v5005_v21 = vld [vmem:[#allocation2 + $0x4e4] ss:$8 sps:$4 sm:$0xff]   ;;  %v5057_v15 = vld [vmem:[#allocation2 + $0x570] ss:$8 sps:$4 sm:$0xff]  }
  0x9e   : > { %2396 = vmatprep.subr.bf16.mxu0 %v4930_v23  ;;  %2426 = vmatprep.mubr.bf16.mxu0 %v1825_v55  ;;  %v5008_v22 = vld [vmem:[#allocation2 + $0x8e4] ss:$8 sps:$4 sm:$0xff]   ;;  %v5003_v23 = vld [vmem:[#allocation2 + $0x4e0] ss:$8 sps:$4 sm:$0xff]  }
  0x9f   : > { %1052 = vmatprep.mubr.bf16.mxu1 %v478_v60 }
  0xa0   : > { %1023 = vmatpush1.bf16.msra.mxu1 %v4925_v24  ;;  %v468_v24 = vshll.u32 %v350_v18, 16 }
  0xa1   : > { %2397 = vmatpush1.bf16.msra.mxu0 %v4928_v25  ;;  %1024 = vmatprep.subr.bf16.mxu1 %v4933_v26  ;;  %v5006_v25 = vld [vmem:[#allocation2 + $0x8e0] ss:$8 sps:$4 sm:$0xff]  }
  0xa2   : > { %2398 = vmatprep.subr.bf16.mxu0 %v4936_v27  ;;  %v1709_v26 = vld [vmem:[%s5790_s30 + $0x20] sm:$0xc]  ;;  %v5011_v27 = vld [vmem:[#allocation2 + $0x4f4] ss:$8 sps:$4 sm:$0xff]  }
  0xa4   : > { %1025 = vmatpush1.bf16.msra.mxu1 %v4931_v28  ;;  %v5014_v28 = vld [vmem:[#allocation2 + $0x8f4] ss:$8 sps:$4 sm:$0xff]  }
  0xa5   : > { %2399 = vmatpush1.bf16.msra.mxu0 %v4934_v29  ;;  %1026 = vmatprep.subr.bf16.mxu1 %v4939_v30  ;;  %v466_v29 = vshrl.u32 %v350_v18, 16  ;;  %v470_v30 = vrot.slane %v468_v24, 1  ;;  %v5068_v18 = vld [vmem:[#allocation2 + $0x984] ss:$8 sps:$4 sm:$0xff]   ;;  %v5072_v24 = vld [vmem:[#allocation2 + $0x990] ss:$8 sps:$4 sm:$0xff]  }
  0xa6   : > { %2400 = vmatprep.subr.bf16.mxu0 %v4942_v31  ;;  %v1715_v31 = vpack.c.bf16 %v1709_v26, %v1709_v26  ;;  %v5080_v26 = vld [vmem:[#allocation2 + $0x9a4] ss:$8 sps:$4 sm:$0xff]  }
  0xa8   : > { %1027 = vmatpush1.bf16.msra.mxu1 %v4937_v32  ;;  %v5009_v32 = vld [vmem:[#allocation2 + $0x4f0] ss:$8 sps:$4 sm:$0xff]  }
  0xa9   : > { %2401 = vmatpush1.bf16.msra.mxu0 %v4940_v33  ;;  %1028 = vmatprep.subr.bf16.mxu1 %v4945_v34  ;;  %v5012_v33 = vld [vmem:[#allocation2 + $0x8f0] ss:$8 sps:$4 sm:$0xff]   ;;  %v5017_v34 = vld [vmem:[#allocation2 + $0x504] ss:$8 sps:$4 sm:$0xff]  }
  0xaa   : > { %2402 = vmatprep.subr.bf16.mxu0 %v4948_v35  ;;  %v5020_v35 = vld [vmem:[#allocation2 + $0x904] ss:$8 sps:$4 sm:$0xff]  }
  0xac   : > { %1029 = vmatpush1.bf16.msra.mxu1 %v4943_v36  ;;  %v471_v36 = vor.u32 %v470_v30, %v466_v29  ;;  %v5083_v29 = vld [vmem:[#allocation2 + $0x5b4] ss:$8 sps:$4 sm:$0xff]  }
  0xad   : > { %2403 = vmatpush1.bf16.msra.mxu0 %v4946_v37  ;;  %1030 = vmatprep.subr.bf16.mxu1 %v4951_v38  ;;  %v1824_v37 = vrot.slane %v1715_v31, 1  ;;  %v5015_v38 = vld [vmem:[#allocation2 + $0x500] ss:$8 sps:$4 sm:$0xff]   ;;  %v5086_v30 = vld [vmem:[#allocation2 + $0x9b4] ss:$8 sps:$4 sm:$0xff]  }
  0xae   : > { %2404 = vmatprep.subr.bf16.mxu0 %v4954_v39  ;;  %v5018_v39 = vld [vmem:[#allocation2 + $0x900] ss:$8 sps:$4 sm:$0xff]   ;;  %v5081_v31 = vld [vmem:[#allocation2 + $0x5b0] ss:$8 sps:$4 sm:$0xff]  }
  0xb0   : > { %1031 = vmatpush1.bf16.msra.mxu1 %v4949_v40  ;;  %v5023_v40 = vld [vmem:[#allocation2 + $0x514] ss:$8 sps:$4 sm:$0xff]  }
  0xb1   : > { %2405 = vmatpush1.bf16.msra.mxu0 %v4952_v41  ;;  %1032 = vmatprep.subr.bf16.mxu1 %v4957_v42  ;;  %v5026_v41 = vld [vmem:[#allocation2 + $0x914] ss:$8 sps:$4 sm:$0xff]   ;;  %v5021_v42 = vld [vmem:[#allocation2 + $0x510] ss:$8 sps:$4 sm:$0xff]  }
  0xb2   : > { %2406 = vmatprep.subr.bf16.mxu0 %v4960_v43  ;;  %v5024_v43 = vld [vmem:[#allocation2 + $0x910] ss:$8 sps:$4 sm:$0xff]  }
  0xb4   : > { %1033 = vmatpush1.bf16.msra.mxu1 %v4955_v44  ;;  %v347_v44 = vld [vmem:[%s5790_s30 + $0x28] sm:$0x6] }
  0xb5   : > { %2407 = vmatpush1.bf16.msra.mxu0 %v4958_v46  ;;  %1034 = vmatprep.subr.bf16.mxu1 %v4963_v47  ;;  %v5032_v46 = vld [vmem:[#allocation2 + $0x924] ss:$8 sps:$4 sm:$0xff]   ;;  %v353_v47 = vpack.c.bf16 %v347_v44, %v347_v44  ;;  %v5093_v44 = vld [vmem:[#allocation2 + $0x5d0] ss:$8 sps:$4 sm:$0xff]  }
  0xb6   : > { %2408 = vmatprep.subr.bf16.mxu0 %v4966_v50 }
  0xb7   : > { %v487_v49 = vshrl.u32 %v353_v47, 16  ;;  %v489_v50 = vshll.u32 %v353_v47, 16  ;;  %v5104_v47 = vld [vmem:[#allocation2 + $0x9e4] ss:$8 sps:$4 sm:$0xff]  }
  0xb8   : > { %1035 = vmatpush1.bf16.msra.mxu1 %v4961_v54  ;;  %v5035_v54 = vld [vmem:[#allocation2 + $0x534] ss:$8 sps:$4 sm:$0xff]  }
  0xb9   : > { %2409 = vmatpush1.bf16.msra.mxu0 %v4964_v56  ;;  %1036 = vmatprep.subr.bf16.mxu1 %v4969_v57  ;;  %v491_v55 = vrot.slane %v489_v50, 1  ;;  %v2555_v56 = vshrl.u32 %v2444_v51, 16  ;;  %v2558_v57 = vshll.u32 %v2444_v51, 16 }
  0xba   : > { %2410 = vmatprep.subr.bf16.mxu0 %v4972_v59 }
  0xbb   : > { %v492_v59 = vor.u32 %v491_v55, %v487_v49  ;;  %v2557_v60 = vrot.slane %v2555_v56, 1  ;;  %v5099_v49 = vld [vmem:[#allocation2 + $0x5e0] ss:$8 sps:$4 sm:$0xff]   ;;  %v5110_v55 = vld [vmem:[#allocation2 + $0x9f4] ss:$8 sps:$4 sm:$0xff]  }
  0xbc   : > { %1037 = vmatpush1.bf16.msra.mxu1 %v4967_v61  ;;  %v2560_v61 = vrot.slane %v2558_v57, 2 }
  0xbd   : > { %2411 = vmatpush1.bf16.msra.mxu0 %v4970_v62  ;;  %1038 = vmatprep.subr.bf16.mxu1 %v4975_v63  ;;  %v5033_v62 = vld [vmem:[#allocation2 + $0x530] ss:$8 sps:$4 sm:$0xff]  }
  0xbe   : > { %2412 = vmatprep.subr.bf16.mxu0 %v4978_v0  ;;  %v5036_v63 = vld [vmem:[#allocation2 + $0x930] ss:$8 sps:$4 sm:$0xff]   ;;  %v2561_v0 = vor.u32 %v2560_v61, %v2557_v60 }
  0xc0   : > { %1039 = vmatpush1.bf16.msra.mxu1 %v4973_v1  ;;  %v5041_v1 = vld [vmem:[#allocation2 + $0x544] ss:$8 sps:$4 sm:$0xff]  }
  0xc1   : > { %2413 = vmatpush1.bf16.msra.mxu0 %v4976_v2  ;;  %1040 = vmatprep.subr.bf16.mxu1 %v4981_v3  ;;  %v5044_v2 = vld [vmem:[#allocation2 + $0x944] ss:$8 sps:$4 sm:$0xff]   ;;  %v5039_v3 = vld [vmem:[#allocation2 + $0x540] ss:$8 sps:$4 sm:$0xff]  }
  0xc2   : > { %2414 = vmatprep.subr.bf16.mxu0 %v4984_v4  ;;  %v5042_v4 = vld [vmem:[#allocation2 + $0x940] ss:$8 sps:$4 sm:$0xff]  }
  0xc4   : > { %1041 = vmatpush1.bf16.msra.mxu1 %v4979_v5  ;;  %v5047_v5 = vld [vmem:[#allocation2 + $0x554] ss:$8 sps:$4 sm:$0xff]  }
  0xc5   : > { %2415 = vmatpush1.bf16.msra.mxu0 %v4982_v6  ;;  %1042 = vmatprep.subr.bf16.mxu1 %v4987_v7  ;;  %v5050_v6 = vld [vmem:[#allocation2 + $0x954] ss:$8 sps:$4 sm:$0xff]   ;;  %v5045_v7 = vld [vmem:[#allocation2 + $0x550] ss:$8 sps:$4 sm:$0xff]  }
  0xc6   : > { %2416 = vmatprep.subr.bf16.mxu0 %v4990_v8  ;;  %v5048_v8 = vld [vmem:[#allocation2 + $0x950] ss:$8 sps:$4 sm:$0xff]  }
  0xc8   : > { %1043 = vmatpush1.bf16.msra.mxu1 %v4985_v9  ;;  %v5053_v9 = vld [vmem:[#allocation2 + $0x564] ss:$8 sps:$4 sm:$0xff]  }
  0xc9   : > { %2417 = vmatpush1.bf16.msra.mxu0 %v4988_v10  ;;  %1044 = vmatprep.subr.bf16.mxu1 %v4993_v11  ;;  %v5056_v10 = vld [vmem:[#allocation2 + $0x964] ss:$8 sps:$4 sm:$0xff]   ;;  %v5051_v11 = vld [vmem:[#allocation2 + $0x560] ss:$8 sps:$4 sm:$0xff]  }
  0xca   : > { %2418 = vmatprep.subr.bf16.mxu0 %v4996_v12  ;;  %v5054_v12 = vld [vmem:[#allocation2 + $0x960] ss:$8 sps:$4 sm:$0xff]  }
  0xcc   : > { %1045 = vmatpush1.bf16.msra.mxu1 %v4991_v13  ;;  %v5059_v13 = vld [vmem:[#allocation2 + $0x574] ss:$8 sps:$4 sm:$0xff]  }
  0xcd   : > { %2419 = vmatpush1.bf16.msra.mxu0 %v4994_v14  ;;  %1046 = vmatprep.subr.bf16.mxu1 %v4999_v16  ;;  %v5062_v14 = vld [vmem:[#allocation2 + $0x974] ss:$8 sps:$4 sm:$0xff]   ;;  %v5060_v16 = vld [vmem:[#allocation2 + $0x970] ss:$8 sps:$4 sm:$0xff]  }
  0xce   : > { %2420 = vmatprep.subr.bf16.mxu0 %v5002_v17  ;;  %v5065_v17 = vld [vmem:[#allocation2 + $0x584] ss:$8 sps:$4 sm:$0xff]  }
  0xd0   : > { %1047 = vmatpush1.bf16.msra.mxu1 %v4997_v19  ;;  %v5063_v19 = vld [vmem:[#allocation2 + $0x580] ss:$8 sps:$4 sm:$0xff]  }
  0xd1   : > { %2421 = vmatpush1.bf16.msra.mxu0 %v5000_v20  ;;  %1048 = vmatprep.subr.bf16.mxu1 %v5005_v21  ;;  %v5066_v20 = vld [vmem:[#allocation2 + $0x980] ss:$8 sps:$4 sm:$0xff]   ;;  %v5071_v21 = vld [vmem:[#allocation2 + $0x594] ss:$8 sps:$4 sm:$0xff]  }
  0xd2   : > { %2422 = vmatprep.subr.bf16.mxu0 %v5008_v22  ;;  %v5074_v22 = vld [vmem:[#allocation2 + $0x994] ss:$8 sps:$4 sm:$0xff]  }
  0xd4   : > { %1049 = vmatpush1.bf16.msra.mxu1 %v5003_v23  ;;  %v5069_v23 = vld [vmem:[#allocation2 + $0x590] ss:$8 sps:$4 sm:$0xff]  }
  0xd5   : > { %2423 = vmatpush1.bf16.msra.mxu0 %v5006_v25  ;;  %1050 = vmatprep.subr.bf16.mxu1 %v5011_v27  ;;  %v5077_v25 = vld [vmem:[#allocation2 + $0x5a4] ss:$8 sps:$4 sm:$0xff]   ;;  %v5075_v27 = vld [vmem:[#allocation2 + $0x5a0] ss:$8 sps:$4 sm:$0xff]  }
  0xd6   : > { %2424 = vmatprep.subr.bf16.mxu0 %v5014_v28  ;;  %v5078_v28 = vld [vmem:[#allocation2 + $0x9a0] ss:$8 sps:$4 sm:$0xff]  }
  0xd8   : > { %1051 = vmatpush1.bf16.msra.mxu1 %v5009_v32  ;;  %v5084_v32 = vld [vmem:[#allocation2 + $0x9b0] ss:$8 sps:$4 sm:$0xff]  }
  0xd9   : > { %2425 = vmatpush1.bf16.msra.mxu0 %v5012_v33  ;;  %1061 = vmatprep.subr.bf16.mxu1 %v5017_v34  ;;  %v5089_v33 = vld [vmem:[#allocation2 + $0x5c4] ss:$8 sps:$4 sm:$0xff]  }
  0xda   : > { %3080 = vmatprep.subr.bf16.mxu0 %v5020_v35  ;;  %v5092_v34 = vld [vmem:[#allocation2 + $0x9c4] ss:$8 sps:$4 sm:$0xff]   ;;  %v5087_v35 = vld [vmem:[#allocation2 + $0x5c0] ss:$8 sps:$4 sm:$0xff]  }
  0xdb   : > { %1053 = vmatmul.mubr.bf16.vlgmr.msra.gmra.mrb[0].mxu1 %v471_v36  ;;  %v5090_v36 = vld [vmem:[#allocation2 + $0x9c0] ss:$8 sps:$4 sm:$0xff]  }
  0xdc   : > { %2427 = vmatmul.mubr.bf16.vlgmr.msra.gmra.mrb[0].mxu0 %v1824_v37  ;;  %1062 = vmatpush1.bf16.msra.mxu1 %v5015_v38  ;;  %v5095_v37 = vld [vmem:[#allocation2 + $0x5d4] ss:$8 sps:$4 sm:$0xff]   ;;  %v346_v38 = vld [vmem:[%s5790_s30 + $0x20] sm:$0x6] }
  0xdd   : > { %3081 = vmatpush1.bf16.msra.mxu0 %v5018_v39  ;;  %1063 = vmatprep.subr.bf16.mxu1 %v5023_v40  ;;  %v2437_v39 = vld [vmem:[%s5790_s30] sm:$0x18]  ;;  %v5098_v40 = vld [vmem:[#allocation2 + $0x9d4] ss:$8 sps:$4 sm:$0xff]  }
  0xde   : > { %3082 = vmatprep.subr.bf16.mxu0 %v5026_v41  ;;  %1093 = vmatprep.mubr.bf16.mxu1 %v492_v59  ;;  %v352_v41 = vpack.c.bf16 %v346_v38, %v346_v38  ;;  %v5156_v38 = vld [vmem:[#allocation2 + $0xa70] ss:$8 sps:$4 sm:$0xff]  }
  0xdf   : > { %3112 = vmatprep.mubr.bf16.mxu0 %v2561_v0  ;;  %v5113_v0 = vld [vmem:[#allocation2 + $0x4] ss:$8 sps:$4 sm:$0xff]  }
  0xe0   : > { %1064 = vmatpush1.bf16.msra.mxu1 %v5021_v42  ;;  %v2443_v42 = vpack.c.bf16 %v2437_v39, %v2437_v39  ;;  %v482_v50 = vshll.u32 %v352_v41, 16  ;;  %v5161_v39 = vld [vmem:[#allocation2 + $0x84] ss:$8 sps:$4 sm:$0xff]  }
  0xe1   : > { %3083 = vmatpush1.bf16.msra.mxu0 %v5024_v43  ;;  %1065 = vmatprep.subr.bf16.mxu1 %v5029_v45  ;;  %v2440_v43 = vld [vmem:[%s5790_s30 + $0x18] sm:$0x18] }
  0xe2   : > { %3084 = vmatprep.subr.bf16.mxu0 %v5032_v46  ;;  %v5096_v45 = vld [vmem:[#allocation2 + $0x9d0] ss:$8 sps:$4 sm:$0xff]   ;;  %v5101_v46 = vld [vmem:[#allocation2 + $0x5e4] ss:$8 sps:$4 sm:$0xff]   ;;  %v2446_v48 = vpack.c.bf16 %v2440_v43, %v2440_v43  ;;  %v2547_v51 = vshrl.u32 %v2443_v42, 16  ;;  %v484_v59 = vrot.slane %v482_v50, 1 }
  0xe3   : > { %v5167_v43 = vld [vmem:[#allocation2 + $0x94] ss:$8 sps:$4 sm:$0xff]   ;;  %v5174_v50 = vld [vmem:[#allocation2 + $0xaa0] ss:$8 sps:$4 sm:$0xff]  }
  0xe4   : > { %1066 = vmatpush1.bf16.msra.mxu1 %v5027_v52  ;;  %v2550_v52 = vshll.u32 %v2443_v42, 16  ;;  %v2571_v56 = vshrl.u32 %v2446_v48, 16  ;;  %v2574_v57 = vshll.u32 %v2446_v48, 16  ;;  %v2549_v60 = vrot.slane %v2547_v51, 1  ;;  %v5162_v42 = vld [vmem:[#allocation2 + $0xa80] ss:$8 sps:$4 sm:$0xff]  }
  0xe5   : > { %3085 = vmatpush1.bf16.msra.mxu0 %v5030_v53  ;;  %1067 = vmatprep.subr.bf16.mxu1 %v5035_v54  ;;  %v5102_v53 = vld [vmem:[#allocation2 + $0x9e0] ss:$8 sps:$4 sm:$0xff]   ;;  %v5107_v54 = vld [vmem:[#allocation2 + $0x5f4] ss:$8 sps:$4 sm:$0xff]   ;;  %v5176_v48 = vld [vmem:[#allocation2 + $0xaa4] ss:$8 sps:$4 sm:$0xff]  }
  0xe6   : > { %3086 = vmatprep.subr.bf16.mxu0 %v5038_v58  ;;  %v480_v58 = vshrl.u32 %v352_v41, 16  ;;  %v2552_v61 = vrot.slane %v2550_v52, 2  ;;  %v5159_v41 = vld [vmem:[#allocation2 + $0x80] ss:$8 sps:$4 sm:$0xff]   ;;  %v5179_v51 = vld [vmem:[#allocation2 + $0xb4] ss:$8 sps:$4 sm:$0xff]  }
  0xe7   : > { %v5182_v52 = vld [vmem:[#allocation2 + $0xab4] ss:$8 sps:$4 sm:$0xff]  }
  0xe8   : > { %1068 = vmatpush1.bf16.msra.mxu1 %v5033_v62  ;;  %v5105_v62 = vld [vmem:[#allocation2 + $0x5f0] ss:$8 sps:$4 sm:$0xff]  }
  0xe9   : > { %3087 = vmatpush1.bf16.msra.mxu0 %v5036_v63  ;;  %1069 = vmatprep.subr.bf16.mxu1 %v5041_v1  ;;  %v5108_v63 = vld [vmem:[#allocation2 + $0x9f0] ss:$8 sps:$4 sm:$0xff]   ;;  %v5116_v1 = vld [vmem:[#allocation2 + $0xa04] ss:$8 sps:$4 sm:$0xff]  }
  0xea   : > { %3088 = vmatprep.subr.bf16.mxu0 %v5044_v2  ;;  %v2573_v2 = vrot.slane %v2571_v56, 1  ;;  %v5188_v56 = vld [vmem:[#allocation2 + $0xac4] ss:$8 sps:$4 sm:$0xff]  }
  0xec   : > { %1070 = vmatpush1.bf16.msra.mxu1 %v5039_v3  ;;  %v2576_v3 = vrot.slane %v2574_v57, 2  ;;  %v5183_v57 = vld [vmem:[#allocation2 + $0xc0] ss:$8 sps:$4 sm:$0xff]  }
  0xed   : > { %3089 = vmatpush1.bf16.msra.mxu0 %v5042_v4  ;;  %1071 = vmatprep.subr.bf16.mxu1 %v5047_v5  ;;  %v485_v4 = vor.u32 %v484_v59, %v480_v58  ;;  %v2553_v5 = vor.u32 %v2552_v61, %v2549_v60  ;;  %v5186_v58 = vld [vmem:[#allocation2 + $0xac0] ss:$8 sps:$4 sm:$0xff]   ;;  %v2439_v59 = vld [vmem:[%s5790_s30 + $0x10] sm:$0x18] }
  0xee   : > { %3090 = vmatprep.subr.bf16.mxu0 %v5050_v6  ;;  %v235_v6 = vld [vmem:[%s5790_s30 + $0x8] sm:$0x3]  ;;  %v5191_v60 = vld [vmem:[#allocation2 + $0xd4] ss:$8 sps:$4 sm:$0xff]  }
  0xef   : > { %v5194_v61 = vld [vmem:[#allocation2 + $0xad4] ss:$8 sps:$4 sm:$0xff]  }
  0xf0   : > { %1072 = vmatpush1.bf16.msra.mxu1 %v5045_v7  ;;  %v5111_v7 = vld [vmem:[#allocation2] ss:$8 sps:$4 sm:$0xff]  }
  0xf1   : > { %3091 = vmatpush1.bf16.msra.mxu0 %v5048_v8  ;;  %1073 = vmatprep.subr.bf16.mxu1 %v5053_v9  ;;  %v5114_v8 = vld [vmem:[#allocation2 + $0xa00] ss:$8 sps:$4 sm:$0xff]   ;;  %v5119_v9 = vld [vmem:[#allocation2 + $0x14] ss:$8 sps:$4 sm:$0xff]  }
  0xf2   : > { %3092 = vmatprep.subr.bf16.mxu0 %v5056_v10  ;;  %v5122_v10 = vld [vmem:[#allocation2 + $0xa14] ss:$8 sps:$4 sm:$0xff]  }
  0xf4   : > { %1074 = vmatpush1.bf16.msra.mxu1 %v5051_v11  ;;  %v241_v11 = vpack.c.bf16 %v235_v6, %v235_v6 }
  0xf5   : > { %3093 = vmatpush1.bf16.msra.mxu0 %v5054_v12  ;;  %1075 = vmatprep.subr.bf16.mxu1 %v5059_v13  ;;  %v2577_v12 = vor.u32 %v2576_v3, %v2573_v2  ;;  %v5117_v13 = vld [vmem:[#allocation2 + $0x10] ss:$8 sps:$4 sm:$0xff]   ;;  %v5197_v2 = vld [vmem:[#allocation2 + $0xe4] ss:$8 sps:$4 sm:$0xff]  }
  0xf6   : > { %3094 = vmatprep.subr.bf16.mxu0 %v5062_v14  ;;  %v5120_v14 = vld [vmem:[#allocation2 + $0xa10] ss:$8 sps:$4 sm:$0xff]   ;;  %v5200_v3 = vld [vmem:[#allocation2 + $0xae4] ss:$8 sps:$4 sm:$0xff]  }
  0xf8   : > { %1076 = vmatpush1.bf16.msra.mxu1 %v5057_v15  ;;  %v5125_v15 = vld [vmem:[#allocation2 + $0x24] ss:$8 sps:$4 sm:$0xff]  }
  0xf9   : > { %3095 = vmatpush1.bf16.msra.mxu0 %v5060_v16  ;;  %1077 = vmatprep.subr.bf16.mxu1 %v5065_v17  ;;  %v5128_v16 = vld [vmem:[#allocation2 + $0xa24] ss:$8 sps:$4 sm:$0xff]   ;;  %v5123_v17 = vld [vmem:[#allocation2 + $0x20] ss:$8 sps:$4 sm:$0xff]  }
  0xfa   : > { %3096 = vmatprep.subr.bf16.mxu0 %v5068_v18  ;;  %v5126_v18 = vld [vmem:[#allocation2 + $0xa20] ss:$8 sps:$4 sm:$0xff]  }
  0xfc   : > { %1078 = vmatpush1.bf16.msra.mxu1 %v5063_v19  ;;  %v5131_v19 = vld [vmem:[#allocation2 + $0x34] ss:$8 sps:$4 sm:$0xff]  }
  0xfd   : > { %3097 = vmatpush1.bf16.msra.mxu0 %v5066_v20  ;;  %1079 = vmatprep.subr.bf16.mxu1 %v5071_v21  ;;  %v5134_v20 = vld [vmem:[#allocation2 + $0xa34] ss:$8 sps:$4 sm:$0xff]   ;;  %v5129_v21 = vld [vmem:[#allocation2 + $0x30] ss:$8 sps:$4 sm:$0xff]  }
  0xfe   : > { %3098 = vmatprep.subr.bf16.mxu0 %v5074_v22  ;;  %v5132_v22 = vld [vmem:[#allocation2 + $0xa30] ss:$8 sps:$4 sm:$0xff]  }
 0x100   : > { %1080 = vmatpush1.bf16.msra.mxu1 %v5069_v23  ;;  %v5137_v23 = vld [vmem:[#allocation2 + $0x44] ss:$8 sps:$4 sm:$0xff]  }
 0x101   : > { %3099 = vmatpush1.bf16.msra.mxu0 %v5072_v24  ;;  %1081 = vmatprep.subr.bf16.mxu1 %v5077_v25  ;;  %v5140_v24 = vld [vmem:[#allocation2 + $0xa44] ss:$8 sps:$4 sm:$0xff]   ;;  %v5135_v25 = vld [vmem:[#allocation2 + $0x40] ss:$8 sps:$4 sm:$0xff]  }
 0x102   : > { %3100 = vmatprep.subr.bf16.mxu0 %v5080_v26  ;;  %v5138_v26 = vld [vmem:[#allocation2 + $0xa40] ss:$8 sps:$4 sm:$0xff]  }
 0x104   : > { %1082 = vmatpush1.bf16.msra.mxu1 %v5075_v27  ;;  %v5143_v27 = vld [vmem:[#allocation2 + $0x54] ss:$8 sps:$4 sm:$0xff]  }
 0x105   : > { %3101 = vmatpush1.bf16.msra.mxu0 %v5078_v28  ;;  %1083 = vmatprep.subr.bf16.mxu1 %v5083_v29  ;;  %v5146_v28 = vld [vmem:[#allocation2 + $0xa54] ss:$8 sps:$4 sm:$0xff]   ;;  %v5141_v29 = vld [vmem:[#allocation2 + $0x50] ss:$8 sps:$4 sm:$0xff]  }
 0x106   : > { %3102 = vmatprep.subr.bf16.mxu0 %v5086_v30  ;;  %v5144_v30 = vld [vmem:[#allocation2 + $0xa50] ss:$8 sps:$4 sm:$0xff]  }
 0x108   : > { %1084 = vmatpush1.bf16.msra.mxu1 %v5081_v31  ;;  %v5149_v31 = vld [vmem:[#allocation2 + $0x64] ss:$8 sps:$4 sm:$0xff]  }
 0x109   : > { %3103 = vmatpush1.bf16.msra.mxu0 %v5084_v32  ;;  %1085 = vmatprep.subr.bf16.mxu1 %v5089_v33  ;;  %v5152_v32 = vld [vmem:[#allocation2 + $0xa64] ss:$8 sps:$4 sm:$0xff]   ;;  %v5147_v33 = vld [vmem:[#allocation2 + $0x60] ss:$8 sps:$4 sm:$0xff]  }
 0x10a   : > { %3104 = vmatprep.subr.bf16.mxu0 %v5092_v34  ;;  %v5150_v34 = vld [vmem:[#allocation2 + $0xa60] ss:$8 sps:$4 sm:$0xff]  }
 0x10c   : > { %1086 = vmatpush1.bf16.msra.mxu1 %v5087_v35  ;;  %v5155_v35 = vld [vmem:[#allocation2 + $0x74] ss:$8 sps:$4 sm:$0xff]  }
 0x10d   : > { %3105 = vmatpush1.bf16.msra.mxu0 %v5090_v36  ;;  %1087 = vmatprep.subr.bf16.mxu1 %v5095_v37  ;;  %v5158_v36 = vld [vmem:[#allocation2 + $0xa74] ss:$8 sps:$4 sm:$0xff]   ;;  %v5153_v37 = vld [vmem:[#allocation2 + $0x70] ss:$8 sps:$4 sm:$0xff]  }
 0x10e   : > { %3106 = vmatprep.subr.bf16.mxu0 %v5098_v40  ;;  %v5164_v40 = vld [vmem:[#allocation2 + $0xa84] ss:$8 sps:$4 sm:$0xff]  }
 0x110   : > { %1088 = vmatpush1.bf16.msra.mxu1 %v5093_v44  ;;  %v5170_v44 = vld [vmem:[#allocation2 + $0xa94] ss:$8 sps:$4 sm:$0xff]  }
 0x111   : > { %3107 = vmatpush1.bf16.msra.mxu0 %v5096_v45  ;;  %1089 = vmatprep.subr.bf16.mxu1 %v5101_v46  ;;  %v5165_v45 = vld [vmem:[#allocation2 + $0x90] ss:$8 sps:$4 sm:$0xff]  }
 0x112   : > { %3108 = vmatprep.subr.bf16.mxu0 %v5104_v47  ;;  %v5168_v46 = vld [vmem:[#allocation2 + $0xa90] ss:$8 sps:$4 sm:$0xff]   ;;  %v5173_v47 = vld [vmem:[#allocation2 + $0xa4] ss:$8 sps:$4 sm:$0xff]  }
 0x114   : > { %1090 = vmatpush1.bf16.msra.mxu1 %v5099_v49  ;;  %v5171_v49 = vld [vmem:[#allocation2 + $0xa0] ss:$8 sps:$4 sm:$0xff]  }
 0x115   : > { %3109 = vmatpush1.bf16.msra.mxu0 %v5102_v53  ;;  %1091 = vmatprep.subr.bf16.mxu1 %v5107_v54  ;;  %v5177_v53 = vld [vmem:[#allocation2 + $0xb0] ss:$8 sps:$4 sm:$0xff]  }
 0x116   : > { %3110 = vmatprep.subr.bf16.mxu0 %v5110_v55  ;;  %v5180_v54 = vld [vmem:[#allocation2 + $0xab0] ss:$8 sps:$4 sm:$0xff]   ;;  %v5185_v55 = vld [vmem:[#allocation2 + $0xc4] ss:$8 sps:$4 sm:$0xff]  }
 0x118   : > { %1092 = vmatpush1.bf16.msra.mxu1 %v5105_v62  ;;  %v5189_v62 = vld [vmem:[#allocation2 + $0xd0] ss:$8 sps:$4 sm:$0xff]  }
 0x119   : > { %3111 = vmatpush1.bf16.msra.mxu0 %v5108_v63  ;;  %1582 = vmatprep.subr.bf16.mxu1 %v5113_v0  ;;  %v2445_v63 = vpack.c.bf16 %v2439_v59, %v2439_v59  ;;  %v2442_v0 = vld [vmem:[%s5790_s30 + $0x28] sm:$0x18] }
 0x11a   : > { %3121 = vmatprep.subr.bf16.mxu0 %v5116_v1  ;;  %v5192_v1 = vld [vmem:[#allocation2 + $0xad0] ss:$8 sps:$4 sm:$0xff]   ;;  %v5255_v59 = vld [vmem:[#allocation2 + $0x180] ss:$8 sps:$4 sm:$0xff]  }
 0x11b   : > { %1094 = vmatmul.mubr.bf16.vlgmr.msra.gmra.mrb[0].mxu1 %v485_v4  ;;  %v2448_v4 = vpack.c.bf16 %v2442_v0, %v2442_v0  ;;  %v2563_v6 = vshrl.u32 %v2445_v63, 16  ;;  %v5264_v0 = vld [vmem:[#allocation2 + $0xb90] ss:$8 sps:$4 sm:$0xff]  }
 0x11c   : > { %3113 = vmatmul.mubr.bf16.vlgmr.msra.gmra.mrb[0].mxu0 %v2553_v5  ;;  %1583 = vmatpush1.bf16.msra.mxu1 %v5111_v7  ;;  %v5195_v5 = vld [vmem:[#allocation2 + $0xe0] ss:$8 sps:$4 sm:$0xff]   ;;  %v2566_v7 = vshll.u32 %v2445_v63, 16  ;;  %v5261_v63 = vld [vmem:[#allocation2 + $0x190] ss:$8 sps:$4 sm:$0xff]  }
 0x11d   : > { %3122 = vmatpush1.bf16.msra.mxu0 %v5114_v8  ;;  %1584 = vmatprep.subr.bf16.mxu1 %v5119_v9  ;;  %v5198_v8 = vld [vmem:[#allocation2 + $0xae0] ss:$8 sps:$4 sm:$0xff]   ;;  %v5203_v9 = vld [vmem:[#allocation2 + $0xf4] ss:$8 sps:$4 sm:$0xff]  }
 0x11e   : > { %3123 = vmatprep.subr.bf16.mxu0 %v5122_v10  ;;  %1614 = vmatprep.mubr.bf16.mxu1 %v241_v11  ;;  %v5206_v10 = vld [vmem:[#allocation2 + $0xaf4] ss:$8 sps:$4 sm:$0xff]   ;;  %v5201_v11 = vld [vmem:[#allocation2 + $0xf0] ss:$8 sps:$4 sm:$0xff]  }
 0x11f   : > { %3153 = vmatprep.mubr.bf16.mxu0 %v2577_v12  ;;  %v2587_v12 = vshrl.u32 %v2448_v4, 16 }
 0x120   : > { %1585 = vmatpush1.bf16.msra.mxu1 %v5117_v13  ;;  %v2590_v13 = vshll.u32 %v2448_v4, 16  ;;  %v5270_v4 = vld [vmem:[#allocation2 + $0xba0] ss:$8 sps:$4 sm:$0xff]  }
 0x121   : > { %3124 = vmatpush1.bf16.msra.mxu0 %v5120_v14  ;;  %1586 = vmatprep.subr.bf16.mxu1 %v5125_v15  ;;  %v5204_v14 = vld [vmem:[#allocation2 + $0xaf0] ss:$8 sps:$4 sm:$0xff]   ;;  %v2565_v15 = vrot.slane %v2563_v6, 1  ;;  %v5278_v6 = vld [vmem:[#allocation2 + $0xbb4] ss:$8 sps:$4 sm:$0xff]  }
 0x122   : > { %3125 = vmatprep.subr.bf16.mxu0 %v5128_v16  ;;  %v2568_v16 = vrot.slane %v2566_v7, 2  ;;  %v5273_v7 = vld [vmem:[#allocation2 + $0x1b0] ss:$8 sps:$4 sm:$0xff]  }
 0x124   : > { %1587 = vmatpush1.bf16.msra.mxu1 %v5123_v17  ;;  %v234_v17 = vld [vmem:[%s5790_s30] sm:$0x3] }
 0x125   : > { %3126 = vmatpush1.bf16.msra.mxu0 %v5126_v18  ;;  %1588 = vmatprep.subr.bf16.mxu1 %v5131_v19  ;;  %v5209_v18 = vld [vmem:[#allocation2 + $0x104] ss:$8 sps:$4 sm:$0xff]  }
 0x126   : > { %3127 = vmatprep.subr.bf16.mxu0 %v5134_v20  ;;  %v5212_v19 = vld [vmem:[#allocation2 + $0xb04] ss:$8 sps:$4 sm:$0xff]   ;;  %v5207_v20 = vld [vmem:[#allocation2 + $0x100] ss:$8 sps:$4 sm:$0xff]  }
 0x128   : > { %1589 = vmatpush1.bf16.msra.mxu1 %v5129_v21  ;;  %v2589_v21 = vrot.slane %v2587_v12, 1  ;;  %v5282_v12 = vld [vmem:[#allocation2 + $0xbc0] ss:$8 sps:$4 sm:$0xff]  }
 0x129   : > { %3128 = vmatpush1.bf16.msra.mxu0 %v5132_v22  ;;  %1590 = vmatprep.subr.bf16.mxu1 %v5137_v23  ;;  %v2592_v22 = vrot.slane %v2590_v13, 2  ;;  %v240_v23 = vpack.c.bf16 %v234_v17, %v234_v17  ;;  %v2441_v13 = vld [vmem:[%s5790_s30 + $0x20] sm:$0x18]  ;;  %v5285_v17 = vld [vmem:[#allocation2 + $0x1d0] ss:$8 sps:$4 sm:$0xff]  }
 0x12a   : > { %3129 = vmatprep.subr.bf16.mxu0 %v5140_v24  ;;  %v2569_v24 = vor.u32 %v2568_v16, %v2565_v15  ;;  %v5290_v15 = vld [vmem:[#allocation2 + $0xbd4] ss:$8 sps:$4 sm:$0xff]   ;;  %v2447_v16 = vpack.c.bf16 %v2441_v13, %v2441_v13  ;;  %v5357_v13 = vld [vmem:[#allocation2 + $0x290] ss:$8 sps:$4 sm:$0xff]  }
 0x12c   : > { %1591 = vmatpush1.bf16.msra.mxu1 %v5135_v25  ;;  %v237_v25 = vld [vmem:[%s5790_s30 + $0x18] sm:$0x3] }
 0x12d   : > { %3130 = vmatpush1.bf16.msra.mxu0 %v5138_v26  ;;  %1592 = vmatprep.subr.bf16.mxu1 %v5143_v27  ;;  %v5210_v26 = vld [vmem:[#allocation2 + $0xb00] ss:$8 sps:$4 sm:$0xff]   ;;  %v5215_v27 = vld [vmem:[#allocation2 + $0x114] ss:$8 sps:$4 sm:$0xff]  }
 0x12e   : > { %3131 = vmatprep.subr.bf16.mxu0 %v5146_v28  ;;  %v5218_v28 = vld [vmem:[#allocation2 + $0xb14] ss:$8 sps:$4 sm:$0xff]  }
 0x130   : > { %1593 = vmatpush1.bf16.msra.mxu1 %v5141_v29  ;;  %v243_v29 = vpack.c.bf16 %v237_v25, %v237_v25  ;;  %v5299_v25 = vld [vmem:[#allocation2 + $0x1f4] ss:$8 sps:$4 sm:$0xff]  }
 0x131   : > { %3132 = vmatpush1.bf16.msra.mxu0 %v5144_v30  ;;  %1594 = vmatprep.subr.bf16.mxu1 %v5149_v31  ;;  %v2593_v30 = vor.u32 %v2592_v22, %v2589_v21  ;;  %v5213_v31 = vld [vmem:[#allocation2 + $0x110] ss:$8 sps:$4 sm:$0xff]   ;;  %v5291_v21 = vld [vmem:[#allocation2 + $0x1e0] ss:$8 sps:$4 sm:$0xff]   ;;  %v2579_v22 = vshrl.u32 %v2447_v16, 16 }
 0x132   : > { %3133 = vmatprep.subr.bf16.mxu0 %v5152_v32  ;;  %v5216_v32 = vld [vmem:[#allocation2 + $0xb10] ss:$8 sps:$4 sm:$0xff]  }
 0x134   : > { %1595 = vmatpush1.bf16.msra.mxu1 %v5147_v33  ;;  %v5221_v33 = vld [vmem:[#allocation2 + $0x124] ss:$8 sps:$4 sm:$0xff]  }
 0x135   : > { %3134 = vmatpush1.bf16.msra.mxu0 %v5150_v34  ;;  %1596 = vmatprep.subr.bf16.mxu1 %v5155_v35  ;;  %v5224_v34 = vld [vmem:[#allocation2 + $0xb24] ss:$8 sps:$4 sm:$0xff]   ;;  %v5219_v35 = vld [vmem:[#allocation2 + $0x120] ss:$8 sps:$4 sm:$0xff]  }
 0x136   : > { %3135 = vmatprep.subr.bf16.mxu0 %v5158_v36  ;;  %v5222_v36 = vld [vmem:[#allocation2 + $0xb20] ss:$8 sps:$4 sm:$0xff]  }
 0x138   : > { %1597 = vmatpush1.bf16.msra.mxu1 %v5153_v37  ;;  %v5227_v37 = vld [vmem:[#allocation2 + $0x134] ss:$8 sps:$4 sm:$0xff]  }
 0x139   : > { %3136 = vmatpush1.bf16.msra.mxu0 %v5156_v38  ;;  %1598 = vmatprep.subr.bf16.mxu1 %v5161_v39  ;;  %v5230_v38 = vld [vmem:[#allocation2 + $0xb34] ss:$8 sps:$4 sm:$0xff]   ;;  %v5225_v39 = vld [vmem:[#allocation2 + $0x130] ss:$8 sps:$4 sm:$0xff]  }
 0x13a   : > { %3137 = vmatprep.subr.bf16.mxu0 %v5164_v40  ;;  %v5228_v40 = vld [vmem:[#allocation2 + $0xb30] ss:$8 sps:$4 sm:$0xff]  }
 0x13c   : > { %1599 = vmatpush1.bf16.msra.mxu1 %v5159_v41  ;;  %v5233_v41 = vld [vmem:[#allocation2 + $0x144] ss:$8 sps:$4 sm:$0xff]  }
 0x13d   : > { %3138 = vmatpush1.bf16.msra.mxu0 %v5162_v42  ;;  %1600 = vmatprep.subr.bf16.mxu1 %v5167_v43  ;;  %v5236_v42 = vld [vmem:[#allocation2 + $0xb44] ss:$8 sps:$4 sm:$0xff]   ;;  %v5231_v43 = vld [vmem:[#allocation2 + $0x140] ss:$8 sps:$4 sm:$0xff]  }
 0x13e   : > { %3139 = vmatprep.subr.bf16.mxu0 %v5170_v44  ;;  %v5234_v44 = vld [vmem:[#allocation2 + $0xb40] ss:$8 sps:$4 sm:$0xff]  }
 0x140   : > { %1601 = vmatpush1.bf16.msra.mxu1 %v5165_v45  ;;  %v5239_v45 = vld [vmem:[#allocation2 + $0x154] ss:$8 sps:$4 sm:$0xff]  }
 0x141   : > { %3140 = vmatpush1.bf16.msra.mxu0 %v5168_v46  ;;  %1602 = vmatprep.subr.bf16.mxu1 %v5173_v47  ;;  %v5242_v46 = vld [vmem:[#allocation2 + $0xb54] ss:$8 sps:$4 sm:$0xff]   ;;  %v5237_v47 = vld [vmem:[#allocation2 + $0x150] ss:$8 sps:$4 sm:$0xff]  }
 0x142   : > { %3141 = vmatprep.subr.bf16.mxu0 %v5176_v48  ;;  %v5240_v48 = vld [vmem:[#allocation2 + $0xb50] ss:$8 sps:$4 sm:$0xff]  }
 0x144   : > { %1603 = vmatpush1.bf16.msra.mxu1 %v5171_v49  ;;  %v5245_v49 = vld [vmem:[#allocation2 + $0x164] ss:$8 sps:$4 sm:$0xff]  }
 0x145   : > { %3142 = vmatpush1.bf16.msra.mxu0 %v5174_v50  ;;  %1604 = vmatprep.subr.bf16.mxu1 %v5179_v51  ;;  %v5248_v50 = vld [vmem:[#allocation2 + $0xb64] ss:$8 sps:$4 sm:$0xff]   ;;  %v5243_v51 = vld [vmem:[#allocation2 + $0x160] ss:$8 sps:$4 sm:$0xff]  }
 0x146   : > { %3143 = vmatprep.subr.bf16.mxu0 %v5182_v52  ;;  %v5246_v52 = vld [vmem:[#allocation2 + $0xb60] ss:$8 sps:$4 sm:$0xff]  }
 0x148   : > { %1605 = vmatpush1.bf16.msra.mxu1 %v5177_v53  ;;  %v5251_v53 = vld [vmem:[#allocation2 + $0x174] ss:$8 sps:$4 sm:$0xff]  }
 0x149   : > { %3144 = vmatpush1.bf16.msra.mxu0 %v5180_v54  ;;  %1606 = vmatprep.subr.bf16.mxu1 %v5185_v55  ;;  %v5254_v54 = vld [vmem:[#allocation2 + $0xb74] ss:$8 sps:$4 sm:$0xff]   ;;  %v5249_v55 = vld [vmem:[#allocation2 + $0x170] ss:$8 sps:$4 sm:$0xff]  }
 0x14a   : > { %3145 = vmatprep.subr.bf16.mxu0 %v5188_v56  ;;  %v5252_v56 = vld [vmem:[#allocation2 + $0xb70] ss:$8 sps:$4 sm:$0xff]  }
 0x14c   : > { %1607 = vmatpush1.bf16.msra.mxu1 %v5183_v57  ;;  %v5257_v57 = vld [vmem:[#allocation2 + $0x184] ss:$8 sps:$4 sm:$0xff]  }
 0x14d   : > { %3146 = vmatpush1.bf16.msra.mxu0 %v5186_v58  ;;  %1608 = vmatprep.subr.bf16.mxu1 %v5191_v60  ;;  %v5260_v58 = vld [vmem:[#allocation2 + $0xb84] ss:$8 sps:$4 sm:$0xff]   ;;  %v5258_v60 = vld [vmem:[#allocation2 + $0xb80] ss:$8 sps:$4 sm:$0xff]  }
 0x14e   : > { %3147 = vmatprep.subr.bf16.mxu0 %v5194_v61  ;;  %v5263_v61 = vld [vmem:[#allocation2 + $0x194] ss:$8 sps:$4 sm:$0xff]  }
 0x150   : > { %1609 = vmatpush1.bf16.msra.mxu1 %v5189_v62  ;;  %v5266_v62 = vld [vmem:[#allocation2 + $0xb94] ss:$8 sps:$4 sm:$0xff]  }
 0x151   : > { %3148 = vmatpush1.bf16.msra.mxu0 %v5192_v1  ;;  %1610 = vmatprep.subr.bf16.mxu1 %v5197_v2  ;;  %v5269_v1 = vld [vmem:[#allocation2 + $0x1a4] ss:$8 sps:$4 sm:$0xff]  }
 0x152   : > { %3149 = vmatprep.subr.bf16.mxu0 %v5200_v3  ;;  %v5272_v2 = vld [vmem:[#allocation2 + $0xba4] ss:$8 sps:$4 sm:$0xff]   ;;  %v5267_v3 = vld [vmem:[#allocation2 + $0x1a0] ss:$8 sps:$4 sm:$0xff]  }
 0x154   : > { %1611 = vmatpush1.bf16.msra.mxu1 %v5195_v5  ;;  %v5275_v5 = vld [vmem:[#allocation2 + $0x1b4] ss:$8 sps:$4 sm:$0xff]  }
 0x155   : > { %3150 = vmatpush1.bf16.msra.mxu0 %v5198_v8  ;;  %1612 = vmatprep.subr.bf16.mxu1 %v5203_v9  ;;  %v5276_v8 = vld [vmem:[#allocation2 + $0xbb0] ss:$8 sps:$4 sm:$0xff]   ;;  %v5281_v9 = vld [vmem:[#allocation2 + $0x1c4] ss:$8 sps:$4 sm:$0xff]  }
 0x156   : > { %3151 = vmatprep.subr.bf16.mxu0 %v5206_v10  ;;  %v5284_v10 = vld [vmem:[#allocation2 + $0xbc4] ss:$8 sps:$4 sm:$0xff]  }
 0x158   : > { %1613 = vmatpush1.bf16.msra.mxu1 %v5201_v11  ;;  %v5279_v11 = vld [vmem:[#allocation2 + $0x1c0] ss:$8 sps:$4 sm:$0xff]  }
 0x159   : > { %3152 = vmatpush1.bf16.msra.mxu0 %v5204_v14  ;;  %1623 = vmatprep.subr.bf16.mxu1 %v5209_v18  ;;  %v5287_v14 = vld [vmem:[#allocation2 + $0x1d4] ss:$8 sps:$4 sm:$0xff]   ;;  %v5288_v18 = vld [vmem:[#allocation2 + $0xbd0] ss:$8 sps:$4 sm:$0xff]  }
 0x15a   : > { %3162 = vmatprep.subr.bf16.mxu0 %v5212_v19  ;;  %v5293_v19 = vld [vmem:[#allocation2 + $0x1e4] ss:$8 sps:$4 sm:$0xff]  }
 0x15b   : > { %1615 = vmatmul.mubr.bf16.vlgmr.msra.gmra.mrb[0].mxu1 %v240_v23  ;;  %v2582_v23 = vshll.u32 %v2447_v16, 16  ;;  %v5368_v16 = vld [vmem:[#allocation2 + $0xca4] ss:$8 sps:$4 sm:$0xff]  }
 0x15c   : > { %3154 = vmatmul.mubr.bf16.vlgmr.msra.gmra.mrb[0].mxu0 %v2569_v24  ;;  %1624 = vmatpush1.bf16.msra.mxu1 %v5207_v20  ;;  %v5296_v20 = vld [vmem:[#allocation2 + $0xbe4] ss:$8 sps:$4 sm:$0xff]   ;;  %v5294_v24 = vld [vmem:[#allocation2 + $0xbe0] ss:$8 sps:$4 sm:$0xff]  }
 0x15d   : > { %3163 = vmatpush1.bf16.msra.mxu0 %v5210_v26  ;;  %1625 = vmatprep.subr.bf16.mxu1 %v5215_v27  ;;  %v5302_v26 = vld [vmem:[#allocation2 + $0xbf4] ss:$8 sps:$4 sm:$0xff]   ;;  %v3206_v27 = vld [vmem:[%s5790_s30 + $0x8] sm:$0x30] }
 0x15e   : > { %3164 = vmatprep.subr.bf16.mxu0 %v5218_v28  ;;  %1655 = vmatprep.mubr.bf16.mxu1 %v243_v29  ;;  %v5297_v28 = vld [vmem:[#allocation2 + $0x1f0] ss:$8 sps:$4 sm:$0xff]   ;;  %v2581_v29 = vrot.slane %v2579_v22, 1 }
 0x15f   : > { %3194 = vmatprep.mubr.bf16.mxu0 %v2593_v30  ;;  %v2584_v30 = vrot.slane %v2582_v23, 2  ;;  %v5372_v22 = vld [vmem:[#allocation2 + $0xcb0] ss:$8 sps:$4 sm:$0xff]   ;;  %v5377_v23 = vld [vmem:[#allocation2 + $0x2c4] ss:$8 sps:$4 sm:$0xff]  }
 0x160   : > { %1626 = vmatpush1.bf16.msra.mxu1 %v5213_v31  ;;  %v5300_v31 = vld [vmem:[#allocation2 + $0xbf0] ss:$8 sps:$4 sm:$0xff]  }
 0x161   : > { %3165 = vmatpush1.bf16.msra.mxu0 %v5216_v32  ;;  %1627 = vmatprep.subr.bf16.mxu1 %v5221_v33  ;;  %v236_v32 = vld [vmem:[%s5790_s30 + $0x10] sm:$0x3]  ;;  %v5305_v33 = vld [vmem:[#allocation2 + $0x204] ss:$8 sps:$4 sm:$0xff]  }
 0x162   : > { %3166 = vmatprep.subr.bf16.mxu0 %v5224_v34  ;;  %v5308_v34 = vld [vmem:[#allocation2 + $0xc04] ss:$8 sps:$4 sm:$0xff]  }
 0x164   : > { %1628 = vmatpush1.bf16.msra.mxu1 %v5219_v35  ;;  %v5303_v35 = vld [vmem:[#allocation2 + $0x200] ss:$8 sps:$4 sm:$0xff]  }
 0x165   : > { %3167 = vmatpush1.bf16.msra.mxu0 %v5222_v36  ;;  %1629 = vmatprep.subr.bf16.mxu1 %v5227_v37  ;;  %v5306_v36 = vld [vmem:[#allocation2 + $0xc00] ss:$8 sps:$4 sm:$0xff]   ;;  %v3212_v37 = vpack.c.bf16 %v3206_v27, %v3206_v27  ;;  %v5383_v27 = vld [vmem:[#allocation2 + $0x2d4] ss:$8 sps:$4 sm:$0xff]  }
 0x166   : > { %3168 = vmatprep.subr.bf16.mxu0 %v5230_v38  ;;  %v242_v38 = vpack.c.bf16 %v236_v32, %v236_v32  ;;  %v5392_v32 = vld [vmem:[#allocation2 + $0xce4] ss:$8 sps:$4 sm:$0xff]  }
 0x168   : > { %1630 = vmatpush1.bf16.msra.mxu1 %v5225_v39  ;;  %v2585_v39 = vor.u32 %v2584_v30, %v2581_v29  ;;  %v5381_v29 = vld [vmem:[#allocation2 + $0x2d0] ss:$8 sps:$4 sm:$0xff]  }
 0x169   : > { %3169 = vmatpush1.bf16.msra.mxu0 %v5228_v40  ;;  %1631 = vmatprep.subr.bf16.mxu1 %v5233_v41  ;;  %v5311_v40 = vld [vmem:[#allocation2 + $0x214] ss:$8 sps:$4 sm:$0xff]   ;;  %v239_v41 = vld [vmem:[%s5790_s30 + $0x28] sm:$0x3]  ;;  %v5384_v30 = vld [vmem:[#allocation2 + $0xcd0] ss:$8 sps:$4 sm:$0xff]  }
 0x16a   : > { %3170 = vmatprep.subr.bf16.mxu0 %v5236_v42  ;;  %v5314_v42 = vld [vmem:[#allocation2 + $0xc14] ss:$8 sps:$4 sm:$0xff]  }
 0x16c   : > { %1632 = vmatpush1.bf16.msra.mxu1 %v5231_v43  ;;  %v245_v43 = vpack.c.bf16 %v239_v41, %v239_v41  ;;  %v5393_v41 = vld [vmem:[#allocation2 + $0x2f0] ss:$8 sps:$4 sm:$0xff]  }
 0x16d   : > { %3171 = vmatpush1.bf16.msra.mxu0 %v5234_v44  ;;  %1633 = vmatprep.subr.bf16.mxu1 %v5239_v45  ;;  %v3321_v44 = vrot.slane %v3212_v37, 2  ;;  %v5309_v45 = vld [vmem:[#allocation2 + $0x210] ss:$8 sps:$4 sm:$0xff]   ;;  %v5398_v37 = vld [vmem:[#allocation2 + $0xcf4] ss:$8 sps:$4 sm:$0xff]  }
 0x16e   : > { %3172 = vmatprep.subr.bf16.mxu0 %v5242_v46  ;;  %v5312_v46 = vld [vmem:[#allocation2 + $0xc10] ss:$8 sps:$4 sm:$0xff]  }
 0x170   : > { %1634 = vmatpush1.bf16.msra.mxu1 %v5237_v47  ;;  %v5317_v47 = vld [vmem:[#allocation2 + $0x224] ss:$8 sps:$4 sm:$0xff]  }
 0x171   : > { %3173 = vmatpush1.bf16.msra.mxu0 %v5240_v48  ;;  %1635 = vmatprep.subr.bf16.mxu1 %v5245_v49  ;;  %v5320_v48 = vld [vmem:[#allocation2 + $0xc24] ss:$8 sps:$4 sm:$0xff]   ;;  %v5315_v49 = vld [vmem:[#allocation2 + $0x220] ss:$8 sps:$4 sm:$0xff]  }
 0x172   : > { %3174 = vmatprep.subr.bf16.mxu0 %v5248_v50  ;;  %v5318_v50 = vld [vmem:[#allocation2 + $0xc20] ss:$8 sps:$4 sm:$0xff]  }
 0x174   : > { %1636 = vmatpush1.bf16.msra.mxu1 %v5243_v51  ;;  %v5323_v51 = vld [vmem:[#allocation2 + $0x234] ss:$8 sps:$4 sm:$0xff]  }
 0x175   : > { %3175 = vmatpush1.bf16.msra.mxu0 %v5246_v52  ;;  %1637 = vmatprep.subr.bf16.mxu1 %v5251_v53  ;;  %v5326_v52 = vld [vmem:[#allocation2 + $0xc34] ss:$8 sps:$4 sm:$0xff]   ;;  %v5321_v53 = vld [vmem:[#allocation2 + $0x230] ss:$8 sps:$4 sm:$0xff]  }
 0x176   : > { %3176 = vmatprep.subr.bf16.mxu0 %v5254_v54  ;;  %v5324_v54 = vld [vmem:[#allocation2 + $0xc30] ss:$8 sps:$4 sm:$0xff]  }
 0x178   : > { %1638 = vmatpush1.bf16.msra.mxu1 %v5249_v55  ;;  %v5329_v55 = vld [vmem:[#allocation2 + $0x244] ss:$8 sps:$4 sm:$0xff]  }
 0x179   : > { %3177 = vmatpush1.bf16.msra.mxu0 %v5252_v56  ;;  %1639 = vmatprep.subr.bf16.mxu1 %v5257_v57  ;;  %v5332_v56 = vld [vmem:[#allocation2 + $0xc44] ss:$8 sps:$4 sm:$0xff]   ;;  %v5327_v57 = vld [vmem:[#allocation2 + $0x240] ss:$8 sps:$4 sm:$0xff]  }
 0x17a   : > { %3178 = vmatprep.subr.bf16.mxu0 %v5260_v58  ;;  %v5330_v58 = vld [vmem:[#allocation2 + $0xc40] ss:$8 sps:$4 sm:$0xff]  }
 0x17c   : > { %1640 = vmatpush1.bf16.msra.mxu1 %v5255_v59  ;;  %v5335_v59 = vld [vmem:[#allocation2 + $0x254] ss:$8 sps:$4 sm:$0xff]  }
 0x17d   : > { %3179 = vmatpush1.bf16.msra.mxu0 %v5258_v60  ;;  %1641 = vmatprep.subr.bf16.mxu1 %v5263_v61  ;;  %v5338_v60 = vld [vmem:[#allocation2 + $0xc54] ss:$8 sps:$4 sm:$0xff]   ;;  %v5333_v61 = vld [vmem:[#allocation2 + $0x250] ss:$8 sps:$4 sm:$0xff]  }
 0x17e   : > { %3180 = vmatprep.subr.bf16.mxu0 %v5266_v62  ;;  %v5336_v62 = vld [vmem:[#allocation2 + $0xc50] ss:$8 sps:$4 sm:$0xff]  }
 0x180   : > { %1642 = vmatpush1.bf16.msra.mxu1 %v5261_v63  ;;  %v5341_v63 = vld [vmem:[#allocation2 + $0x264] ss:$8 sps:$4 sm:$0xff]  }
 0x181   : > { %3181 = vmatpush1.bf16.msra.mxu0 %v5264_v0  ;;  %1643 = vmatprep.subr.bf16.mxu1 %v5269_v1  ;;  %v5344_v0 = vld [vmem:[#allocation2 + $0xc64] ss:$8 sps:$4 sm:$0xff]   ;;  %v5339_v1 = vld [vmem:[#allocation2 + $0x260] ss:$8 sps:$4 sm:$0xff]  }
 0x182   : > { %3182 = vmatprep.subr.bf16.mxu0 %v5272_v2  ;;  %v5342_v2 = vld [vmem:[#allocation2 + $0xc60] ss:$8 sps:$4 sm:$0xff]  }
 0x184   : > { %1644 = vmatpush1.bf16.msra.mxu1 %v5267_v3  ;;  %v5347_v3 = vld [vmem:[#allocation2 + $0x274] ss:$8 sps:$4 sm:$0xff]  }
 0x185   : > { %3183 = vmatpush1.bf16.msra.mxu0 %v5270_v4  ;;  %1645 = vmatprep.subr.bf16.mxu1 %v5275_v5  ;;  %v5350_v4 = vld [vmem:[#allocation2 + $0xc74] ss:$8 sps:$4 sm:$0xff]   ;;  %v5345_v5 = vld [vmem:[#allocation2 + $0x270] ss:$8 sps:$4 sm:$0xff]  }
 0x186   : > { %3184 = vmatprep.subr.bf16.mxu0 %v5278_v6  ;;  %v5348_v6 = vld [vmem:[#allocation2 + $0xc70] ss:$8 sps:$4 sm:$0xff]  }
 0x188   : > { %1646 = vmatpush1.bf16.msra.mxu1 %v5273_v7  ;;  %v5353_v7 = vld [vmem:[#allocation2 + $0x284] ss:$8 sps:$4 sm:$0xff]  }
 0x189   : > { %3185 = vmatpush1.bf16.msra.mxu0 %v5276_v8  ;;  %1647 = vmatprep.subr.bf16.mxu1 %v5281_v9  ;;  %v5356_v8 = vld [vmem:[#allocation2 + $0xc84] ss:$8 sps:$4 sm:$0xff]   ;;  %v5351_v9 = vld [vmem:[#allocation2 + $0x280] ss:$8 sps:$4 sm:$0xff]  }
 0x18a   : > { %3186 = vmatprep.subr.bf16.mxu0 %v5284_v10  ;;  %v5354_v10 = vld [vmem:[#allocation2 + $0xc80] ss:$8 sps:$4 sm:$0xff]  }
 0x18c   : > { %1648 = vmatpush1.bf16.msra.mxu1 %v5279_v11  ;;  %v5359_v11 = vld [vmem:[#allocation2 + $0x294] ss:$8 sps:$4 sm:$0xff]  }
 0x18d   : > { %3187 = vmatpush1.bf16.msra.mxu0 %v5282_v12  ;;  %1649 = vmatprep.subr.bf16.mxu1 %v5287_v14  ;;  %v5362_v12 = vld [vmem:[#allocation2 + $0xc94] ss:$8 sps:$4 sm:$0xff]   ;;  %v5360_v14 = vld [vmem:[#allocation2 + $0xc90] ss:$8 sps:$4 sm:$0xff]  }
 0x18e   : > { %3188 = vmatprep.subr.bf16.mxu0 %v5290_v15  ;;  %v5365_v15 = vld [vmem:[#allocation2 + $0x2a4] ss:$8 sps:$4 sm:$0xff]  }
 0x190   : > { %1650 = vmatpush1.bf16.msra.mxu1 %v5285_v17  ;;  %v5363_v17 = vld [vmem:[#allocation2 + $0x2a0] ss:$8 sps:$4 sm:$0xff]  }
 0x191   : > { %3189 = vmatpush1.bf16.msra.mxu0 %v5288_v18  ;;  %1651 = vmatprep.subr.bf16.mxu1 %v5293_v19  ;;  %v5366_v18 = vld [vmem:[#allocation2 + $0xca0] ss:$8 sps:$4 sm:$0xff]   ;;  %v5371_v19 = vld [vmem:[#allocation2 + $0x2b4] ss:$8 sps:$4 sm:$0xff]  }
 0x192   : > { %3190 = vmatprep.subr.bf16.mxu0 %v5296_v20  ;;  %v5374_v20 = vld [vmem:[#allocation2 + $0xcb4] ss:$8 sps:$4 sm:$0xff]  }
 0x194   : > { %1652 = vmatpush1.bf16.msra.mxu1 %v5291_v21  ;;  %v5369_v21 = vld [vmem:[#allocation2 + $0x2b0] ss:$8 sps:$4 sm:$0xff]  }
 0x195   : > { %3191 = vmatpush1.bf16.msra.mxu0 %v5294_v24  ;;  %1653 = vmatprep.subr.bf16.mxu1 %v5299_v25  ;;  %v5380_v24 = vld [vmem:[#allocation2 + $0xcc4] ss:$8 sps:$4 sm:$0xff]   ;;  %v5375_v25 = vld [vmem:[#allocation2 + $0x2c0] ss:$8 sps:$4 sm:$0xff]  }
 0x196   : > { %3192 = vmatprep.subr.bf16.mxu0 %v5302_v26  ;;  %v5378_v26 = vld [vmem:[#allocation2 + $0xcc0] ss:$8 sps:$4 sm:$0xff]  }
 0x198   : > { %1654 = vmatpush1.bf16.msra.mxu1 %v5297_v28  ;;  %v5386_v28 = vld [vmem:[#allocation2 + $0xcd4] ss:$8 sps:$4 sm:$0xff]  }
 0x199   : > { %3193 = vmatpush1.bf16.msra.mxu0 %v5300_v31  ;;  %1664 = vmatprep.subr.bf16.mxu1 %v5305_v33  ;;  %v5389_v31 = vld [vmem:[#allocation2 + $0x2e4] ss:$8 sps:$4 sm:$0xff]   ;;  %v5387_v33 = vld [vmem:[#allocation2 + $0x2e0] ss:$8 sps:$4 sm:$0xff]  }
 0x19a   : > { %3812 = vmatprep.subr.bf16.mxu0 %v5308_v34  ;;  %v5390_v34 = vld [vmem:[#allocation2 + $0xce0] ss:$8 sps:$4 sm:$0xff]  }
 0x19b   : > { %1656 = vmatmul.mubr.bf16.vlgmr.msra.gmra.mrb[0].mxu1 %v242_v38 }
 0x19c   : > { %3195 = vmatmul.mubr.bf16.vlgmr.msra.gmra.mrb[0].mxu0 %v2585_v39  ;;  %1665 = vmatpush1.bf16.msra.mxu1 %v5303_v35  ;;  %v3205_v35 = vld [vmem:[%s5790_s30] sm:$0x30]  ;;  %v1706_v39 = vld [vmem:[%s5790_s30 + $0x8] sm:$0xc] }
 0x19d   : > { %3813 = vmatpush1.bf16.msra.mxu0 %v5306_v36  ;;  %1666 = vmatprep.subr.bf16.mxu1 %v5311_v40  ;;  %v5395_v36 = vld [vmem:[#allocation2 + $0x2f4] ss:$8 sps:$4 sm:$0xff]   ;;  %v3211_v38 = vpack.c.bf16 %v3205_v35, %v3205_v35  ;;  %v5476_v35 = vld [vmem:[#allocation2 + $0xdc4] ss:$8 sps:$4 sm:$0xff]  }
 0x19e   : > { %3814 = vmatprep.subr.bf16.mxu0 %v5314_v42  ;;  %1696 = vmatprep.mubr.bf16.mxu1 %v245_v43  ;;  %v3208_v40 = vld [vmem:[%s5790_s30 + $0x18] sm:$0x30]  ;;  %v5396_v42 = vld [vmem:[#allocation2 + $0xcf0] ss:$8 sps:$4 sm:$0xff]   ;;  %v238_v43 = vld [vmem:[%s5790_s30 + $0x20] sm:$0x3] }
 0x19f   : > { %3844 = vmatprep.mubr.bf16.mxu0 %v3321_v44  ;;  %v5401_v44 = vld [vmem:[#allocation2 + $0x604] ss:$8 sps:$4 sm:$0xff]  }
 0x1a0   : > { %1667 = vmatpush1.bf16.msra.mxu1 %v5309_v45  ;;  %v5404_v45 = vld [vmem:[#allocation2 + $0xd04] ss:$8 sps:$4 sm:$0xff]  }
 0x1a1   : > { %3815 = vmatpush1.bf16.msra.mxu0 %v5312_v46  ;;  %1668 = vmatprep.subr.bf16.mxu1 %v5317_v47  ;;  %v1712_v46 = vpack.c.bf16 %v1706_v39, %v1706_v39  ;;  %v3214_v47 = vpack.c.bf16 %v3208_v40, %v3208_v40  ;;  %v5482_v39 = vld [vmem:[#allocation2 + $0xdd4] ss:$8 sps:$4 sm:$0xff]   ;;  %v5477_v40 = vld [vmem:[#allocation2 + $0x6d0] ss:$8 sps:$4 sm:$0xff]  }
 0x1a2   : > { %3816 = vmatprep.subr.bf16.mxu0 %v5320_v48  ;;  %v244_v48 = vpack.c.bf16 %v238_v43, %v238_v43  ;;  %v5488_v43 = vld [vmem:[#allocation2 + $0xde4] ss:$8 sps:$4 sm:$0xff]  }
 0x1a4   : > { %1669 = vmatpush1.bf16.msra.mxu1 %v5315_v49  ;;  %v3320_v49 = vrot.slane %v3211_v38, 2  ;;  %v5479_v38 = vld [vmem:[#allocation2 + $0x6d4] ss:$8 sps:$4 sm:$0xff]  }
 0x1a5   : > { %3817 = vmatpush1.bf16.msra.mxu0 %v5318_v50  ;;  %1670 = vmatprep.subr.bf16.mxu1 %v5323_v51  ;;  %v5399_v50 = vld [vmem:[#allocation2 + $0x600] ss:$8 sps:$4 sm:$0xff]  }
 0x1a6   : > { %3818 = vmatprep.subr.bf16.mxu0 %v5326_v52  ;;  %v5402_v51 = vld [vmem:[#allocation2 + $0xd00] ss:$8 sps:$4 sm:$0xff]   ;;  %v5407_v52 = vld [vmem:[#allocation2 + $0x614] ss:$8 sps:$4 sm:$0xff]  }
 0x1a8   : > { %1671 = vmatpush1.bf16.msra.mxu1 %v5321_v53  ;;  %v5410_v53 = vld [vmem:[#allocation2 + $0xd14] ss:$8 sps:$4 sm:$0xff]  }
 0x1a9   : > { %3819 = vmatpush1.bf16.msra.mxu0 %v5324_v54  ;;  %1672 = vmatprep.subr.bf16.mxu1 %v5329_v55  ;;  %v1821_v54 = vrot.slane %v1712_v46, 1  ;;  %v3323_v55 = vrot.slane %v3214_v47, 2  ;;  %v1705_v46 = vld [vmem:[%s5790_s30] sm:$0xc]  ;;  %v3207_v47 = vld [vmem:[%s5790_s30 + $0x10] sm:$0x30] }
 0x1aa   : > { %3820 = vmatprep.subr.bf16.mxu0 %v5332_v56  ;;  %v5405_v56 = vld [vmem:[#allocation2 + $0x610] ss:$8 sps:$4 sm:$0xff]  }
 0x1ac   : > { %1673 = vmatpush1.bf16.msra.mxu1 %v5327_v57  ;;  %v5408_v57 = vld [vmem:[#allocation2 + $0xd10] ss:$8 sps:$4 sm:$0xff]  }
 0x1ad   : > { %3821 = vmatpush1.bf16.msra.mxu0 %v5330_v58  ;;  %1674 = vmatprep.subr.bf16.mxu1 %v5335_v59  ;;  %v5413_v58 = vld [vmem:[#allocation2 + $0x624] ss:$8 sps:$4 sm:$0xff]  }
 0x1ae   : > { %3822 = vmatprep.subr.bf16.mxu0 %v5338_v60  ;;  %v5416_v59 = vld [vmem:[#allocation2 + $0xd24] ss:$8 sps:$4 sm:$0xff]   ;;  %v5411_v60 = vld [vmem:[#allocation2 + $0x620] ss:$8 sps:$4 sm:$0xff]  }
 0x1b0   : > { %1675 = vmatpush1.bf16.msra.mxu1 %v5333_v61  ;;  %v5414_v61 = vld [vmem:[#allocation2 + $0xd20] ss:$8 sps:$4 sm:$0xff]  }
 0x1b1   : > { %3823 = vmatpush1.bf16.msra.mxu0 %v5336_v62  ;;  %1676 = vmatprep.subr.bf16.mxu1 %v5341_v63  ;;  %v5419_v62 = vld [vmem:[#allocation2 + $0x634] ss:$8 sps:$4 sm:$0xff]  }
 0x1b2   : > { %3824 = vmatprep.subr.bf16.mxu0 %v5344_v0  ;;  %v5422_v63 = vld [vmem:[#allocation2 + $0xd34] ss:$8 sps:$4 sm:$0xff]   ;;  %v5417_v0 = vld [vmem:[#allocation2 + $0x630] ss:$8 sps:$4 sm:$0xff]  }
 0x1b4   : > { %1677 = vmatpush1.bf16.msra.mxu1 %v5339_v1  ;;  %v5420_v1 = vld [vmem:[#allocation2 + $0xd30] ss:$8 sps:$4 sm:$0xff]  }
 0x1b5   : > { %3825 = vmatpush1.bf16.msra.mxu0 %v5342_v2  ;;  %1678 = vmatprep.subr.bf16.mxu1 %v5347_v3  ;;  %v5425_v2 = vld [vmem:[#allocation2 + $0x644] ss:$8 sps:$4 sm:$0xff]  }
 0x1b6   : > { %3826 = vmatprep.subr.bf16.mxu0 %v5350_v4  ;;  %v5428_v3 = vld [vmem:[#allocation2 + $0xd44] ss:$8 sps:$4 sm:$0xff]   ;;  %v5423_v4 = vld [vmem:[#allocation2 + $0x640] ss:$8 sps:$4 sm:$0xff]  }
 0x1b8   : > { %1679 = vmatpush1.bf16.msra.mxu1 %v5345_v5  ;;  %v5426_v5 = vld [vmem:[#allocation2 + $0xd40] ss:$8 sps:$4 sm:$0xff]  }
 0x1b9   : > { %3827 = vmatpush1.bf16.msra.mxu0 %v5348_v6  ;;  %1680 = vmatprep.subr.bf16.mxu1 %v5353_v7  ;;  %v5431_v6 = vld [vmem:[#allocation2 + $0x654] ss:$8 sps:$4 sm:$0xff]  }
 0x1ba   : > { %3828 = vmatprep.subr.bf16.mxu0 %v5356_v8  ;;  %v5434_v7 = vld [vmem:[#allocation2 + $0xd54] ss:$8 sps:$4 sm:$0xff]   ;;  %v5429_v8 = vld [vmem:[#allocation2 + $0x650] ss:$8 sps:$4 sm:$0xff]  }
 0x1bc   : > { %1681 = vmatpush1.bf16.msra.mxu1 %v5351_v9  ;;  %v5432_v9 = vld [vmem:[#allocation2 + $0xd50] ss:$8 sps:$4 sm:$0xff]  }
 0x1bd   : > { %3829 = vmatpush1.bf16.msra.mxu0 %v5354_v10  ;;  %1682 = vmatprep.subr.bf16.mxu1 %v5359_v11  ;;  %v5437_v10 = vld [vmem:[#allocation2 + $0x664] ss:$8 sps:$4 sm:$0xff]  }
 0x1be   : > { %3830 = vmatprep.subr.bf16.mxu0 %v5362_v12  ;;  %v5440_v11 = vld [vmem:[#allocation2 + $0xd64] ss:$8 sps:$4 sm:$0xff]   ;;  %v5435_v12 = vld [vmem:[#allocation2 + $0x660] ss:$8 sps:$4 sm:$0xff]  }
 0x1c0   : > { %1683 = vmatpush1.bf16.msra.mxu1 %v5357_v13  ;;  %v5438_v13 = vld [vmem:[#allocation2 + $0xd60] ss:$8 sps:$4 sm:$0xff]  }
 0x1c1   : > { %3831 = vmatpush1.bf16.msra.mxu0 %v5360_v14  ;;  %1684 = vmatprep.subr.bf16.mxu1 %v5365_v15  ;;  %v5443_v14 = vld [vmem:[#allocation2 + $0x674] ss:$8 sps:$4 sm:$0xff]  }
 0x1c2   : > { %3832 = vmatprep.subr.bf16.mxu0 %v5368_v16  ;;  %v5446_v15 = vld [vmem:[#allocation2 + $0xd74] ss:$8 sps:$4 sm:$0xff]   ;;  %v5441_v16 = vld [vmem:[#allocation2 + $0x670] ss:$8 sps:$4 sm:$0xff]  }
 0x1c4   : > { %1685 = vmatpush1.bf16.msra.mxu1 %v5363_v17  ;;  %v5444_v17 = vld [vmem:[#allocation2 + $0xd70] ss:$8 sps:$4 sm:$0xff]  }
 0x1c5   : > { %3833 = vmatpush1.bf16.msra.mxu0 %v5366_v18  ;;  %1686 = vmatprep.subr.bf16.mxu1 %v5371_v19  ;;  %v5449_v18 = vld [vmem:[#allocation2 + $0x684] ss:$8 sps:$4 sm:$0xff]  }
 0x1c6   : > { %3834 = vmatprep.subr.bf16.mxu0 %v5374_v20  ;;  %v5452_v19 = vld [vmem:[#allocation2 + $0xd84] ss:$8 sps:$4 sm:$0xff]   ;;  %v5447_v20 = vld [vmem:[#allocation2 + $0x680] ss:$8 sps:$4 sm:$0xff]  }
 0x1c8   : > { %1687 = vmatpush1.bf16.msra.mxu1 %v5369_v21  ;;  %v5450_v21 = vld [vmem:[#allocation2 + $0xd80] ss:$8 sps:$4 sm:$0xff]  }
 0x1c9   : > { %3835 = vmatpush1.bf16.msra.mxu0 %v5372_v22  ;;  %1688 = vmatprep.subr.bf16.mxu1 %v5377_v23  ;;  %v5455_v22 = vld [vmem:[#allocation2 + $0x694] ss:$8 sps:$4 sm:$0xff]  }
 0x1ca   : > { %3836 = vmatprep.subr.bf16.mxu0 %v5380_v24  ;;  %v5458_v23 = vld [vmem:[#allocation2 + $0xd94] ss:$8 sps:$4 sm:$0xff]   ;;  %v5453_v24 = vld [vmem:[#allocation2 + $0x690] ss:$8 sps:$4 sm:$0xff]  }
 0x1cc   : > { %1689 = vmatpush1.bf16.msra.mxu1 %v5375_v25  ;;  %v5456_v25 = vld [vmem:[#allocation2 + $0xd90] ss:$8 sps:$4 sm:$0xff]  }
 0x1cd   : > { %3837 = vmatpush1.bf16.msra.mxu0 %v5378_v26  ;;  %1690 = vmatprep.subr.bf16.mxu1 %v5383_v27  ;;  %v5461_v26 = vld [vmem:[#allocation2 + $0x6a4] ss:$8 sps:$4 sm:$0xff]  }
 0x1ce   : > { %3838 = vmatprep.subr.bf16.mxu0 %v5386_v28  ;;  %v5464_v27 = vld [vmem:[#allocation2 + $0xda4] ss:$8 sps:$4 sm:$0xff]   ;;  %v5459_v28 = vld [vmem:[#allocation2 + $0x6a0] ss:$8 sps:$4 sm:$0xff]  }
 0x1d0   : > { %1691 = vmatpush1.bf16.msra.mxu1 %v5381_v29  ;;  %v5462_v29 = vld [vmem:[#allocation2 + $0xda0] ss:$8 sps:$4 sm:$0xff]  }
 0x1d1   : > { %3839 = vmatpush1.bf16.msra.mxu0 %v5384_v30  ;;  %1692 = vmatprep.subr.bf16.mxu1 %v5389_v31  ;;  %v5467_v30 = vld [vmem:[#allocation2 + $0x6b4] ss:$8 sps:$4 sm:$0xff]  }
 0x1d2   : > { %3840 = vmatprep.subr.bf16.mxu0 %v5392_v32  ;;  %v5470_v31 = vld [vmem:[#allocation2 + $0xdb4] ss:$8 sps:$4 sm:$0xff]   ;;  %v5465_v32 = vld [vmem:[#allocation2 + $0x6b0] ss:$8 sps:$4 sm:$0xff]  }
 0x1d4   : > { %1693 = vmatpush1.bf16.msra.mxu1 %v5387_v33  ;;  %v5468_v33 = vld [vmem:[#allocation2 + $0xdb0] ss:$8 sps:$4 sm:$0xff]  }
 0x1d5   : > { %3841 = vmatpush1.bf16.msra.mxu0 %v5390_v34  ;;  %1694 = vmatprep.subr.bf16.mxu1 %v5395_v36  ;;  %v5473_v34 = vld [vmem:[#allocation2 + $0x6c4] ss:$8 sps:$4 sm:$0xff]   ;;  %v5471_v36 = vld [vmem:[#allocation2 + $0x6c0] ss:$8 sps:$4 sm:$0xff]  }
 0x1d6   : > { %3842 = vmatprep.subr.bf16.mxu0 %v5398_v37  ;;  %v5474_v37 = vld [vmem:[#allocation2 + $0xdc0] ss:$8 sps:$4 sm:$0xff]  }
 0x1d8   : > { %1695 = vmatpush1.bf16.msra.mxu1 %v5393_v41  ;;  %v5480_v41 = vld [vmem:[#allocation2 + $0xdd0] ss:$8 sps:$4 sm:$0xff]  }
 0x1d9   : > { %3843 = vmatpush1.bf16.msra.mxu0 %v5396_v42  ;;  %2312 = vmatprep.subr.bf16.mxu1 %v5401_v44  ;;  %v5485_v42 = vld [vmem:[#allocation2 + $0x6e4] ss:$8 sps:$4 sm:$0xff]   ;;  %v5483_v44 = vld [vmem:[#allocation2 + $0x6e0] ss:$8 sps:$4 sm:$0xff]  }
 0x1da   : > { %3853 = vmatprep.subr.bf16.mxu0 %v5404_v45  ;;  %v5486_v45 = vld [vmem:[#allocation2 + $0xde0] ss:$8 sps:$4 sm:$0xff]  }
 0x1db   : > { %1697 = vmatmul.mubr.bf16.vlgmr.msra.gmra.mrb[0].mxu1 %v244_v48  ;;  %v5491_v48 = vld [vmem:[#allocation2 + $0x6f4] ss:$8 sps:$4 sm:$0xff]  }
 0x1dc   : > { %3845 = vmatmul.mubr.bf16.vlgmr.msra.gmra.mrb[0].mxu0 %v3320_v49  ;;  %2313 = vmatpush1.bf16.msra.mxu1 %v5399_v50  ;;  %v5494_v49 = vld [vmem:[#allocation2 + $0xdf4] ss:$8 sps:$4 sm:$0xff]   ;;  %v3210_v50 = vld [vmem:[%s5790_s30 + $0x28] sm:$0x30] }
 0x1dd   : > { %3854 = vmatpush1.bf16.msra.mxu0 %v5402_v51  ;;  %2314 = vmatprep.subr.bf16.mxu1 %v5407_v52  ;;  %v1711_v51 = vpack.c.bf16 %v1705_v46, %v1705_v46  ;;  %v3213_v52 = vpack.c.bf16 %v3207_v47, %v3207_v47 }
 0x1de   : > { %3855 = vmatprep.subr.bf16.mxu0 %v5410_v53  ;;  %2344 = vmatprep.mubr.bf16.mxu1 %v1821_v54  ;;  %v5489_v53 = vld [vmem:[#allocation2 + $0x6f0] ss:$8 sps:$4 sm:$0xff]  }
 0x1df   : > { %3885 = vmatprep.mubr.bf16.mxu0 %v3323_v55  ;;  %v5492_v54 = vld [vmem:[#allocation2 + $0xdf0] ss:$8 sps:$4 sm:$0xff]   ;;  %v3216_v55 = vpack.c.bf16 %v3210_v50, %v3210_v50 }
 0x1e0   : > { %2315 = vmatpush1.bf16.msra.mxu1 %v5405_v56  ;;  %v5497_v56 = vld [vmem:[#allocation2 + $0xe04] ss:$8 sps:$4 sm:$0xff]  }
 0x1e1   : > { %3856 = vmatpush1.bf16.msra.mxu0 %v5408_v57  ;;  %2316 = vmatprep.subr.bf16.mxu1 %v5413_v58  ;;  %v1820_v57 = vrot.slane %v1711_v51, 1  ;;  %v3322_v58 = vrot.slane %v3213_v52, 2 }
 0x1e2   : > { %3857 = vmatprep.subr.bf16.mxu0 %v5416_v59  ;;  %v5495_v59 = vld [vmem:[#allocation2 + $0xe00] ss:$8 sps:$4 sm:$0xff]  }
 0x1e4   : > { %2317 = vmatpush1.bf16.msra.mxu1 %v5411_v60  ;;  %v3325_v60 = vrot.slane %v3216_v55, 2 }
 0x1e5   : > { %3858 = vmatpush1.bf16.msra.mxu0 %v5414_v61  ;;  %2318 = vmatprep.subr.bf16.mxu1 %v5419_v62  ;;  %v5500_v61 = vld [vmem:[#allocation2 + $0xe14] ss:$8 sps:$4 sm:$0xff]   ;;  %v5498_v62 = vld [vmem:[#allocation2 + $0xe10] ss:$8 sps:$4 sm:$0xff]  }
 0x1e6   : > { %3859 = vmatprep.subr.bf16.mxu0 %v5422_v63  ;;  %v5503_v63 = vld [vmem:[#allocation2 + $0xe24] ss:$8 sps:$4 sm:$0xff]  }
 0x1e8   : > { %2319 = vmatpush1.bf16.msra.mxu1 %v5417_v0  ;;  %v5501_v0 = vld [vmem:[#allocation2 + $0xe20] ss:$8 sps:$4 sm:$0xff]  }
 0x1e9   : > { %3860 = vmatpush1.bf16.msra.mxu0 %v5420_v1  ;;  %2320 = vmatprep.subr.bf16.mxu1 %v5425_v2  ;;  %v5506_v1 = vld [vmem:[#allocation2 + $0xe34] ss:$8 sps:$4 sm:$0xff]   ;;  %v5504_v2 = vld [vmem:[#allocation2 + $0xe30] ss:$8 sps:$4 sm:$0xff]  }
 0x1ea   : > { %3861 = vmatprep.subr.bf16.mxu0 %v5428_v3  ;;  %v5509_v3 = vld [vmem:[#allocation2 + $0xe44] ss:$8 sps:$4 sm:$0xff]  }
 0x1ec   : > { %2321 = vmatpush1.bf16.msra.mxu1 %v5423_v4  ;;  %v5507_v4 = vld [vmem:[#allocation2 + $0xe40] ss:$8 sps:$4 sm:$0xff]  }
 0x1ed   : > { %3862 = vmatpush1.bf16.msra.mxu0 %v5426_v5  ;;  %2322 = vmatprep.subr.bf16.mxu1 %v5431_v6  ;;  %v5512_v5 = vld [vmem:[#allocation2 + $0xe54] ss:$8 sps:$4 sm:$0xff]   ;;  %v5510_v6 = vld [vmem:[#allocation2 + $0xe50] ss:$8 sps:$4 sm:$0xff]  }
 0x1ee   : > { %3863 = vmatprep.subr.bf16.mxu0 %v5434_v7  ;;  %v5515_v7 = vld [vmem:[#allocation2 + $0xe64] ss:$8 sps:$4 sm:$0xff]  }
 0x1f0   : > { %2323 = vmatpush1.bf16.msra.mxu1 %v5429_v8  ;;  %v5513_v8 = vld [vmem:[#allocation2 + $0xe60] ss:$8 sps:$4 sm:$0xff]  }
 0x1f1   : > { %3864 = vmatpush1.bf16.msra.mxu0 %v5432_v9  ;;  %2324 = vmatprep.subr.bf16.mxu1 %v5437_v10  ;;  %v5518_v9 = vld [vmem:[#allocation2 + $0xe74] ss:$8 sps:$4 sm:$0xff]   ;;  %v5516_v10 = vld [vmem:[#allocation2 + $0xe70] ss:$8 sps:$4 sm:$0xff]  }
 0x1f2   : > { %3865 = vmatprep.subr.bf16.mxu0 %v5440_v11  ;;  %v5521_v11 = vld [vmem:[#allocation2 + $0xe84] ss:$8 sps:$4 sm:$0xff]  }
 0x1f4   : > { %2325 = vmatpush1.bf16.msra.mxu1 %v5435_v12  ;;  %v5519_v12 = vld [vmem:[#allocation2 + $0xe80] ss:$8 sps:$4 sm:$0xff]  }
 0x1f5   : > { %3866 = vmatpush1.bf16.msra.mxu0 %v5438_v13  ;;  %2326 = vmatprep.subr.bf16.mxu1 %v5443_v14  ;;  %v5524_v13 = vld [vmem:[#allocation2 + $0xe94] ss:$8 sps:$4 sm:$0xff]   ;;  %v5522_v14 = vld [vmem:[#allocation2 + $0xe90] ss:$8 sps:$4 sm:$0xff]  }
 0x1f6   : > { %3867 = vmatprep.subr.bf16.mxu0 %v5446_v15  ;;  %v5527_v15 = vld [vmem:[#allocation2 + $0xea4] ss:$8 sps:$4 sm:$0xff]  }
 0x1f8   : > { %2327 = vmatpush1.bf16.msra.mxu1 %v5441_v16  ;;  %v5525_v16 = vld [vmem:[#allocation2 + $0xea0] ss:$8 sps:$4 sm:$0xff]  }
 0x1f9   : > { %3868 = vmatpush1.bf16.msra.mxu0 %v5444_v17  ;;  %2328 = vmatprep.subr.bf16.mxu1 %v5449_v18  ;;  %v5530_v17 = vld [vmem:[#allocation2 + $0xeb4] ss:$8 sps:$4 sm:$0xff]   ;;  %v5528_v18 = vld [vmem:[#allocation2 + $0xeb0] ss:$8 sps:$4 sm:$0xff]  }
 0x1fa   : > { %3869 = vmatprep.subr.bf16.mxu0 %v5452_v19  ;;  %v5533_v19 = vld [vmem:[#allocation2 + $0xec4] ss:$8 sps:$4 sm:$0xff]  }
 0x1fc   : > { %2329 = vmatpush1.bf16.msra.mxu1 %v5447_v20  ;;  %v5531_v20 = vld [vmem:[#allocation2 + $0xec0] ss:$8 sps:$4 sm:$0xff]  }
 0x1fd   : > { %3870 = vmatpush1.bf16.msra.mxu0 %v5450_v21  ;;  %2330 = vmatprep.subr.bf16.mxu1 %v5455_v22  ;;  %v5536_v21 = vld [vmem:[#allocation2 + $0xed4] ss:$8 sps:$4 sm:$0xff]   ;;  %v5534_v22 = vld [vmem:[#allocation2 + $0xed0] ss:$8 sps:$4 sm:$0xff]  }
 0x1fe   : > { %3871 = vmatprep.subr.bf16.mxu0 %v5458_v23  ;;  %v5539_v23 = vld [vmem:[#allocation2 + $0xee4] ss:$8 sps:$4 sm:$0xff]  }
 0x200   : > { %2331 = vmatpush1.bf16.msra.mxu1 %v5453_v24  ;;  %v5537_v24 = vld [vmem:[#allocation2 + $0xee0] ss:$8 sps:$4 sm:$0xff]  }
 0x201   : > { %3872 = vmatpush1.bf16.msra.mxu0 %v5456_v25  ;;  %2332 = vmatprep.subr.bf16.mxu1 %v5461_v26  ;;  %v3209_v25 = vld [vmem:[%s5790_s30 + $0x20] sm:$0x30]  ;;  %v5542_v26 = vld [vmem:[#allocation2 + $0xef4] ss:$8 sps:$4 sm:$0xff]  }
 0x202   : > { %3873 = vmatprep.subr.bf16.mxu0 %v5464_v27  ;;  %v3215_v27 = vpack.c.bf16 %v3209_v25, %v3209_v25 }
 0x204   : > { %2333 = vmatpush1.bf16.msra.mxu1 %v5459_v28  ;;  %v5540_v28 = vld [vmem:[#allocation2 + $0xef0] ss:$8 sps:$4 sm:$0xff]  }
 0x205   : > { %3874 = vmatpush1.bf16.msra.mxu0 %v5462_v29  ;;  %2334 = vmatprep.subr.bf16.mxu1 %v5467_v30  ;;  %v3324_v29 = vrot.slane %v3215_v27, 2  ;;  %v5648_v30 = vmov 0.0  }
 0x206   : > { %3875 = vmatprep.subr.bf16.mxu0 %v5470_v31 }
 0x208   : > { %2335 = vmatpush1.bf16.msra.mxu1 %v5465_v32 }
 0x209   : > { %3876 = vmatpush1.bf16.msra.mxu0 %v5468_v33  ;;  %2336 = vmatprep.subr.bf16.mxu1 %v5473_v34 }
 0x20a   : > { %3877 = vmatprep.subr.bf16.mxu0 %v5476_v35  ;;  %v3939_v35 = vlaneseq }
 0x20c   : > { %2337 = vmatpush1.bf16.msra.mxu1 %v5471_v36  ;;  %v3940_v36 = vshrl.u32 %v3939_v35, 7  ;;  %v3971_v52 = vand.u32 127, %v3939_v35 }
 0x20d   : > { %3878 = vmatpush1.bf16.msra.mxu0 %v5474_v37  ;;  %2338 = vmatprep.subr.bf16.mxu1 %v5479_v38  ;;  %v3937_v38 = vld [vmem:[#allocation4] sm:$0x3] }
 0x20e   : > { %3879 = vmatprep.subr.bf16.mxu0 %v5482_v39  ;;  %v3941_v37 = vsub.s32 0, %v3940_v36  ;;  %v3945_v39 = vsub.s32 1, %v3940_v36 }
 0x210   : > { %2339 = vmatpush1.bf16.msra.mxu1 %v5477_v40  ;;  %v3951_v40 = vld [vmem:[#allocation6] sm:$0x3] }
 0x211   : > { %3880 = vmatpush1.bf16.msra.mxu0 %v5480_v41  ;;  %2340 = vmatprep.subr.bf16.mxu1 %v5485_v42  ;;  %v3942_v41 = vrot.slane %v3937_v38, %v3941_v37 }
 0x212   : > { %3881 = vmatprep.subr.bf16.mxu0 %v5488_v43  ;;  %v3946_v43 = vrot.slane %v3937_v38, %v3945_v39 }
 0x214   : > { %2341 = vmatpush1.bf16.msra.mxu1 %v5483_v44 }
 0x215   : > { %3882 = vmatpush1.bf16.msra.mxu0 %v5486_v45  ;;  %2342 = vmatprep.subr.bf16.mxu1 %v5491_v48  ;;  %v3956_v45 = vrot.slane %v3951_v40, %v3941_v37  ;;  %v3960_v48 = vrot.slane %v3951_v40, %v3945_v39 }
 0x216   : > { %3883 = vmatprep.subr.bf16.mxu0 %v5494_v49 }
 0x218   : > { %2343 = vmatpush1.bf16.msra.mxu1 %v5489_v53  ;;  %v3972_v53 = vmul.u32 2, %v3940_v36 }
 0x219   : > { %3884 = vmatpush1.bf16.msra.mxu0 %v5492_v54  ;;  %4715 = vmatprep.subr.mxu1 %v5648_v30 }
 0x21a   : > { %3894 = vmatprep.subr.bf16.mxu0 %v5497_v56  ;;  %vm3973_vm1 = vcmp.eq.s32.totalorder %v3971_v52, %v3972_v53 }
 0x21b   : > { %2345 = vmatmul.mubr.bf16.vlgmr.msra.gmra.mrb[0].mxu1 %v1820_v57 }
 0x21c   : > { %3886 = vmatmul.mubr.bf16.vlgmr.msra.gmra.mrb[0].mxu0 %v3322_v58  ;;  %4717 = vmatprep.mubr.msk.f32.mxu1 %vm5649_vm0, %v5648_v30  ;;  %v3976_v58 = vadd.s32 1, %v3972_v53 }
 0x21d   : > { %3895 = vmatpush1.bf16.msra.mxu0 %v5495_v59  ;;  %3926 = vmatprep.mubr.bf16.mxu0 %v3325_v60 }
 0x21e   : > { %3896 = vmatprep.subr.bf16.mxu0 %v5500_v61  ;;  %v4703_v61 = vsel %vm3973_vm1, 1.0, %v5648_v30  ;;  %vm3977_vm4 = vcmp.eq.s32.totalorder %v3971_v52, %v3976_v58 }
 0x221   : > { %3897 = vmatpush1.bf16.msra.mxu0 %v5498_v62  ;;  %v4704_v62 = vsel %vm3977_vm4, 1.0, %v5648_v30 }
 0x222   : > { %3898 = vmatprep.subr.bf16.mxu0 %v5503_v63 }
 0x225   : > { %3899 = vmatpush1.bf16.msra.mxu0 %v5501_v0 }
 0x226   : > { %3900 = vmatprep.subr.bf16.mxu0 %v5506_v1 }
 0x229   : > { %3901 = vmatpush1.bf16.msra.mxu0 %v5504_v2 }
 0x22a   : > { %3902 = vmatprep.subr.bf16.mxu0 %v5509_v3 }
 0x22d   : > { %3903 = vmatpush1.bf16.msra.mxu0 %v5507_v4 }
 0x22e   : > { %3904 = vmatprep.subr.bf16.mxu0 %v5512_v5 }
 0x231   : > { %3905 = vmatpush1.bf16.msra.mxu0 %v5510_v6 }
 0x232   : > { %3906 = vmatprep.subr.bf16.mxu0 %v5515_v7 }
 0x235   : > { %3907 = vmatpush1.bf16.msra.mxu0 %v5513_v8 }
 0x236   : > { %3908 = vmatprep.subr.bf16.mxu0 %v5518_v9 }
 0x239   : > { %3909 = vmatpush1.bf16.msra.mxu0 %v5516_v10 }
 0x23a   : > { %3910 = vmatprep.subr.bf16.mxu0 %v5521_v11 }
 0x23d   : > { %3911 = vmatpush1.bf16.msra.mxu0 %v5519_v12 }
 0x23e   : > { %3912 = vmatprep.subr.bf16.mxu0 %v5524_v13 }
 0x241   : > { %3913 = vmatpush1.bf16.msra.mxu0 %v5522_v14 }
 0x242   : > { %3914 = vmatprep.subr.bf16.mxu0 %v5527_v15 }
 0x245   : > { %3915 = vmatpush1.bf16.msra.mxu0 %v5525_v16 }
 0x246   : > { %3916 = vmatprep.subr.bf16.mxu0 %v5530_v17 }
 0x249   : > { %3917 = vmatpush1.bf16.msra.mxu0 %v5528_v18 }
 0x24a   : > { %3918 = vmatprep.subr.bf16.mxu0 %v5533_v19 }
 0x24d   : > { %3919 = vmatpush1.bf16.msra.mxu0 %v5531_v20 }
 0x24e   : > { %3920 = vmatprep.subr.bf16.mxu0 %v5536_v21 }
 0x251   : > { %3921 = vmatpush1.bf16.msra.mxu0 %v5534_v22 }
 0x252   : > { %3922 = vmatprep.subr.bf16.mxu0 %v5539_v23 }
 0x255   : > { %3923 = vmatpush1.bf16.msra.mxu0 %v5537_v24 }
 0x256   : > { %3924 = vmatprep.subr.bf16.mxu0 %v5542_v26 }
 0x259   : > { %3925 = vmatpush1.bf16.msra.mxu0 %v5540_v28 }
 0x25c   : > { %3927 = vmatmul.mubr.bf16.vlgmr.msra.gmra.mrb[0].mxu0 %v3324_v29 }
 0x2ee   : > { %v2346_v31 = vpop.f32.mrb[0].mxu1 }
 0x2ef   : > { %v2348_v32 = vpop.f32.mrb[1].mxu1 }
 0x2f0   : > { %v2350_v33 = vpop.f32.mrb[2].mxu1 }
 0x2f1   : > { %v2351_v34 = vpop.f32.mrb[3].mxu1 }
 0x32f   : > { %v3928_v42 = vpop.f32.mrb[0].mxu0 }
 0x330   : > { %v4725_v44 = vadd.f32 %v3928_v42, %v2346_v31  ;;  %v3930_v46 = vpop.f32.mrb[1].mxu0 }
 0x331   : > { %v4726_v47 = vadd.f32 %v3930_v46, %v2348_v32  ;;  %v3932_v49 = vpop.f32.mrb[2].mxu0 }
 0x332   : > { %v3949_v50 = vmul.f32 %v4725_v44, %v3942_v41  ;;  %v3933_v51 = vpop.f32.mrb[3].mxu0 }
 0x333   : > { %v3950_v54 = vmul.f32 %v4726_v47, %v3946_v43 }
 0x334   : > { %v3963_v55 = vadd.f32 %v3956_v45, %v3949_v50 }
 0x335   : > { %v3964_v56 = vadd.f32 %v3960_v48, %v3950_v54 }
 0x336   : > { %v3965_v57 = vmax.f32 %v3963_v55, 0.0 }
 0x337   : > { %v3966_v59 = vmax.f32 %v3964_v56, 0.0 }
 0x339   : > { %v3967_v60 = vmax.f32 %v3965_v57, %v3966_v59 }
 0x33b   : > { %4716 = vmatpush3.msk.msra.mxu1 %vm3984_vm2, %v3967_v60 }
 0x33c   : > { %4720 = vmatprep.subr.mxu1 %v5648_v30  ;;  %4718 = vmatmul.mubr.msk.f32.vlgmr.msra.gmra.mrb[4].mxu1 %vm3980_vm3, %v4703_v61 }
 0x33d   : > { %4721 = vmatpush3.msk.msra.mxu1 %vm3984_vm2, %v3967_v60  ;;  %4722 = vmatprep.mubr.msk.f32.mxu1 %vm5649_vm0, %v5648_v30 }
 0x340   : > { %4723 = vmatmul.mubr.msk.f32.vlgmr.msra.gmra.mrb[6].mxu1 %vm3980_vm3, %v4704_v62 }
 0x40f   : > { %v4054_v63 = vpop.f32.mrb[4].mxu1 }
 0x410   : > { %v4719_v0 = vpop.f32.mrb[5].mxu1 }
 0x413   : > { %v4127_v1 = vpop.f32.mrb[6].mxu1 }
 0x414   : > { %v4131_v2 = vmax.f32 %v4054_v63, %v4127_v1  ;;  %v4724_v3 = vpop.f32.mrb[7].mxu1 }
 0x416   : > { %4132 = vst [vmem:[%s233_s14] sm:$0x1] %v4131_v2 }
 0x417 PF: > { %s16_s15 = sadd.s32 1, %s5641_s15  }
 0x418   : > { %p13_p3 = scmp.ge.s32.totalorder %s16_s15, 4  }
 0x41a   :  { %15 = sbr.rel (!%p13_p3) target bundleno = 2 (0x2), region = 83 }
 0x421   :  { %4150 = vsyncpa [#allocation3], 1 }
 0x422   :  { %4152 = vsyncpa [#allocation3 + $0x1], 1 }
 0x423   :  { %4153 = vsyncpa [#allocation5], 1 }

</bundles_post_ra>
